<compile_context>
chip_gen: v7x
topology: tpu7x:2x2x1
jax: 0.10.0
libtpu: 0.0.40
codegen_flags: <defaults>
</compile_context>

<pallas_src>
import functools

import jax
import jax.numpy as jnp
from jax import lax
from jax.experimental import pallas as pl
from jax.experimental.pallas import tpu as pltpu

LANE = 128
ACT_DTYPE = jnp.bfloat16   # activations in HBM; accumulation stays f32 in-kernel


def _rup(x, m):
    return (x + m - 1) // m * m


def _vmem_limit(block_bytes, working_bytes):
    # double-buffered blocks + in-kernel working set + slack; clamped under the
    # smallest physical VMEM (v7x: 64 MiB).
    b = 2 * block_bytes + working_bytes + (4 << 20)
    return int(min(max(b, 16 << 20), 56 << 20))


# ----------------------------------------------------------------------------
# Fused 3x3 conv (+ pre-ReLU) (+ bias) (+ residual) Pallas kernel
# ----------------------------------------------------------------------------
def _conv_body(x_ref, w_ref, b_ref, r_ref, o_ref, *, relu_in):
    _, H, W, Cin = x_ref.shape
    TN = o_ref.shape[-1]

    xb = x_ref[0]                                   # (H, W, Cin) bf16
    if relu_in:
        xb = jnp.maximum(xb, 0)                     # hoisted: once per block

    # kw-shifted copies with in-kernel zero border (3 relayouts total).
    zc = jnp.zeros((H, 1, Cin), xb.dtype)
    sh = [
        jnp.concatenate([zc, xb[:, :W - 1, :]], axis=1),   # kw=0 -> x[:, j-1]
        xb,                                                 # kw=1 -> x[:, j]
        jnp.concatenate([xb[:, 1:, :], zc], axis=1),        # kw=2 -> x[:, j+1]
    ]
    zr = jnp.zeros((1, W, Cin), xb.dtype)

    acc = None
    for kh in range(3):
        for kw in range(3):
            t = sh[kw]
            if kh == 0:                              # x[i-1, ...] (free leading concat)
                t = jnp.concatenate([zr, t[:H - 1]], axis=0)
            elif kh == 2:                            # x[i+1, ...]
                t = jnp.concatenate([t[1:], zr], axis=0)
            part = jnp.dot(t.reshape(H * W, Cin), w_ref[3 * kh + kw],
                           preferred_element_type=jnp.float32)
            acc = part if acc is None else acc + part

    y = acc + b_ref[...]                             # (HW, TN) f32 + (1, TN) f32
    if r_ref is not None:                            # fused residual add
        y = y + r_ref[0].reshape(H * W, TN).astype(jnp.float32)
    o_ref[...] = y.reshape(1, H, W, TN).astype(o_ref.dtype)   # single store


@functools.lru_cache(maxsize=None)
def _make_conv(N, H, W, Cinp, Coutp, relu_in, has_res):
    TN = 256 if Coutp % 256 == 0 else 128            # wide MXU tiles on v6e/v7x

    if has_res:
        def kern(x_ref, w_ref, b_ref, r_ref, o_ref):
            _conv_body(x_ref, w_ref, b_ref, r_ref, o_ref, relu_in=relu_in)
    else:
        def kern(x_ref, w_ref, b_ref, o_ref):
            _conv_body(x_ref, w_ref, b_ref, None, o_ref, relu_in=relu_in)

    in_specs = [
        pl.BlockSpec((1, H, W, Cinp), lambda n, j: (n, 0, 0, 0)),   # activations
        pl.BlockSpec((9, Cinp, TN), lambda n, j: (0, 0, j)),        # packed weights
        pl.BlockSpec((1, TN), lambda n, j: (0, j)),                 # bias
    ]
    if has_res:
        in_specs.append(pl.BlockSpec((1, H, W, TN), lambda n, j: (n, 0, 0, j)))

    blk = (H * W * Cinp * 2 + 9 * Cinp * TN * 2 + TN * 4
           + H * W * TN * 2 + (H * W * TN * 2 if has_res else 0))
    work = 5 * H * W * Cinp * 2 + 3 * H * W * TN * 4     # shifted copies + f32 acc

    return pl.pallas_call(
        kern,
        out_shape=jax.ShapeDtypeStruct((N, H, W, Coutp), ACT_DTYPE),
        grid_spec=pltpu.PrefetchScalarGridSpec(
            num_scalar_prefetch=0,
            grid=(N, Coutp // TN),
            in_specs=in_specs,
            out_specs=pl.BlockSpec((1, H, W, TN), lambda n, j: (n, 0, 0, j)),
        ),
        compiler_params=pltpu.CompilerParams(
            dimension_semantics=("parallel", "parallel"),
            vmem_limit_bytes=_vmem_limit(blk, work)),
    )


def conv3x3(x, w9, b, *, relu_in=False, residual=None):
    """x: (N, H, W, Cin_p) bf16 channels-last.  Returns (N, H, W, Cout_p) bf16."""
    N, H, W, Cinp = x.shape
    Coutp = w9.shape[-1]
    assert Cinp % LANE == 0 and Coutp % LANE == 0
    fn = _make_conv(N, H, W, Cinp, Coutp, bool(relu_in), residual is not None)
    if residual is None:
        return fn(x, w9, b)
    return fn(x, w9, b, residual)


# ----------------------------------------------------------------------------
# Bilinear 2x upsample (align_corners=False) + residual add, fully vectorised.
# Output layout (N, 2h, w, 2*Cp) is bit-identical (row-major) to
# (N, 2h, 2w, Cp), so the width interleave needs no in-kernel relayout.
# ----------------------------------------------------------------------------
def _upsample2x_add_kernel(u_ref, r_ref, o_ref):
    u = u_ref[0].astype(jnp.float32)                 # (h, w, C)

    # width pass (edge clamp): shifts are whole-array sublane concats
    left = jnp.concatenate([u[:, :1], u[:, :-1]], axis=1)
    right = jnp.concatenate([u[:, 1:], u[:, -1:]], axis=1)
    even_w = 0.25 * left + 0.75 * u                  # output col 2j
    odd_w = 0.75 * u + 0.25 * right                  # output col 2j+1
    uw = jnp.concatenate([even_w, odd_w], axis=-1)   # (h, w, 2C) lane-fused interleave

    # height pass (edge clamp): shifts are free leading-axis concats
    up = jnp.concatenate([uw[:1], uw[:-1]], axis=0)
    dn = jnp.concatenate([uw[1:], uw[-1:]], axis=0)
    even_h = 0.25 * up + 0.75 * uw                   # output row 2i
    odd_h = 0.75 * uw + 0.25 * dn                    # output row 2i+1

    h, w, c2 = uw.shape
    full = jnp.stack([even_h, odd_h], axis=1).reshape(2 * h, w, c2)  # free merge
    out = full + r_ref[0].astype(jnp.float32)        # fused residual add
    o_ref[...] = out[None, ...].astype(o_ref.dtype)  # single lane-dense store


@functools.lru_cache(maxsize=None)
def _make_upsample_add(N, h, w, Cp):
    H2, C2 = 2 * h, 2 * Cp
    blk = h * w * Cp * 2 + 2 * (H2 * w * C2 * 2)
    work = 8 * (H2 * w * C2 * 4)
    return pl.pallas_call(
        _upsample2x_add_kernel,
        out_shape=jax.ShapeDtypeStruct((N, H2, w, C2), ACT_DTYPE),
        grid_spec=pltpu.PrefetchScalarGridSpec(
            num_scalar_prefetch=0,
            grid=(N,),
            in_specs=[
                pl.BlockSpec((1, h, w, Cp), lambda n: (n, 0, 0, 0)),
                pl.BlockSpec((1, H2, w, C2), lambda n: (n, 0, 0, 0)),
            ],
            out_specs=pl.BlockSpec((1, H2, w, C2), lambda n: (n, 0, 0, 0)),
        ),
        compiler_params=pltpu.CompilerParams(
            dimension_semantics=("parallel",),
            vmem_limit_bytes=_vmem_limit(blk, work)),
    )


def upsample2x_add(u, x):
    """Bilinear(align_corners=False) 2x upsample of u plus x (both NHWC-padded bf16)."""
    N, h, w, Cp = u.shape
    assert x.shape == (N, 2 * h, 2 * w, Cp)
    x_fused = x.reshape(N, 2 * h, w, 2 * Cp)           # free, row-major identical
    out = _make_upsample_add(N, h, w, Cp)(u, x_fused)
    return out.reshape(N, 2 * h, 2 * w, Cp)            # free


# ----------------------------------------------------------------------------
# Parameters (PyTorch-Conv2d-style init).  Weights packed once at init:
# (Cout, Cin, 3, 3) f32 -> (9, Cin_p, Cout_p) bf16; bias padded, kept f32.
# ----------------------------------------------------------------------------
def _conv_params(key, cin, cout):
    kw_, kb = jax.random.split(key)
    bound = (cin * 9) ** -0.5
    w = jax.random.uniform(kw_, (cout, cin, 3, 3), jnp.float32, -bound, bound)
    b = jax.random.uniform(kb, (cout,), jnp.float32, -bound, bound)
    cinp, coutp = _rup(cin, LANE), _rup(cout, LANE)
    w9 = jnp.transpose(w, (2, 3, 1, 0)).reshape(9, cin, cout)
    w9 = jnp.pad(w9, ((0, 0), (0, cinp - cin), (0, coutp - cout))).astype(jnp.bfloat16)
    bp = jnp.pad(b, (0, coutp - cout)).reshape(1, coutp).astype(jnp.float32)
    return {"w": w9, "b": bp, "w_raw": w, "b_raw": b}


def init_params(key, skip_c, up_c, out_c):
    ks = jax.random.split(key, 6)
    params = {
        "skip_conv1": _conv_params(ks[0], skip_c, up_c),
        "skip_conv2": {                       # ResBlock(up_c, up_c): no downsample
            "conv1": _conv_params(ks[1], up_c, up_c),
            "conv2": _conv_params(ks[2], up_c, up_c),
        },
        "out_conv": {                         # ResBlock(up_c, out_c)
            "conv1": _conv_params(ks[3], up_c, out_c),
            "conv2": _conv_params(ks[4], out_c, out_c),
        },
    }
    if up_c != out_c:
        params["out_conv"]["downsample"] = _conv_params(ks[5], up_c, out_c)
    return params


# ----------------------------------------------------------------------------
# Forward pass (matches UpsampleBlock.forward) — one jax.jit over everything.
# ----------------------------------------------------------------------------
def _to_nhwc_padded(x):
    N, C, H, W = x.shape
    Cp = _rup(C, LANE)
    x = jnp.transpose(x, (0, 2, 3, 1))
    x = jnp.pad(x, ((0, 0), (0, 0), (0, 0), (0, Cp - C)))
    return x.astype(ACT_DTYPE)


@functools.partial(jax.jit, static_argnames=("out_c",))
def upsample_block_forward(params, skip_f, up_f, *, out_c):
    x = _to_nhwc_padded(skip_f)                                     # (N, H, W, Csp)
    u = _to_nhwc_padded(up_f)                                       # (N, H/2, W/2, Cup)

    # x = skip_conv1(skip_f)
    p = params["skip_conv1"]
    y1 = conv3x3(x, p["w"], p["b"])

    # x = skip_conv2(x)   -- ResBlock(up_c, up_c): r = c2(relu(c1(relu(x)))); x + r
    p = params["skip_conv2"]
    r = conv3x3(y1, p["conv1"]["w"], p["conv1"]["b"], relu_in=True)
    y2 = conv3x3(r, p["conv2"]["w"], p["conv2"]["b"], relu_in=True, residual=y1)

    # x = x + bilinear_2x(up_f)   (fused add inside the upsample kernel)
    x = upsample2x_add(u, y2)

    # x = out_conv(x)     -- ResBlock(up_c, out_c) with conv downsample on identity
    p = params["out_conv"]
    r = conv3x3(x, p["conv1"]["w"], p["conv1"]["b"], relu_in=True)
    if "downsample" in p:
        identity = conv3x3(x, p["downsample"]["w"], p["downsample"]["b"])
    else:
        identity = x
    out = conv3x3(r, p["conv2"]["w"], p["conv2"]["b"], relu_in=True, residual=identity)

    # back to NCHW f32 at the module boundary only
    out = out[..., :out_c]
    return jnp.transpose(out, (0, 3, 1, 2)).astype(jnp.float32)


# ----------------------------------------------------------------------------
# Pure-JAX reference (f32) for the correctness check
# ----------------------------------------------------------------------------
def _ref_conv(x, p):
    y = lax.conv_general_dilated(
        x, p["w_raw"], window_strides=(1, 1), padding=((1, 1), (1, 1)),
        dimension_numbers=("NCHW", "OIHW", "NCHW"))
    return y + p["b_raw"][None, :, None, None]


def _ref_resblock(x, p):
    r = _ref_conv(jax.nn.relu(x), p["conv1"])
    r = _ref_conv(jax.nn.relu(r), p["conv2"])
    if "downsample" in p:
        x = _ref_conv(x, p["downsample"])
    return x + r


def _ref_up1d(v, axis):
    n = v.shape[axis]
    idx = jnp.arange(n)
    lo = jnp.take(v, jnp.clip(idx - 1, 0, n - 1), axis=axis)
    hi = jnp.take(v, jnp.clip(idx + 1, 0, n - 1), axis=axis)
    even = 0.25 * lo + 0.75 * v
    odd = 0.75 * v + 0.25 * hi
    out = jnp.stack([even, odd], axis=axis + 1)
    shp = list(v.shape)
    shp[axis] = 2 * n
    return out.reshape(shp)


def reference_forward(params, skip_f, up_f):
    x = _ref_resblock(_ref_conv(skip_f, params["skip_conv1"]), params["skip_conv2"])
    x = x + _ref_up1d(_ref_up1d(up_f, 2), 3)   # bilinear 2x, align_corners=False
    return _ref_resblock(x, params["out_conv"])


# ----------------------------------------------------------------------------
if __name__ == "__main__":
    key = jax.random.PRNGKey(0)
    kp, ks, ku = jax.random.split(key, 3)

    N, skip_c, up_c, out_c = 2, 64, 32, 16
    H = W = 16

    params = init_params(kp, skip_c, up_c, out_c)
    skip_f = jax.random.normal(ks, (N, skip_c, H, W), jnp.float32)        # high-res skip
    up_f = jax.random.normal(ku, (N, up_c, H // 2, W // 2), jnp.float32)  # low-res input

    out = upsample_block_forward(params, skip_f, up_f, out_c=out_c)
    out = jax.block_until_ready(out)

    assert out.shape == (N, out_c, H, W), out.shape
    assert bool(jnp.isfinite(out).all())

    ref = reference_forward(params, skip_f, up_f)
    err = float(jnp.max(jnp.abs(out - ref)))
    assert err < 0.1, f"max abs err vs reference: {err}"

    print("KERNEL_OK")
</pallas_src>

<mosaic_0001>
module attributes {stable_mosaic.version = 11 : i64} {
  func.func @kern(%arg0: i32, %arg1: i32, %arg2: memref<1x16x16x128xbf16, #tpu.memory_space<vmem>>, %arg3: memref<9x128x128xbf16, #tpu.memory_space<vmem>>, %arg4: memref<1x128xf32, #tpu.memory_space<vmem>>, %arg5: memref<1x16x16x128xbf16, #tpu.memory_space<vmem>>) attributes {dimension_semantics = [#tpu.dimension_semantics<parallel>, #tpu.dimension_semantics<parallel>], iteration_bounds = array<i64: 2, 1>, scalar_prefetch = 0 : i64, scratch_operands = 0 : i64, tpu.core_type = #tpu.core_type<tc>, window_params = [{transform_indices = @transform_0, window_bounds = array<i64: 1, 16, 16, 128>}, {transform_indices = @transform_1, window_bounds = array<i64: 9, 128, 128>}, {transform_indices = @transform_2, window_bounds = array<i64: 1, 128>}, {transform_indices = @transform_3, window_bounds = array<i64: 1, 16, 16, 128>}]} {
    %c0 = arith.constant 0 : index
    %c0_0 = arith.constant 0 : index
    %c0_1 = arith.constant 0 : index
    %c0_2 = arith.constant 0 : index
    %0 = vector.load %arg2[%c0, %c0_0, %c0_1, %c0_2] : memref<1x16x16x128xbf16, #tpu.memory_space<vmem>>, vector<1x16x16x128xbf16>
    %1 = vector.shape_cast %0 : vector<1x16x16x128xbf16> to vector<16x16x128xbf16>
    %cst = arith.constant 0.000000e+00 : bf16
    %2 = vector.broadcast %cst : bf16 to vector<16x1x128xbf16>
    %3 = vector.extract_strided_slice %1 {offsets = [0, 0, 0], sizes = [16, 15, 128], strides = [1, 1, 1]} : vector<16x16x128xbf16> to vector<16x15x128xbf16>
    %4 = tpu.concatenate %2, %3 in 1 : vector<16x1x128xbf16>, vector<16x15x128xbf16> -> vector<16x16x128xbf16>
    %5 = vector.extract_strided_slice %1 {offsets = [0, 1, 0], sizes = [16, 15, 128], strides = [1, 1, 1]} : vector<16x16x128xbf16> to vector<16x15x128xbf16>
    %6 = tpu.concatenate %5, %2 in 1 : vector<16x15x128xbf16>, vector<16x1x128xbf16> -> vector<16x16x128xbf16>
    %cst_3 = arith.constant 0.000000e+00 : bf16
    %7 = vector.broadcast %cst_3 : bf16 to vector<1x16x128xbf16>
    %8 = vector.extract_strided_slice %4 {offsets = [0, 0, 0], sizes = [15, 16, 128], strides = [1, 1, 1]} : vector<16x16x128xbf16> to vector<15x16x128xbf16>
    %9 = tpu.concatenate %7, %8 in 0 : vector<1x16x128xbf16>, vector<15x16x128xbf16> -> vector<16x16x128xbf16>
    %10 = vector.shape_cast %9 : vector<16x16x128xbf16> to vector<256x128xbf16>
    %c0_4 = arith.constant 0 : index
    %c0_5 = arith.constant 0 : index
    %c0_6 = arith.constant 0 : index
    %11 = vector.load %arg3[%c0_4, %c0_5, %c0_6] : memref<9x128x128xbf16, #tpu.memory_space<vmem>>, vector<1x128x128xbf16>
    %12 = vector.shape_cast %11 : vector<1x128x128xbf16> to vector<128x128xbf16>
    %cst_7 = arith.constant dense<0.000000e+00> : vector<256x128xf32>
    %13 = tpu.matmul %10, %12, %cst_7 {dimension_numbers = #tpu.dot_dimension_numbers<[1], [0], [0], [1], [0, 0, 1, 1], [], []>} : vector<256x128xbf16>, vector<128x128xbf16>, vector<256x128xf32> -> vector<256x128xf32>
    %14 = vector.extract_strided_slice %1 {offsets = [0, 0, 0], sizes = [15, 16, 128], strides = [1, 1, 1]} : vector<16x16x128xbf16> to vector<15x16x128xbf16>
    %15 = tpu.concatenate %7, %14 in 0 : vector<1x16x128xbf16>, vector<15x16x128xbf16> -> vector<16x16x128xbf16>
    %16 = vector.shape_cast %15 : vector<16x16x128xbf16> to vector<256x128xbf16>
    %c1 = arith.constant 1 : index
    %c0_8 = arith.constant 0 : index
    %c0_9 = arith.constant 0 : index
    %17 = vector.load %arg3[%c1, %c0_8, %c0_9] : memref<9x128x128xbf16, #tpu.memory_space<vmem>>, vector<1x128x128xbf16>
    %18 = vector.shape_cast %17 : vector<1x128x128xbf16> to vector<128x128xbf16>
    %cst_10 = arith.constant dense<0.000000e+00> : vector<256x128xf32>
    %19 = tpu.matmul %16, %18, %cst_10 {dimension_numbers = #tpu.dot_dimension_numbers<[1], [0], [0], [1], [0, 0, 1, 1], [], []>} : vector<256x128xbf16>, vector<128x128xbf16>, vector<256x128xf32> -> vector<256x128xf32>
    %20 = arith.addf %13, %19 : vector<256x128xf32>
    %21 = vector.extract_strided_slice %6 {offsets = [0, 0, 0], sizes = [15, 16, 128], strides = [1, 1, 1]} : vector<16x16x128xbf16> to vector<15x16x128xbf16>
    %22 = tpu.concatenate %7, %21 in 0 : vector<1x16x128xbf16>, vector<15x16x128xbf16> -> vector<16x16x128xbf16>
    %23 = vector.shape_cast %22 : vector<16x16x128xbf16> to vector<256x128xbf16>
    %c2 = arith.constant 2 : index
    %c0_11 = arith.constant 0 : index
    %c0_12 = arith.constant 0 : index
    %24 = vector.load %arg3[%c2, %c0_11, %c0_12] : memref<9x128x128xbf16, #tpu.memory_space<vmem>>, vector<1x128x128xbf16>
    %25 = vector.shape_cast %24 : vector<1x128x128xbf16> to vector<128x128xbf16>
    %cst_13 = arith.constant dense<0.000000e+00> : vector<256x128xf32>
    %26 = tpu.matmul %23, %25, %cst_13 {dimension_numbers = #tpu.dot_dimension_numbers<[1], [0], [0], [1], [0, 0, 1, 1], [], []>} : vector<256x128xbf16>, vector<128x128xbf16>, vector<256x128xf32> -> vector<256x128xf32>
    %27 = arith.addf %20, %26 : vector<256x128xf32>
    %28 = vector.shape_cast %4 : vector<16x16x128xbf16> to vector<256x128xbf16>
    %c3 = arith.constant 3 : index
    %c0_14 = arith.constant 0 : index
    %c0_15 = arith.constant 0 : index
    %29 = vector.load %arg3[%c3, %c0_14, %c0_15] : memref<9x128x128xbf16, #tpu.memory_space<vmem>>, vector<1x128x128xbf16>
    %30 = vector.shape_cast %29 : vector<1x128x128xbf16> to vector<128x128xbf16>
    %cst_16 = arith.constant dense<0.000000e+00> : vector<256x128xf32>
    %31 = tpu.matmul %28, %30, %cst_16 {dimension_numbers = #tpu.dot_dimension_numbers<[1], [0], [0], [1], [0, 0, 1, 1], [], []>} : vector<256x128xbf16>, vector<128x128xbf16>, vector<256x128xf32> -> vector<256x128xf32>
    %32 = arith.addf %27, %31 : vector<256x128xf32>
    %33 = vector.shape_cast %1 : vector<16x16x128xbf16> to vector<256x128xbf16>
    %c4 = arith.constant 4 : index
    %c0_17 = arith.constant 0 : index
    %c0_18 = arith.constant 0 : index
    %34 = vector.load %arg3[%c4, %c0_17, %c0_18] : memref<9x128x128xbf16, #tpu.memory_space<vmem>>, vector<1x128x128xbf16>
    %35 = vector.shape_cast %34 : vector<1x128x128xbf16> to vector<128x128xbf16>
    %cst_19 = arith.constant dense<0.000000e+00> : vector<256x128xf32>
    %36 = tpu.matmul %33, %35, %cst_19 {dimension_numbers = #tpu.dot_dimension_numbers<[1], [0], [0], [1], [0, 0, 1, 1], [], []>} : vector<256x128xbf16>, vector<128x128xbf16>, vector<256x128xf32> -> vector<256x128xf32>
    %37 = arith.addf %32, %36 : vector<256x128xf32>
    %38 = vector.shape_cast %6 : vector<16x16x128xbf16> to vector<256x128xbf16>
    %c5 = arith.constant 5 : index
    %c0_20 = arith.constant 0 : index
    %c0_21 = arith.constant 0 : index
    %39 = vector.load %arg3[%c5, %c0_20, %c0_21] : memref<9x128x128xbf16, #tpu.memory_space<vmem>>, vector<1x128x128xbf16>
    %40 = vector.shape_cast %39 : vector<1x128x128xbf16> to vector<128x128xbf16>
    %cst_22 = arith.constant dense<0.000000e+00> : vector<256x128xf32>
    %41 = tpu.matmul %38, %40, %cst_22 {dimension_numbers = #tpu.dot_dimension_numbers<[1], [0], [0], [1], [0, 0, 1, 1], [], []>} : vector<256x128xbf16>, vector<128x128xbf16>, vector<256x128xf32> -> vector<256x128xf32>
    %42 = arith.addf %37, %41 : vector<256x128xf32>
    %43 = vector.extract_strided_slice %4 {offsets = [1, 0, 0], sizes = [15, 16, 128], strides = [1, 1, 1]} : vector<16x16x128xbf16> to vector<15x16x128xbf16>
    %44 = tpu.concatenate %43, %7 in 0 : vector<15x16x128xbf16>, vector<1x16x128xbf16> -> vector<16x16x128xbf16>
    %45 = vector.shape_cast %44 : vector<16x16x128xbf16> to vector<256x128xbf16>
    %c6 = arith.constant 6 : index
    %c0_23 = arith.constant 0 : index
    %c0_24 = arith.constant 0 : index
    %46 = vector.load %arg3[%c6, %c0_23, %c0_24] : memref<9x128x128xbf16, #tpu.memory_space<vmem>>, vector<1x128x128xbf16>
    %47 = vector.shape_cast %46 : vector<1x128x128xbf16> to vector<128x128xbf16>
    %cst_25 = arith.constant dense<0.000000e+00> : vector<256x128xf32>
    %48 = tpu.matmul %45, %47, %cst_25 {dimension_numbers = #tpu.dot_dimension_numbers<[1], [0], [0], [1], [0, 0, 1, 1], [], []>} : vector<256x128xbf16>, vector<128x128xbf16>, vector<256x128xf32> -> vector<256x128xf32>
    %49 = arith.addf %42, %48 : vector<256x128xf32>
    %50 = vector.extract_strided_slice %1 {offsets = [1, 0, 0], sizes = [15, 16, 128], strides = [1, 1, 1]} : vector<16x16x128xbf16> to vector<15x16x128xbf16>
    %51 = tpu.concatenate %50, %7 in 0 : vector<15x16x128xbf16>, vector<1x16x128xbf16> -> vector<16x16x128xbf16>
    %52 = vector.shape_cast %51 : vector<16x16x128xbf16> to vector<256x128xbf16>
    %c7 = arith.constant 7 : index
    %c0_26 = arith.constant 0 : index
    %c0_27 = arith.constant 0 : index
    %53 = vector.load %arg3[%c7, %c0_26, %c0_27] : memref<9x128x128xbf16, #tpu.memory_space<vmem>>, vector<1x128x128xbf16>
    %54 = vector.shape_cast %53 : vector<1x128x128xbf16> to vector<128x128xbf16>
    %cst_28 = arith.constant dense<0.000000e+00> : vector<256x128xf32>
    %55 = tpu.matmul %52, %54, %cst_28 {dimension_numbers = #tpu.dot_dimension_numbers<[1], [0], [0], [1], [0, 0, 1, 1], [], []>} : vector<256x128xbf16>, vector<128x128xbf16>, vector<256x128xf32> -> vector<256x128xf32>
    %56 = arith.addf %49, %55 : vector<256x128xf32>
    %57 = vector.extract_strided_slice %6 {offsets = [1, 0, 0], sizes = [15, 16, 128], strides = [1, 1, 1]} : vector<16x16x128xbf16> to vector<15x16x128xbf16>
    %58 = tpu.concatenate %57, %7 in 0 : vector<15x16x128xbf16>, vector<1x16x128xbf16> -> vector<16x16x128xbf16>
    %59 = vector.shape_cast %58 : vector<16x16x128xbf16> to vector<256x128xbf16>
    %c8 = arith.constant 8 : index
    %c0_29 = arith.constant 0 : index
    %c0_30 = arith.constant 0 : index
    %60 = vector.load %arg3[%c8, %c0_29, %c0_30] : memref<9x128x128xbf16, #tpu.memory_space<vmem>>, vector<1x128x128xbf16>
    %61 = vector.shape_cast %60 : vector<1x128x128xbf16> to vector<128x128xbf16>
    %cst_31 = arith.constant dense<0.000000e+00> : vector<256x128xf32>
    %62 = tpu.matmul %59, %61, %cst_31 {dimension_numbers = #tpu.dot_dimension_numbers<[1], [0], [0], [1], [0, 0, 1, 1], [], []>} : vector<256x128xbf16>, vector<128x128xbf16>, vector<256x128xf32> -> vector<256x128xf32>
    %63 = arith.addf %56, %62 : vector<256x128xf32>
    %c0_32 = arith.constant 0 : index
    %c0_33 = arith.constant 0 : index
    %64 = vector.load %arg4[%c0_32, %c0_33] : memref<1x128xf32, #tpu.memory_space<vmem>>, vector<1x128xf32>
    %65 = vector.broadcast %64 : vector<1x128xf32> to vector<256x128xf32>
    %66 = arith.addf %63, %65 : vector<256x128xf32>
    %67 = vector.shape_cast %66 : vector<256x128xf32> to vector<1x16x16x128xf32>
    %68 = arith.truncf %67 : vector<1x16x16x128xf32> to vector<1x16x16x128xbf16>
    %c0_34 = arith.constant 0 : index
    %c0_35 = arith.constant 0 : index
    %c0_36 = arith.constant 0 : index
    %c0_37 = arith.constant 0 : index
    %69 = vector.load %arg5[%c0_34, %c0_35, %c0_36, %c0_37] : memref<1x16x16x128xbf16, #tpu.memory_space<vmem>>, vector<1x16x16x128xbf16>
    tpu.vector_store %arg5[%c0_34, %c0_35, %c0_36, %c0_37], %68 {strides = array<i32>} : memref<1x16x16x128xbf16, #tpu.memory_space<vmem>>, vector<1x16x16x128xbf16>,
    return
  }
  func.func @transform_0(%arg0: i32, %arg1: i32) -> (i32, i32, i32, i32) {
    %c0_i32 = arith.constant 0 : i32
    %c0_i32_0 = arith.constant 0 : i32
    %c0_i32_1 = arith.constant 0 : i32
    %c0_i32_2 = arith.constant 0 : i32
    return %arg0, %c0_i32, %c0_i32_0, %c0_i32_1 : i32, i32, i32, i32
  }
  func.func @transform_1(%arg0: i32, %arg1: i32) -> (i32, i32, i32) {
    %c0_i32 = arith.constant 0 : i32
    %c0_i32_0 = arith.constant 0 : i32
    %c0_i32_1 = arith.constant 0 : i32
    return %c0_i32, %c0_i32_0, %arg1 : i32, i32, i32
  }
  func.func @transform_2(%arg0: i32, %arg1: i32) -> (i32, i32) {
    %c0_i32 = arith.constant 0 : i32
    %c0_i32_0 = arith.constant 0 : i32
    return %c0_i32, %arg1 : i32, i32
  }
  func.func @transform_3(%arg0: i32, %arg1: i32) -> (i32, i32, i32, i32) {
    %c0_i32 = arith.constant 0 : i32
    %c0_i32_0 = arith.constant 0 : i32
    %c0_i32_1 = arith.constant 0 : i32
    return %arg0, %c0_i32, %c0_i32_0, %arg1 : i32, i32, i32, i32
  }
}

module attributes {stable_mosaic.version = 11 : i64} {
  func.func @kern(%arg0: i32, %arg1: i32, %arg2: memref<1x16x16x128xbf16, #tpu.memory_space<vmem>>, %arg3: memref<9x128x128xbf16, #tpu.memory_space<vmem>>, %arg4: memref<1x128xf32, #tpu.memory_space<vmem>>, %arg5: memref<1x16x16x128xbf16, #tpu.memory_space<vmem>>, %arg6: memref<1x16x16x128xbf16, #tpu.memory_space<vmem>>) attributes {dimension_semantics = [#tpu.dimension_semantics<parallel>, #tpu.dimension_semantics<parallel>], iteration_bounds = array<i64: 2, 1>, scalar_prefetch = 0 : i64, scratch_operands = 0 : i64, tpu.core_type = #tpu.core_type<tc>, window_params = [{transform_indices = @transform_0, window_bounds = array<i64: 1, 16, 16, 128>}, {transform_indices = @transform_1, window_bounds = array<i64: 9, 128, 128>}, {transform_indices = @transform_2, window_bounds = array<i64: 1, 128>}, {transform_indices = @transform_3, window_bounds = array<i64: 1, 16, 16, 128>}, {transform_indices = @transform_4, window_bounds = array<i64: 1, 16, 16, 128>}]} {
    %c0 = arith.constant 0 : index
    %c0_0 = arith.constant 0 : index
    %c0_1 = arith.constant 0 : index
    %c0_2 = arith.constant 0 : index
    %0 = vector.load %arg2[%c0, %c0_0, %c0_1, %c0_2] : memref<1x16x16x128xbf16, #tpu.memory_space<vmem>>, vector<1x16x16x128xbf16>
    %1 = vector.shape_cast %0 : vector<1x16x16x128xbf16> to vector<16x16x128xbf16>
    %cst = arith.constant 0.000000e+00 : bf16
    %2 = vector.broadcast %cst : bf16 to vector<16x16x128xbf16>
    %3 = arith.maximumf %1, %2 : vector<16x16x128xbf16>
    %cst_3 = arith.constant 0.000000e+00 : bf16
    %4 = vector.broadcast %cst_3 : bf16 to vector<16x1x128xbf16>
    %5 = vector.extract_strided_slice %3 {offsets = [0, 0, 0], sizes = [16, 15, 128], strides = [1, 1, 1]} : vector<16x16x128xbf16> to vector<16x15x128xbf16>
    %6 = tpu.concatenate %4, %5 in 1 : vector<16x1x128xbf16>, vector<16x15x128xbf16> -> vector<16x16x128xbf16>
    %7 = vector.extract_strided_slice %3 {offsets = [0, 1, 0], sizes = [16, 15, 128], strides = [1, 1, 1]} : vector<16x16x128xbf16> to vector<16x15x128xbf16>
    %8 = tpu.concatenate %7, %4 in 1 : vector<16x15x128xbf16>, vector<16x1x128xbf16> -> vector<16x16x128xbf16>
    %cst_4 = arith.constant 0.000000e+00 : bf16
    %9 = vector.broadcast %cst_4 : bf16 to vector<1x16x128xbf16>
    %10 = vector.extract_strided_slice %6 {offsets = [0, 0, 0], sizes = [15, 16, 128], strides = [1, 1, 1]} : vector<16x16x128xbf16> to vector<15x16x128xbf16>
    %11 = tpu.concatenate %9, %10 in 0 : vector<1x16x128xbf16>, vector<15x16x128xbf16> -> vector<16x16x128xbf16>
    %12 = vector.shape_cast %11 : vector<16x16x128xbf16> to vector<256x128xbf16>
    %c0_5 = arith.constant 0 : index
    %c0_6 = arith.constant 0 : index
    %c0_7 = arith.constant 0 : index
    %13 = vector.load %arg3[%c0_5, %c0_6, %c0_7] : memref<9x128x128xbf16, #tpu.memory_space<vmem>>, vector<1x128x128xbf16>
    %14 = vector.shape_cast %13 : vector<1x128x128xbf16> to vector<128x128xbf16>
    %cst_8 = arith.constant dense<0.000000e+00> : vector<256x128xf32>
    %15 = tpu.matmul %12, %14, %cst_8 {dimension_numbers = #tpu.dot_dimension_numbers<[1], [0], [0], [1], [0, 0, 1, 1], [], []>} : vector<256x128xbf16>, vector<128x128xbf16>, vector<256x128xf32> -> vector<256x128xf32>
    %16 = vector.extract_strided_slice %3 {offsets = [0, 0, 0], sizes = [15, 16, 128], strides = [1, 1, 1]} : vector<16x16x128xbf16> to vector<15x16x128xbf16>
    %17 = tpu.concatenate %9, %16 in 0 : vector<1x16x128xbf16>, vector<15x16x128xbf16> -> vector<16x16x128xbf16>
    %18 = vector.shape_cast %17 : vector<16x16x128xbf16> to vector<256x128xbf16>
    %c1 = arith.constant 1 : index
    %c0_9 = arith.constant 0 : index
    %c0_10 = arith.constant 0 : index
    %19 = vector.load %arg3[%c1, %c0_9, %c0_10] : memref<9x128x128xbf16, #tpu.memory_space<vmem>>, vector<1x128x128xbf16>
    %20 = vector.shape_cast %19 : vector<1x128x128xbf16> to vector<128x128xbf16>
    %cst_11 = arith.constant dense<0.000000e+00> : vector<256x128xf32>
    %21 = tpu.matmul %18, %20, %cst_11 {dimension_numbers = #tpu.dot_dimension_numbers<[1], [0], [0], [1], [0, 0, 1, 1], [], []>} : vector<256x128xbf16>, vector<128x128xbf16>, vector<256x128xf32> -> vector<256x128xf32>
    %22 = arith.addf %15, %21 : vector<256x128xf32>
    %23 = vector.extract_strided_slice %8 {offsets = [0, 0, 0], sizes = [15, 16, 128], strides = [1, 1, 1]} : vector<16x16x128xbf16> to vector<15x16x128xbf16>
    %24 = tpu.concatenate %9, %23 in 0 : vector<1x16x128xbf16>, vector<15x16x128xbf16> -> vector<16x16x128xbf16>
    %25 = vector.shape_cast %24 : vector<16x16x128xbf16> to vector<256x128xbf16>
    %c2 = arith.constant 2 : index
    %c0_12 = arith.constant 0 : index
    %c0_13 = arith.constant 0 : index
    %26 = vector.load %arg3[%c2, %c0_12, %c0_13] : memref<9x128x128xbf16, #tpu.memory_space<vmem>>, vector<1x128x128xbf16>
    %27 = vector.shape_cast %26 : vector<1x128x128xbf16> to vector<128x128xbf16>
    %cst_14 = arith.constant dense<0.000000e+00> : vector<256x128xf32>
    %28 = tpu.matmul %25, %27, %cst_14 {dimension_numbers = #tpu.dot_dimension_numbers<[1], [0], [0], [1], [0, 0, 1, 1], [], []>} : vector<256x128xbf16>, vector<128x128xbf16>, vector<256x128xf32> -> vector<256x128xf32>
    %29 = arith.addf %22, %28 : vector<256x128xf32>
    %30 = vector.shape_cast %6 : vector<16x16x128xbf16> to vector<256x128xbf16>
    %c3 = arith.constant 3 : index
    %c0_15 = arith.constant 0 : index
    %c0_16 = arith.constant 0 : index
    %31 = vector.load %arg3[%c3, %c0_15, %c0_16] : memref<9x128x128xbf16, #tpu.memory_space<vmem>>, vector<1x128x128xbf16>
    %32 = vector.shape_cast %31 : vector<1x128x128xbf16> to vector<128x128xbf16>
    %cst_17 = arith.constant dense<0.000000e+00> : vector<256x128xf32>
    %33 = tpu.matmul %30, %32, %cst_17 {dimension_numbers = #tpu.dot_dimension_numbers<[1], [0], [0], [1], [0, 0, 1, 1], [], []>} : vector<256x128xbf16>, vector<128x128xbf16>, vector<256x128xf32> -> vector<256x128xf32>
    %34 = arith.addf %29, %33 : vector<256x128xf32>
    %35 = vector.shape_cast %3 : vector<16x16x128xbf16> to vector<256x128xbf16>
    %c4 = arith.constant 4 : index
    %c0_18 = arith.constant 0 : index
    %c0_19 = arith.constant 0 : index
    %36 = vector.load %arg3[%c4, %c0_18, %c0_19] : memref<9x128x128xbf16, #tpu.memory_space<vmem>>, vector<1x128x128xbf16>
    %37 = vector.shape_cast %36 : vector<1x128x128xbf16> to vector<128x128xbf16>
    %cst_20 = arith.constant dense<0.000000e+00> : vector<256x128xf32>
    %38 = tpu.matmul %35, %37, %cst_20 {dimension_numbers = #tpu.dot_dimension_numbers<[1], [0], [0], [1], [0, 0, 1, 1], [], []>} : vector<256x128xbf16>, vector<128x128xbf16>, vector<256x128xf32> -> vector<256x128xf32>
    %39 = arith.addf %34, %38 : vector<256x128xf32>
    %40 = vector.shape_cast %8 : vector<16x16x128xbf16> to vector<256x128xbf16>
    %c5 = arith.constant 5 : index
    %c0_21 = arith.constant 0 : index
    %c0_22 = arith.constant 0 : index
    %41 = vector.load %arg3[%c5, %c0_21, %c0_22] : memref<9x128x128xbf16, #tpu.memory_space<vmem>>, vector<1x128x128xbf16>
    %42 = vector.shape_cast %41 : vector<1x128x128xbf16> to vector<128x128xbf16>
    %cst_23 = arith.constant dense<0.000000e+00> : vector<256x128xf32>
    %43 = tpu.matmul %40, %42, %cst_23 {dimension_numbers = #tpu.dot_dimension_numbers<[1], [0], [0], [1], [0, 0, 1, 1], [], []>} : vector<256x128xbf16>, vector<128x128xbf16>, vector<256x128xf32> -> vector<256x128xf32>
    %44 = arith.addf %39, %43 : vector<256x128xf32>
    %45 = vector.extract_strided_slice %6 {offsets = [1, 0, 0], sizes = [15, 16, 128], strides = [1, 1, 1]} : vector<16x16x128xbf16> to vector<15x16x128xbf16>
    %46 = tpu.concatenate %45, %9 in 0 : vector<15x16x128xbf16>, vector<1x16x128xbf16> -> vector<16x16x128xbf16>
    %47 = vector.shape_cast %46 : vector<16x16x128xbf16> to vector<256x128xbf16>
    %c6 = arith.constant 6 : index
    %c0_24 = arith.constant 0 : index
    %c0_25 = arith.constant 0 : index
    %48 = vector.load %arg3[%c6, %c0_24, %c0_25] : memref<9x128x128xbf16, #tpu.memory_space<vmem>>, vector<1x128x128xbf16>
    %49 = vector.shape_cast %48 : vector<1x128x128xbf16> to vector<128x128xbf16>
    %cst_26 = arith.constant dense<0.000000e+00> : vector<256x128xf32>
    %50 = tpu.matmul %47, %49, %cst_26 {dimension_numbers = #tpu.dot_dimension_numbers<[1], [0], [0], [1], [0, 0, 1, 1], [], []>} : vector<256x128xbf16>, vector<128x128xbf16>, vector<256x128xf32> -> vector<256x128xf32>
    %51 = arith.addf %44, %50 : vector<256x128xf32>
    %52 = vector.extract_strided_slice %3 {offsets = [1, 0, 0], sizes = [15, 16, 128], strides = [1, 1, 1]} : vector<16x16x128xbf16> to vector<15x16x128xbf16>
    %53 = tpu.concatenate %52, %9 in 0 : vector<15x16x128xbf16>, vector<1x16x128xbf16> -> vector<16x16x128xbf16>
    %54 = vector.shape_cast %53 : vector<16x16x128xbf16> to vector<256x128xbf16>
    %c7 = arith.constant 7 : index
    %c0_27 = arith.constant 0 : index
    %c0_28 = arith.constant 0 : index
    %55 = vector.load %arg3[%c7, %c0_27, %c0_28] : memref<9x128x128xbf16, #tpu.memory_space<vmem>>, vector<1x128x128xbf16>
    %56 = vector.shape_cast %55 : vector<1x128x128xbf16> to vector<128x128xbf16>
    %cst_29 = arith.constant dense<0.000000e+00> : vector<256x128xf32>
    %57 = tpu.matmul %54, %56, %cst_29 {dimension_numbers = #tpu.dot_dimension_numbers<[1], [0], [0], [1], [0, 0, 1, 1], [], []>} : vector<256x128xbf16>, vector<128x128xbf16>, vector<256x128xf32> -> vector<256x128xf32>
    %58 = arith.addf %51, %57 : vector<256x128xf32>
    %59 = vector.extract_strided_slice %8 {offsets = [1, 0, 0], sizes = [15, 16, 128], strides = [1, 1, 1]} : vector<16x16x128xbf16> to vector<15x16x128xbf16>
    %60 = tpu.concatenate %59, %9 in 0 : vector<15x16x128xbf16>, vector<1x16x128xbf16> -> vector<16x16x128xbf16>
    %61 = vector.shape_cast %60 : vector<16x16x128xbf16> to vector<256x128xbf16>
    %c8 = arith.constant 8 : index
    %c0_30 = arith.constant 0 : index
    %c0_31 = arith.constant 0 : index
    %62 = vector.load %arg3[%c8, %c0_30, %c0_31] : memref<9x128x128xbf16, #tpu.memory_space<vmem>>, vector<1x128x128xbf16>
    %63 = vector.shape_cast %62 : vector<1x128x128xbf16> to vector<128x128xbf16>
    %cst_32 = arith.constant dense<0.000000e+00> : vector<256x128xf32>
    %64 = tpu.matmul %61, %63, %cst_32 {dimension_numbers = #tpu.dot_dimension_numbers<[1], [0], [0], [1], [0, 0, 1, 1], [], []>} : vector<256x128xbf16>, vector<128x128xbf16>, vector<256x128xf32> -> vector<256x128xf32>
    %65 = arith.addf %58, %64 : vector<256x128xf32>
    %c0_33 = arith.constant 0 : index
    %c0_34 = arith.constant 0 : index
    %66 = vector.load %arg4[%c0_33, %c0_34] : memref<1x128xf32, #tpu.memory_space<vmem>>, vector<1x128xf32>
    %67 = vector.broadcast %66 : vector<1x128xf32> to vector<256x128xf32>
    %68 = arith.addf %65, %67 : vector<256x128xf32>
    %c0_35 = arith.constant 0 : index
    %c0_36 = arith.constant 0 : index
    %c0_37 = arith.constant 0 : index
    %c0_38 = arith.constant 0 : index
    %69 = vector.load %arg5[%c0_35, %c0_36, %c0_37, %c0_38] : memref<1x16x16x128xbf16, #tpu.memory_space<vmem>>, vector<1x16x16x128xbf16>
    %70 = vector.shape_cast %69 : vector<1x16x16x128xbf16> to vector<16x16x128xbf16>
    %71 = vector.shape_cast %70 : vector<16x16x128xbf16> to vector<256x128xbf16>
    %72 = arith.extf %71 : vector<256x128xbf16> to vector<256x128xf32>
    %73 = arith.addf %68, %72 : vector<256x128xf32>
    %74 = vector.shape_cast %73 : vector<256x128xf32> to vector<1x16x16x128xf32>
    %75 = arith.truncf %74 : vector<1x16x16x128xf32> to vector<1x16x16x128xbf16>
    %c0_39 = arith.constant 0 : index
    %c0_40 = arith.constant 0 : index
    %c0_41 = arith.constant 0 : index
    %c0_42 = arith.constant 0 : index
    %76 = vector.load %arg6[%c0_39, %c0_40, %c0_41, %c0_42] : memref<1x16x16x128xbf16, #tpu.memory_space<vmem>>, vector<1x16x16x128xbf16>
    tpu.vector_store %arg6[%c0_39, %c0_40, %c0_41, %c0_42], %75 {strides = array<i32>} : memref<1x16x16x128xbf16, #tpu.memory_space<vmem>>, vector<1x16x16x128xbf16>,
    return
  }
  func.func @transform_0(%arg0: i32, %arg1: i32) -> (i32, i32, i32, i32) {
    %c0_i32 = arith.constant 0 : i32
    %c0_i32_0 = arith.constant 0 : i32
    %c0_i32_1 = arith.constant 0 : i32
    %c0_i32_2 = arith.constant 0 : i32
    return %arg0, %c0_i32, %c0_i32_0, %c0_i32_1 : i32, i32, i32, i32
  }
  func.func @transform_1(%arg0: i32, %arg1: i32) -> (i32, i32, i32) {
    %c0_i32 = arith.constant 0 : i32
    %c0_i32_0 = arith.constant 0 : i32
    %c0_i32_1 = arith.constant 0 : i32
    return %c0_i32, %c0_i32_0, %arg1 : i32, i32, i32
  }
  func.func @transform_2(%arg0: i32, %arg1: i32) -> (i32, i32) {
    %c0_i32 = arith.constant 0 : i32
    %c0_i32_0 = arith.constant 0 : i32
    return %c0_i32, %arg1 : i32, i32
  }
  func.func @transform_3(%arg0: i32, %arg1: i32) -> (i32, i32, i32, i32) {
    %c0_i32 = arith.constant 0 : i32
    %c0_i32_0 = arith.constant 0 : i32
    %c0_i32_1 = arith.constant 0 : i32
    return %arg0, %c0_i32, %c0_i32_0, %arg1 : i32, i32, i32, i32
  }
  func.func @transform_4(%arg0: i32, %arg1: i32) -> (i32, i32, i32, i32) {
    %c0_i32 = arith.constant 0 : i32
    %c0_i32_0 = arith.constant 0 : i32
    %c0_i32_1 = arith.constant 0 : i32
    return %arg0, %c0_i32, %c0_i32_0, %arg1 : i32, i32, i32, i32
  }
}

module attributes {stable_mosaic.version = 11 : i64} {
  func.func @kern(%arg0: i32, %arg1: i32, %arg2: memref<1x16x16x128xbf16, #tpu.memory_space<vmem>>, %arg3: memref<9x128x128xbf16, #tpu.memory_space<vmem>>, %arg4: memref<1x128xf32, #tpu.memory_space<vmem>>, %arg5: memref<1x16x16x128xbf16, #tpu.memory_space<vmem>>) attributes {dimension_semantics = [#tpu.dimension_semantics<parallel>, #tpu.dimension_semantics<parallel>], iteration_bounds = array<i64: 2, 1>, scalar_prefetch = 0 : i64, scratch_operands = 0 : i64, tpu.core_type = #tpu.core_type<tc>, window_params = [{transform_indices = @transform_0, window_bounds = array<i64: 1, 16, 16, 128>}, {transform_indices = @transform_1, window_bounds = array<i64: 9, 128, 128>}, {transform_indices = @transform_2, window_bounds = array<i64: 1, 128>}, {transform_indices = @transform_3, window_bounds = array<i64: 1, 16, 16, 128>}]} {
    %c0 = arith.constant 0 : index
    %c0_0 = arith.constant 0 : index
    %c0_1 = arith.constant 0 : index
    %c0_2 = arith.constant 0 : index
    %0 = vector.load %arg2[%c0, %c0_0, %c0_1, %c0_2] : memref<1x16x16x128xbf16, #tpu.memory_space<vmem>>, vector<1x16x16x128xbf16>
    %1 = vector.shape_cast %0 : vector<1x16x16x128xbf16> to vector<16x16x128xbf16>
    %cst = arith.constant 0.000000e+00 : bf16
    %2 = vector.broadcast %cst : bf16 to vector<16x16x128xbf16>
    %3 = arith.maximumf %1, %2 : vector<16x16x128xbf16>
    %cst_3 = arith.constant 0.000000e+00 : bf16
    %4 = vector.broadcast %cst_3 : bf16 to vector<16x1x128xbf16>
    %5 = vector.extract_strided_slice %3 {offsets = [0, 0, 0], sizes = [16, 15, 128], strides = [1, 1, 1]} : vector<16x16x128xbf16> to vector<16x15x128xbf16>
    %6 = tpu.concatenate %4, %5 in 1 : vector<16x1x128xbf16>, vector<16x15x128xbf16> -> vector<16x16x128xbf16>
    %7 = vector.extract_strided_slice %3 {offsets = [0, 1, 0], sizes = [16, 15, 128], strides = [1, 1, 1]} : vector<16x16x128xbf16> to vector<16x15x128xbf16>
    %8 = tpu.concatenate %7, %4 in 1 : vector<16x15x128xbf16>, vector<16x1x128xbf16> -> vector<16x16x128xbf16>
    %cst_4 = arith.constant 0.000000e+00 : bf16
    %9 = vector.broadcast %cst_4 : bf16 to vector<1x16x128xbf16>
    %10 = vector.extract_strided_slice %6 {offsets = [0, 0, 0], sizes = [15, 16, 128], strides = [1, 1, 1]} : vector<16x16x128xbf16> to vector<15x16x128xbf16>
    %11 = tpu.concatenate %9, %10 in 0 : vector<1x16x128xbf16>, vector<15x16x128xbf16> -> vector<16x16x128xbf16>
    %12 = vector.shape_cast %11 : vector<16x16x128xbf16> to vector<256x128xbf16>
    %c0_5 = arith.constant 0 : index
    %c0_6 = arith.constant 0 : index
    %c0_7 = arith.constant 0 : index
    %13 = vector.load %arg3[%c0_5, %c0_6, %c0_7] : memref<9x128x128xbf16, #tpu.memory_space<vmem>>, vector<1x128x128xbf16>
    %14 = vector.shape_cast %13 : vector<1x128x128xbf16> to vector<128x128xbf16>
    %cst_8 = arith.constant dense<0.000000e+00> : vector<256x128xf32>
    %15 = tpu.matmul %12, %14, %cst_8 {dimension_numbers = #tpu.dot_dimension_numbers<[1], [0], [0], [1], [0, 0, 1, 1], [], []>} : vector<256x128xbf16>, vector<128x128xbf16>, vector<256x128xf32> -> vector<256x128xf32>
    %16 = vector.extract_strided_slice %3 {offsets = [0, 0, 0], sizes = [15, 16, 128], strides = [1, 1, 1]} : vector<16x16x128xbf16> to vector<15x16x128xbf16>
    %17 = tpu.concatenate %9, %16 in 0 : vector<1x16x128xbf16>, vector<15x16x128xbf16> -> vector<16x16x128xbf16>
    %18 = vector.shape_cast %17 : vector<16x16x128xbf16> to vector<256x128xbf16>
    %c1 = arith.constant 1 : index
    %c0_9 = arith.constant 0 : index
    %c0_10 = arith.constant 0 : index
    %19 = vector.load %arg3[%c1, %c0_9, %c0_10] : memref<9x128x128xbf16, #tpu.memory_space<vmem>>, vector<1x128x128xbf16>
    %20 = vector.shape_cast %19 : vector<1x128x128xbf16> to vector<128x128xbf16>
    %cst_11 = arith.constant dense<0.000000e+00> : vector<256x128xf32>
    %21 = tpu.matmul %18, %20, %cst_11 {dimension_numbers = #tpu.dot_dimension_numbers<[1], [0], [0], [1], [0, 0, 1, 1], [], []>} : vector<256x128xbf16>, vector<128x128xbf16>, vector<256x128xf32> -> vector<256x128xf32>
    %22 = arith.addf %15, %21 : vector<256x128xf32>
    %23 = vector.extract_strided_slice %8 {offsets = [0, 0, 0], sizes = [15, 16, 128], strides = [1, 1, 1]} : vector<16x16x128xbf16> to vector<15x16x128xbf16>
    %24 = tpu.concatenate %9, %23 in 0 : vector<1x16x128xbf16>, vector<15x16x128xbf16> -> vector<16x16x128xbf16>
    %25 = vector.shape_cast %24 : vector<16x16x128xbf16> to vector<256x128xbf16>
    %c2 = arith.constant 2 : index
    %c0_12 = arith.constant 0 : index
    %c0_13 = arith.constant 0 : index
    %26 = vector.load %arg3[%c2, %c0_12, %c0_13] : memref<9x128x128xbf16, #tpu.memory_space<vmem>>, vector<1x128x128xbf16>
    %27 = vector.shape_cast %26 : vector<1x128x128xbf16> to vector<128x128xbf16>
    %cst_14 = arith.constant dense<0.000000e+00> : vector<256x128xf32>
    %28 = tpu.matmul %25, %27, %cst_14 {dimension_numbers = #tpu.dot_dimension_numbers<[1], [0], [0], [1], [0, 0, 1, 1], [], []>} : vector<256x128xbf16>, vector<128x128xbf16>, vector<256x128xf32> -> vector<256x128xf32>
    %29 = arith.addf %22, %28 : vector<256x128xf32>
    %30 = vector.shape_cast %6 : vector<16x16x128xbf16> to vector<256x128xbf16>
    %c3 = arith.constant 3 : index
    %c0_15 = arith.constant 0 : index
    %c0_16 = arith.constant 0 : index
    %31 = vector.load %arg3[%c3, %c0_15, %c0_16] : memref<9x128x128xbf16, #tpu.memory_space<vmem>>, vector<1x128x128xbf16>
    %32 = vector.shape_cast %31 : vector<1x128x128xbf16> to vector<128x128xbf16>
    %cst_17 = arith.constant dense<0.000000e+00> : vector<256x128xf32>
    %33 = tpu.matmul %30, %32, %cst_17 {dimension_numbers = #tpu.dot_dimension_numbers<[1], [0], [0], [1], [0, 0, 1, 1], [], []>} : vector<256x128xbf16>, vector<128x128xbf16>, vector<256x128xf32> -> vector<256x128xf32>
    %34 = arith.addf %29, %33 : vector<256x128xf32>
    %35 = vector.shape_cast %3 : vector<16x16x128xbf16> to vector<256x128xbf16>
    %c4 = arith.constant 4 : index
    %c0_18 = arith.constant 0 : index
    %c0_19 = arith.constant 0 : index
    %36 = vector.load %arg3[%c4, %c0_18, %c0_19] : memref<9x128x128xbf16, #tpu.memory_space<vmem>>, vector<1x128x128xbf16>
    %37 = vector.shape_cast %36 : vector<1x128x128xbf16> to vector<128x128xbf16>
    %cst_20 = arith.constant dense<0.000000e+00> : vector<256x128xf32>
    %38 = tpu.matmul %35, %37, %cst_20 {dimension_numbers = #tpu.dot_dimension_numbers<[1], [0], [0], [1], [0, 0, 1, 1], [], []>} : vector<256x128xbf16>, vector<128x128xbf16>, vector<256x128xf32> -> vector<256x128xf32>
    %39 = arith.addf %34, %38 : vector<256x128xf32>
    %40 = vector.shape_cast %8 : vector<16x16x128xbf16> to vector<256x128xbf16>
    %c5 = arith.constant 5 : index
    %c0_21 = arith.constant 0 : index
    %c0_22 = arith.constant 0 : index
    %41 = vector.load %arg3[%c5, %c0_21, %c0_22] : memref<9x128x128xbf16, #tpu.memory_space<vmem>>, vector<1x128x128xbf16>
    %42 = vector.shape_cast %41 : vector<1x128x128xbf16> to vector<128x128xbf16>
    %cst_23 = arith.constant dense<0.000000e+00> : vector<256x128xf32>
    %43 = tpu.matmul %40, %42, %cst_23 {dimension_numbers = #tpu.dot_dimension_numbers<[1], [0], [0], [1], [0, 0, 1, 1], [], []>} : vector<256x128xbf16>, vector<128x128xbf16>, vector<256x128xf32> -> vector<256x128xf32>
    %44 = arith.addf %39, %43 : vector<256x128xf32>
    %45 = vector.extract_strided_slice %6 {offsets = [1, 0, 0], sizes = [15, 16, 128], strides = [1, 1, 1]} : vector<16x16x128xbf16> to vector<15x16x128xbf16>
    %46 = tpu.concatenate %45, %9 in 0 : vector<15x16x128xbf16>, vector<1x16x128xbf16> -> vector<16x16x128xbf16>
    %47 = vector.shape_cast %46 : vector<16x16x128xbf16> to vector<256x128xbf16>
    %c6 = arith.constant 6 : index
    %c0_24 = arith.constant 0 : index
    %c0_25 = arith.constant 0 : index
    %48 = vector.load %arg3[%c6, %c0_24, %c0_25] : memref<9x128x128xbf16, #tpu.memory_space<vmem>>, vector<1x128x128xbf16>
    %49 = vector.shape_cast %48 : vector<1x128x128xbf16> to vector<128x128xbf16>
    %cst_26 = arith.constant dense<0.000000e+00> : vector<256x128xf32>
    %50 = tpu.matmul %47, %49, %cst_26 {dimension_numbers = #tpu.dot_dimension_numbers<[1], [0], [0], [1], [0, 0, 1, 1], [], []>} : vector<256x128xbf16>, vector<128x128xbf16>, vector<256x128xf32> -> vector<256x128xf32>
    %51 = arith.addf %44, %50 : vector<256x128xf32>
    %52 = vector.extract_strided_slice %3 {offsets = [1, 0, 0], sizes = [15, 16, 128], strides = [1, 1, 1]} : vector<16x16x128xbf16> to vector<15x16x128xbf16>
    %53 = tpu.concatenate %52, %9 in 0 : vector<15x16x128xbf16>, vector<1x16x128xbf16> -> vector<16x16x128xbf16>
    %54 = vector.shape_cast %53 : vector<16x16x128xbf16> to vector<256x128xbf16>
    %c7 = arith.constant 7 : index
    %c0_27 = arith.constant 0 : index
    %c0_28 = arith.constant 0 : index
    %55 = vector.load %arg3[%c7, %c0_27, %c0_28] : memref<9x128x128xbf16, #tpu.memory_space<vmem>>, vector<1x128x128xbf16>
    %56 = vector.shape_cast %55 : vector<1x128x128xbf16> to vector<128x128xbf16>
    %cst_29 = arith.constant dense<0.000000e+00> : vector<256x128xf32>
    %57 = tpu.matmul %54, %56, %cst_29 {dimension_numbers = #tpu.dot_dimension_numbers<[1], [0], [0], [1], [0, 0, 1, 1], [], []>} : vector<256x128xbf16>, vector<128x128xbf16>, vector<256x128xf32> -> vector<256x128xf32>
    %58 = arith.addf %51, %57 : vector<256x128xf32>
    %59 = vector.extract_strided_slice %8 {offsets = [1, 0, 0], sizes = [15, 16, 128], strides = [1, 1, 1]} : vector<16x16x128xbf16> to vector<15x16x128xbf16>
    %60 = tpu.concatenate %59, %9 in 0 : vector<15x16x128xbf16>, vector<1x16x128xbf16> -> vector<16x16x128xbf16>
    %61 = vector.shape_cast %60 : vector<16x16x128xbf16> to vector<256x128xbf16>
    %c8 = arith.constant 8 : index
    %c0_30 = arith.constant 0 : index
    %c0_31 = arith.constant 0 : index
    %62 = vector.load %arg3[%c8, %c0_30, %c0_31] : memref<9x128x128xbf16, #tpu.memory_space<vmem>>, vector<1x128x128xbf16>
    %63 = vector.shape_cast %62 : vector<1x128x128xbf16> to vector<128x128xbf16>
    %cst_32 = arith.constant dense<0.000000e+00> : vector<256x128xf32>
    %64 = tpu.matmul %61, %63, %cst_32 {dimension_numbers = #tpu.dot_dimension_numbers<[1], [0], [0], [1], [0, 0, 1, 1], [], []>} : vector<256x128xbf16>, vector<128x128xbf16>, vector<256x128xf32> -> vector<256x128xf32>
    %65 = arith.addf %58, %64 : vector<256x128xf32>
    %c0_33 = arith.constant 0 : index
    %c0_34 = arith.constant 0 : index
    %66 = vector.load %arg4[%c0_33, %c0_34] : memref<1x128xf32, #tpu.memory_space<vmem>>, vector<1x128xf32>
    %67 = vector.broadcast %66 : vector<1x128xf32> to vector<256x128xf32>
    %68 = arith.addf %65, %67 : vector<256x128xf32>
    %69 = vector.shape_cast %68 : vector<256x128xf32> to vector<1x16x16x128xf32>
    %70 = arith.truncf %69 : vector<1x16x16x128xf32> to vector<1x16x16x128xbf16>
    %c0_35 = arith.constant 0 : index
    %c0_36 = arith.constant 0 : index
    %c0_37 = arith.constant 0 : index
    %c0_38 = arith.constant 0 : index
    %71 = vector.load %arg5[%c0_35, %c0_36, %c0_37, %c0_38] : memref<1x16x16x128xbf16, #tpu.memory_space<vmem>>, vector<1x16x16x128xbf16>
    tpu.vector_store %arg5[%c0_35, %c0_36, %c0_37, %c0_38], %70 {strides = array<i32>} : memref<1x16x16x128xbf16, #tpu.memory_space<vmem>>, vector<1x16x16x128xbf16>,
    return
  }
  func.func @transform_0(%arg0: i32, %arg1: i32) -> (i32, i32, i32, i32) {
    %c0_i32 = arith.constant 0 : i32
    %c0_i32_0 = arith.constant 0 : i32
    %c0_i32_1 = arith.constant 0 : i32
    %c0_i32_2 = arith.constant 0 : i32
    return %arg0, %c0_i32, %c0_i32_0, %c0_i32_1 : i32, i32, i32, i32
  }
  func.func @transform_1(%arg0: i32, %arg1: i32) -> (i32, i32, i32) {
    %c0_i32 = arith.constant 0 : i32
    %c0_i32_0 = arith.constant 0 : i32
    %c0_i32_1 = arith.constant 0 : i32
    return %c0_i32, %c0_i32_0, %arg1 : i32, i32, i32
  }
  func.func @transform_2(%arg0: i32, %arg1: i32) -> (i32, i32) {
    %c0_i32 = arith.constant 0 : i32
    %c0_i32_0 = arith.constant 0 : i32
    return %c0_i32, %arg1 : i32, i32
  }
  func.func @transform_3(%arg0: i32, %arg1: i32) -> (i32, i32, i32, i32) {
    %c0_i32 = arith.constant 0 : i32
    %c0_i32_0 = arith.constant 0 : i32
    %c0_i32_1 = arith.constant 0 : i32
    return %arg0, %c0_i32, %c0_i32_0, %arg1 : i32, i32, i32, i32
  }
}

module attributes {stable_mosaic.version = 11 : i64} {
  func.func @_upsample2x_add_kernel(%arg0: i32, %arg1: memref<1x8x8x128xbf16, #tpu.memory_space<vmem>>, %arg2: memref<1x16x8x256xbf16, #tpu.memory_space<vmem>>, %arg3: memref<1x16x8x256xbf16, #tpu.memory_space<vmem>>) attributes {dimension_semantics = [#tpu.dimension_semantics<parallel>], iteration_bounds = array<i64: 2>, scalar_prefetch = 0 : i64, scratch_operands = 0 : i64, tpu.core_type = #tpu.core_type<tc>, window_params = [{transform_indices = @transform_0, window_bounds = array<i64: 1, 8, 8, 128>}, {transform_indices = @transform_1, window_bounds = array<i64: 1, 16, 8, 256>}, {transform_indices = @transform_2, window_bounds = array<i64: 1, 16, 8, 256>}]} {
    %c0 = arith.constant 0 : index
    %c0_0 = arith.constant 0 : index
    %c0_1 = arith.constant 0 : index
    %c0_2 = arith.constant 0 : index
    %0 = vector.load %arg1[%c0, %c0_0, %c0_1, %c0_2] : memref<1x8x8x128xbf16, #tpu.memory_space<vmem>>, vector<1x8x8x128xbf16>
    %1 = vector.shape_cast %0 : vector<1x8x8x128xbf16> to vector<8x8x128xbf16>
    %2 = arith.extf %1 : vector<8x8x128xbf16> to vector<8x8x128xf32>
    %3 = vector.extract_strided_slice %2 {offsets = [0, 0, 0], sizes = [8, 1, 128], strides = [1, 1, 1]} : vector<8x8x128xf32> to vector<8x1x128xf32>
    %4 = vector.extract_strided_slice %2 {offsets = [0, 0, 0], sizes = [8, 7, 128], strides = [1, 1, 1]} : vector<8x8x128xf32> to vector<8x7x128xf32>
    %5 = tpu.concatenate %3, %4 in 1 : vector<8x1x128xf32>, vector<8x7x128xf32> -> vector<8x8x128xf32>
    %6 = vector.extract_strided_slice %2 {offsets = [0, 1, 0], sizes = [8, 7, 128], strides = [1, 1, 1]} : vector<8x8x128xf32> to vector<8x7x128xf32>
    %7 = vector.extract_strided_slice %2 {offsets = [0, 7, 0], sizes = [8, 1, 128], strides = [1, 1, 1]} : vector<8x8x128xf32> to vector<8x1x128xf32>
    %8 = tpu.concatenate %6, %7 in 1 : vector<8x7x128xf32>, vector<8x1x128xf32> -> vector<8x8x128xf32>
    %cst = arith.constant 2.500000e-01 : f32
    %9 = vector.broadcast %cst : f32 to vector<8x8x128xf32>
    %10 = arith.mulf %9, %5 : vector<8x8x128xf32>
    %cst_3 = arith.constant 7.500000e-01 : f32
    %11 = vector.broadcast %cst_3 : f32 to vector<8x8x128xf32>
    %12 = arith.mulf %11, %2 : vector<8x8x128xf32>
    %13 = arith.addf %10, %12 : vector<8x8x128xf32>
    %cst_4 = arith.constant 7.500000e-01 : f32
    %14 = vector.broadcast %cst_4 : f32 to vector<8x8x128xf32>
    %15 = arith.mulf %14, %2 : vector<8x8x128xf32>
    %cst_5 = arith.constant 2.500000e-01 : f32
    %16 = vector.broadcast %cst_5 : f32 to vector<8x8x128xf32>
    %17 = arith.mulf %16, %8 : vector<8x8x128xf32>
    %18 = arith.addf %15, %17 : vector<8x8x128xf32>
    %19 = tpu.concatenate %13, %18 in 2 : vector<8x8x128xf32>, vector<8x8x128xf32> -> vector<8x8x256xf32>
    %20 = vector.extract_strided_slice %19 {offsets = [0, 0, 0], sizes = [1, 8, 256], strides = [1, 1, 1]} : vector<8x8x256xf32> to vector<1x8x256xf32>
    %21 = vector.extract_strided_slice %19 {offsets = [0, 0, 0], sizes = [7, 8, 256], strides = [1, 1, 1]} : vector<8x8x256xf32> to vector<7x8x256xf32>
    %22 = tpu.concatenate %20, %21 in 0 : vector<1x8x256xf32>, vector<7x8x256xf32> -> vector<8x8x256xf32>
    %23 = vector.extract_strided_slice %19 {offsets = [1, 0, 0], sizes = [7, 8, 256], strides = [1, 1, 1]} : vector<8x8x256xf32> to vector<7x8x256xf32>
    %24 = vector.extract_strided_slice %19 {offsets = [7, 0, 0], sizes = [1, 8, 256], strides = [1, 1, 1]} : vector<8x8x256xf32> to vector<1x8x256xf32>
    %25 = tpu.concatenate %23, %24 in 0 : vector<7x8x256xf32>, vector<1x8x256xf32> -> vector<8x8x256xf32>
    %cst_6 = arith.constant 2.500000e-01 : f32
    %26 = vector.broadcast %cst_6 : f32 to vector<8x8x256xf32>
    %27 = arith.mulf %26, %22 : vector<8x8x256xf32>
    %cst_7 = arith.constant 7.500000e-01 : f32
    %28 = vector.broadcast %cst_7 : f32 to vector<8x8x256xf32>
    %29 = arith.mulf %28, %19 : vector<8x8x256xf32>
    %30 = arith.addf %27, %29 : vector<8x8x256xf32>
    %cst_8 = arith.constant 7.500000e-01 : f32
    %31 = vector.broadcast %cst_8 : f32 to vector<8x8x256xf32>
    %32 = arith.mulf %31, %19 : vector<8x8x256xf32>
    %cst_9 = arith.constant 2.500000e-01 : f32
    %33 = vector.broadcast %cst_9 : f32 to vector<8x8x256xf32>
    %34 = arith.mulf %33, %25 : vector<8x8x256xf32>
    %35 = arith.addf %32, %34 : vector<8x8x256xf32>
    %36 = vector.shape_cast %30 : vector<8x8x256xf32> to vector<8x1x8x256xf32>
    %37 = vector.shape_cast %35 : vector<8x8x256xf32> to vector<8x1x8x256xf32>
    %38 = tpu.concatenate %36, %37 in 1 : vector<8x1x8x256xf32>, vector<8x1x8x256xf32> -> vector<8x2x8x256xf32>
    %39 = vector.shape_cast %38 : vector<8x2x8x256xf32> to vector<16x8x256xf32>
    %c0_10 = arith.constant 0 : index
    %c0_11 = arith.constant 0 : index
    %c0_12 = arith.constant 0 : index
    %c0_13 = arith.constant 0 : index
    %40 = vector.load %arg2[%c0_10, %c0_11, %c0_12, %c0_13] : memref<1x16x8x256xbf16, #tpu.memory_space<vmem>>, vector<1x16x8x256xbf16>
    %41 = vector.shape_cast %40 : vector<1x16x8x256xbf16> to vector<16x8x256xbf16>
    %42 = arith.extf %41 : vector<16x8x256xbf16> to vector<16x8x256xf32>
    %43 = arith.addf %39, %42 : vector<16x8x256xf32>
    %44 = vector.shape_cast %43 : vector<16x8x256xf32> to vector<1x16x8x256xf32>
    %45 = arith.truncf %44 : vector<1x16x8x256xf32> to vector<1x16x8x256xbf16>
    %c0_14 = arith.constant 0 : index
    %c0_15 = arith.constant 0 : index
    %c0_16 = arith.constant 0 : index
    %c0_17 = arith.constant 0 : index
    %46 = vector.load %arg3[%c0_14, %c0_15, %c0_16, %c0_17] : memref<1x16x8x256xbf16, #tpu.memory_space<vmem>>, vector<1x16x8x256xbf16>
    tpu.vector_store %arg3[%c0_14, %c0_15, %c0_16, %c0_17], %45 {strides = array<i32>} : memref<1x16x8x256xbf16, #tpu.memory_space<vmem>>, vector<1x16x8x256xbf16>,
    return
  }
  func.func @transform_0(%arg0: i32) -> (i32, i32, i32, i32) {
    %c0_i32 = arith.constant 0 : i32
    %c0_i32_0 = arith.constant 0 : i32
    %c0_i32_1 = arith.constant 0 : i32
    %c0_i32_2 = arith.constant 0 : i32
    return %arg0, %c0_i32, %c0_i32_0, %c0_i32_1 : i32, i32, i32, i32
  }
  func.func @transform_1(%arg0: i32) -> (i32, i32, i32, i32) {
    %c0_i32 = arith.constant 0 : i32
    %c0_i32_0 = arith.constant 0 : i32
    %c0_i32_1 = arith.constant 0 : i32
    %c0_i32_2 = arith.constant 0 : i32
    return %arg0, %c0_i32, %c0_i32_0, %c0_i32_1 : i32, i32, i32, i32
  }
  func.func @transform_2(%arg0: i32) -> (i32, i32, i32, i32) {
    %c0_i32 = arith.constant 0 : i32
    %c0_i32_0 = arith.constant 0 : i32
    %c0_i32_1 = arith.constant 0 : i32
    %c0_i32_2 = arith.constant 0 : i32
    return %arg0, %c0_i32, %c0_i32_0, %c0_i32_1 : i32, i32, i32, i32
  }
}

</mosaic_0001>

<bundles_post_ra>
// kernel: upsample_block_forward.10
= control target key start
LH: loop header
LB: loop body
LE: loop exit
PB: predicated region body
PF: predicated region fallthrough
CT: control target
= control target key end

     0   :  { %s731_s9 = smov 0   ;;  %s849_s0 = inlined_call_operand.vmem [shape: bf16[2,8,8,128], index: 0, kind: input, shape index: {}]   ;;  %s850_s1 = inlined_call_operand.vmem [shape: bf16[2,16,8,256], index: 1, kind: input, shape index: {}]   ;;  %s851_s2 = inlined_call_operand.vmem [shape: bf16[2,16,8,256], index: 2, kind: output, shape index: {}]  }
   0x1 LB: > { %s633_s10 = sadd.s32 4294967295, %s714_s9   ;;  %p637_p0 = scmp.ge.s32.totalorder %s714_s9, 1  ;;  %s714_s9 = sphi %s731_s9, %s12_s9  }
   0x2   : > { %p122_p1 = scmp.lt.s32.totalorder %s714_s9, 3 }
   0x4   : > { %p123_p2 = pnand %p637_p0, %p122_p1 }
   0x5   : > { %p149_p3 = scmp.lt.s32.totalorder (!%p123_p2), %s633_s10, 1  ;;  %vm204_vm0 = vcmask (!%p123_p2), 1040384   ;;  %vm229_vm1 = vcmask (!%p123_p2), 1046528  }
   0x6   : > { %126 = sbr.rel (%p123_p2) target bundleno = 78 (0x4e), region = 28 }
   0xd   : > { %s853_s10 = smov (!%p149_p3, %s633_s10), 1 }
   0xe   : > { %s662_s11 = sshll.u32 %s853_s10, 5  ;;  %s663_s12 = sshll.u32 %s853_s10, 7 }
   0xf   : > { %s746_s15 = scalar_lea.vmem %s849_s0, %s662_s11  ;;  %s753_s18 = scalar_lea.vmem %s850_s1, %s663_s12 }
  0x10   : > { %v682_v0 = vld [vmem:[%s746_s15] sm:$0xff]   ;;  %v758_v2 = vld [vmem:[%s753_s18 + $0x8] sm:$0xff]  ;;  %v344_v7 = vld [vmem:[%s753_s18 + $0x10] sm:$0xff]  ;;  %s788_s21 = scalar_lea.vmem %s851_s2, %s663_s12 }
  0x11   : > { %v342_v1 = vld [vmem:[%s753_s18] sm:$0xff]  ;;  %v683_v3 = vunpack.c.l.bf16 %v682_v0  ;;  %v684_v6 = vunpack.c.h.bf16 %v682_v0  ;;  %v762_v8 = vld [vmem:[%s746_s15 + $0x8] sm:$0xff]   ;;  %v765_v9 = vld [vmem:[%s753_s18 + $0x18] sm:$0xff]  ;;  %v360_v10 = vunpack.c.l.bf16 %v758_v2  ;;  %v361_v11 = vunpack.c.h.bf16 %v758_v2 }
  0x12   : > { %v358_v4 = vunpack.c.l.bf16 %v342_v1  ;;  %v359_v5 = vunpack.c.h.bf16 %v342_v1  ;;  %v362_v12 = vunpack.c.l.bf16 %v344_v7  ;;  %v363_v13 = vunpack.c.h.bf16 %v344_v7  ;;  %v776_v26 = vld [vmem:[%s753_s18 + $0x20] sm:$0xff] }
  0x13   : > { %v188_v14 = vrot.slane %v683_v3, 7  ;;  %v213_v15 = vrot.slane %v683_v3, 1  ;;  %v246_v16 = vmul.f32 0.75, %v683_v3  ;;  %v189_v17 = vrot.slane %v684_v6, 7 }
  0x14   : > { %v214_v18 = vrot.slane %v684_v6, 1  ;;  %v247_v19 = vmul.f32 0.75, %v684_v6  ;;  %v687_v20 = vunpack.c.l.bf16 %v762_v8  ;;  %v364_v21 = vunpack.c.l.bf16 %v765_v9 }
  0x15   : > { %v205_v22 = vsel %vm204_vm0, %v683_v3, %v188_v14  ;;  %v230_v23 = vsel %vm229_vm1, %v213_v15, %v683_v3  ;;  %v206_v24 = vsel %vm204_vm0, %v684_v6, %v189_v17  ;;  %v365_v25 = vunpack.c.h.bf16 %v765_v9  ;;  %v791_v3 = vld [vmem:[%s753_s18 + $0x28] sm:$0xff] }
  0x16   : > { %v238_v27 = vmul.f32 0.25, %v205_v22  ;;  %v262_v28 = vmul.f32 0.25, %v230_v23  ;;  %v231_v29 = vsel %vm229_vm1, %v214_v18, %v684_v6  ;;  %v239_v30 = vmul.f32 0.25, %v206_v24  ;;  %v348_v18 = vld [vmem:[%s753_s18 + $0x30] sm:$0xff] }
  0x17   : > { %v263_v31 = vmul.f32 0.25, %v231_v29  ;;  %v190_v32 = vrot.slane %v687_v20, 7  ;;  %v215_v33 = vrot.slane %v687_v20, 1  ;;  %v248_v34 = vmul.f32 0.75, %v687_v20  ;;  %v806_v29 = vld [vmem:[%s753_s18 + $0x38] sm:$0xff] }
  0x18   : > { %v254_v35 = vadd.f32 %v246_v16, %v238_v27  ;;  %v270_v36 = vadd.f32 %v262_v28, %v246_v16  ;;  %v255_v37 = vadd.f32 %v247_v19, %v239_v30  ;;  %v366_v38 = vunpack.c.l.bf16 %v776_v26  ;;  %v698_v28 = vld [vmem:[%s746_s15 + $0x10] sm:$0xff]  }
  0x19   : > { %v271_v39 = vadd.f32 %v263_v31, %v247_v19  ;;  %v207_v40 = vsel %vm204_vm0, %v687_v20, %v190_v32  ;;  %v232_v41 = vsel %vm229_vm1, %v215_v33, %v687_v20  ;;  %v367_v42 = vunpack.c.h.bf16 %v776_v26 }
  0x1a   : > { %v278_v43 = vmul.f32 0.25, %v254_v35  ;;  %v279_v44 = vmul.f32 0.25, %v270_v36  ;;  %v292_v45 = vmul.f32 0.75, %v254_v35  ;;  %v293_v46 = vmul.f32 0.75, %v270_v36 }
  0x1b   : > { %v280_v47 = vmul.f32 0.25, %v255_v37  ;;  %v281_v48 = vmul.f32 0.25, %v271_v39  ;;  %v294_v49 = vmul.f32 0.75, %v255_v37  ;;  %v295_v50 = vmul.f32 0.75, %v271_v39 }
  0x1c   : > { %v308_v51 = vadd.f32 %v292_v45, %v278_v43  ;;  %v309_v52 = vadd.f32 %v293_v46, %v279_v44  ;;  %v240_v53 = vmul.f32 0.25, %v207_v40  ;;  %v264_v54 = vmul.f32 0.25, %v232_v41 }
  0x1d   : > { %v326_v55 = vadd.f32 %v292_v45, %v280_v47  ;;  %v327_v56 = vadd.f32 %v293_v46, %v281_v48  ;;  %v310_v57 = vadd.f32 %v294_v49, %v278_v43  ;;  %v311_v58 = vadd.f32 %v295_v50, %v279_v44 }
  0x1e   : > { %v390_v59 = vadd.f32 %v358_v4, %v308_v51  ;;  %v391_v60 = vadd.f32 %v359_v5, %v309_v52  ;;  %v256_v61 = vadd.f32 %v248_v34, %v240_v53  ;;  %v272_v62 = vadd.f32 %v264_v54, %v248_v34  ;;  %v811_v34 = vld [vmem:[%s753_s18 + $0x40] sm:$0xff] }
  0x1f   : > { %v392_v63 = vadd.f32 %v360_v10, %v326_v55  ;;  %v393_v0 = vadd.f32 %v361_v11, %v327_v56  ;;  %v394_v1 = vadd.f32 %v362_v12, %v310_v57  ;;  %v395_v2 = vadd.f32 %v363_v13, %v311_v58 }
  0x20   : > { %v665_v4 = vpack.c.bf16 %v391_v60, %v390_v59  ;;  %v282_v5 = vmul.f32 0.25, %v256_v61  ;;  %v283_v6 = vmul.f32 0.25, %v272_v62  ;;  %v296_v7 = vmul.f32 0.75, %v256_v61 }
  0x21   : > { %v666_v14 = vpack.c.bf16 %v393_v0, %v392_v63  ;;  %v667_v15 = vpack.c.bf16 %v395_v2, %v394_v1  ;;  %v297_v16 = vmul.f32 0.75, %v272_v62  ;;  %v688_v17 = vunpack.c.h.bf16 %v762_v8  ;;  %v351_v0 = vld [vmem:[%s753_s18 + $0x48] sm:$0xff] }
  0x22   : > { %550 = vst [vmem:[%s788_s21] sm:$0xff] %v665_v4  ;;  %v328_v10 = vadd.f32 %v294_v49, %v282_v5  ;;  %v329_v11 = vadd.f32 %v295_v50, %v283_v6  ;;  %v312_v12 = vadd.f32 %v296_v7, %v280_v47  ;;  %v368_v13 = vunpack.c.l.bf16 %v791_v3 }
  0x23   : > { %551 = vst [vmem:[%s788_s21 + $0x8] sm:$0xff] %v666_v14  ;;  %552 = vst [vmem:[%s788_s21 + $0x10] sm:$0xff] %v667_v15  ;;  %v313_v19 = vadd.f32 %v297_v16, %v281_v48  ;;  %v191_v20 = vrot.slane %v688_v17, 7  ;;  %v216_v22 = vrot.slane %v688_v17, 1  ;;  %v249_v23 = vmul.f32 0.75, %v688_v17 }
  0x24   : > { %v396_v24 = vadd.f32 %v364_v21, %v328_v10  ;;  %v397_v8 = vadd.f32 %v365_v25, %v329_v11  ;;  %v398_v26 = vadd.f32 %v366_v38, %v312_v12  ;;  %v369_v27 = vunpack.c.h.bf16 %v791_v3 }
  0x25   : > { %v399_v30 = vadd.f32 %v367_v42, %v313_v19  ;;  %v208_v31 = vsel %vm204_vm0, %v688_v17, %v191_v20  ;;  %v233_v32 = vsel %vm229_vm1, %v216_v22, %v688_v17  ;;  %v370_v33 = vunpack.c.l.bf16 %v348_v18  ;;  %v352_v17 = vld [vmem:[%s753_s18 + $0x50] sm:$0xff] }
  0x26   : > { %v668_v21 = vpack.c.bf16 %v397_v8, %v396_v24  ;;  %v241_v35 = vmul.f32 0.25, %v208_v31  ;;  %v265_v9 = vmul.f32 0.25, %v233_v32  ;;  %v371_v25 = vunpack.c.h.bf16 %v348_v18 }
  0x27   : > { %v669_v36 = vpack.c.bf16 %v399_v30, %v398_v26  ;;  %v691_v37 = vunpack.c.l.bf16 %v698_v28  ;;  %v372_v38 = vunpack.c.l.bf16 %v806_v29  ;;  %v373_v39 = vunpack.c.h.bf16 %v806_v29 }
  0x28   : > { %553 = vst [vmem:[%s788_s21 + $0x18] sm:$0xff] %v668_v21  ;;  %v257_v40 = vadd.f32 %v249_v23, %v241_v35  ;;  %v273_v41 = vadd.f32 %v265_v9, %v249_v23  ;;  %v374_v42 = vunpack.c.l.bf16 %v811_v34  ;;  %v375_v43 = vunpack.c.h.bf16 %v811_v34 }
  0x29   : > { %554 = vst [vmem:[%s788_s21 + $0x20] sm:$0xff] %v669_v36  ;;  %v192_v44 = vrot.slane %v691_v37, 7  ;;  %v217_v45 = vrot.slane %v691_v37, 1  ;;  %v250_v46 = vmul.f32 0.75, %v691_v37  ;;  %v692_v47 = vunpack.c.h.bf16 %v698_v28 }
  0x2a   : > { %v284_v48 = vmul.f32 0.25, %v257_v40  ;;  %v285_v49 = vmul.f32 0.25, %v273_v41  ;;  %v298_v50 = vmul.f32 0.75, %v257_v40  ;;  %v299_v51 = vmul.f32 0.75, %v273_v41 }
  0x2b   : > { %v209_v52 = vsel %vm204_vm0, %v691_v37, %v192_v44  ;;  %v234_v53 = vsel %vm229_vm1, %v217_v45, %v691_v37  ;;  %v193_v54 = vrot.slane %v692_v47, 7  ;;  %v218_v55 = vrot.slane %v692_v47, 1 }
  0x2c   : > { %v330_v56 = vadd.f32 %v296_v7, %v284_v48  ;;  %v331_v57 = vadd.f32 %v297_v16, %v285_v49  ;;  %v314_v58 = vadd.f32 %v298_v50, %v282_v5  ;;  %v315_v59 = vadd.f32 %v299_v51, %v283_v6 }
  0x2d   : > { %v242_v60 = vmul.f32 0.25, %v209_v52  ;;  %v266_v61 = vmul.f32 0.25, %v234_v53  ;;  %v210_v62 = vsel %vm204_vm0, %v692_v47, %v193_v54  ;;  %v235_v63 = vsel %vm229_vm1, %v218_v55, %v692_v47  ;;  %v354_v55 = vld [vmem:[%s753_s18 + $0x60] sm:$0xff] }
  0x2e   : > { %v400_v1 = vadd.f32 %v368_v13, %v330_v56  ;;  %v401_v2 = vadd.f32 %v369_v27, %v331_v57  ;;  %v402_v3 = vadd.f32 %v370_v33, %v314_v58  ;;  %v403_v4 = vadd.f32 %v371_v25, %v315_v59  ;;  %v699_v33 = vld [vmem:[%s746_s15 + $0x18] sm:$0xff]  }
  0x2f   : > { %v258_v14 = vadd.f32 %v250_v46, %v242_v60  ;;  %v274_v15 = vadd.f32 %v266_v61, %v250_v46  ;;  %v243_v7 = vmul.f32 0.25, %v210_v62  ;;  %v251_v16 = vmul.f32 0.75, %v692_v47 }
  0x30   : > { %v670_v5 = vpack.c.bf16 %v401_v2, %v400_v1  ;;  %v671_v6 = vpack.c.bf16 %v403_v4, %v402_v3  ;;  %v267_v10 = vmul.f32 0.25, %v235_v63  ;;  %v376_v11 = vunpack.c.l.bf16 %v351_v0  ;;  %v355_v2 = vld [vmem:[%s753_s18 + $0x68] sm:$0xff] }
  0x31   : > { %v286_v12 = vmul.f32 0.25, %v258_v14  ;;  %v287_v18 = vmul.f32 0.25, %v274_v15  ;;  %v300_v19 = vmul.f32 0.75, %v258_v14  ;;  %v301_v20 = vmul.f32 0.75, %v274_v15 }
  0x32   : > { %555 = vst [vmem:[%s788_s21 + $0x28] sm:$0xff] %v670_v5  ;;  %556 = vst [vmem:[%s788_s21 + $0x30] sm:$0xff] %v671_v6  ;;  %v259_v13 = vadd.f32 %v251_v16, %v243_v7  ;;  %v275_v22 = vadd.f32 %v267_v10, %v251_v16  ;;  %v377_v23 = vunpack.c.h.bf16 %v351_v0  ;;  %v378_v24 = vunpack.c.l.bf16 %v352_v17  ;;  %v356_v6 = vld [vmem:[%s753_s18 + $0x70] sm:$0xff] }
  0x33   : > { %v332_v8 = vadd.f32 %v298_v50, %v286_v12  ;;  %v333_v26 = vadd.f32 %v299_v51, %v287_v18  ;;  %v316_v27 = vadd.f32 %v300_v19, %v284_v48  ;;  %v317_v28 = vadd.f32 %v301_v20, %v285_v49  ;;  %v353_v51 = vld [vmem:[%s753_s18 + $0x58] sm:$0xff] }
  0x34   : > { %v288_v29 = vmul.f32 0.25, %v259_v13  ;;  %v289_v30 = vmul.f32 0.25, %v275_v22  ;;  %v302_v31 = vmul.f32 0.75, %v259_v13  ;;  %v303_v32 = vmul.f32 0.75, %v275_v22 }
  0x35   : > { %v404_v34 = vadd.f32 %v372_v38, %v332_v8  ;;  %v405_v21 = vadd.f32 %v373_v39, %v333_v26  ;;  %v406_v35 = vadd.f32 %v374_v42, %v316_v27  ;;  %v407_v9 = vadd.f32 %v375_v43, %v317_v28  ;;  %v357_v27 = vld [vmem:[%s753_s18 + $0x78] sm:$0xff] }
  0x36   : > { %v334_v25 = vadd.f32 %v300_v19, %v288_v29  ;;  %v335_v36 = vadd.f32 %v301_v20, %v289_v30  ;;  %v318_v37 = vadd.f32 %v302_v31, %v286_v12  ;;  %v319_v40 = vadd.f32 %v303_v32, %v287_v18 }
  0x37   : > { %v672_v41 = vpack.c.bf16 %v405_v21, %v404_v34  ;;  %v673_v44 = vpack.c.bf16 %v407_v9, %v406_v35  ;;  %v379_v45 = vunpack.c.h.bf16 %v352_v17  ;;  %v695_v46 = vunpack.c.l.bf16 %v699_v33 }
  0x38   : > { %v408_v47 = vadd.f32 %v376_v11, %v334_v25  ;;  %v409_v48 = vadd.f32 %v377_v23, %v335_v36  ;;  %v410_v49 = vadd.f32 %v378_v24, %v318_v37  ;;  %v696_v56 = vunpack.c.h.bf16 %v699_v33 }
  0x39   : > { %557 = vst [vmem:[%s788_s21 + $0x38] sm:$0xff] %v672_v41  ;;  %558 = vst [vmem:[%s788_s21 + $0x40] sm:$0xff] %v673_v44  ;;  %v411_v38 = vadd.f32 %v379_v45, %v319_v40  ;;  %v194_v39 = vrot.slane %v695_v46, 7  ;;  %v219_v42 = vrot.slane %v695_v46, 1  ;;  %v252_v50 = vmul.f32 0.75, %v695_v46 }
  0x3a   : > { %v674_v43 = vpack.c.bf16 %v409_v48, %v408_v47  ;;  %v380_v59 = vunpack.c.l.bf16 %v353_v51  ;;  %v195_v60 = vrot.slane %v696_v56, 7  ;;  %v220_v61 = vrot.slane %v696_v56, 1 }
  0x3b   : > { %v675_v52 = vpack.c.bf16 %v411_v38, %v410_v49  ;;  %v211_v53 = vsel %vm204_vm0, %v695_v46, %v194_v39  ;;  %v236_v54 = vsel %vm229_vm1, %v219_v42, %v695_v46  ;;  %v381_v0 = vunpack.c.h.bf16 %v353_v51 }
  0x3c   : > { %559 = vst [vmem:[%s788_s21 + $0x48] sm:$0xff] %v674_v43  ;;  %v244_v57 = vmul.f32 0.25, %v211_v53  ;;  %v268_v58 = vmul.f32 0.25, %v236_v54  ;;  %v382_v1 = vunpack.c.l.bf16 %v354_v55  ;;  %v383_v3 = vunpack.c.h.bf16 %v354_v55 }
  0x3d   : > { %560 = vst [vmem:[%s788_s21 + $0x50] sm:$0xff] %v675_v52  ;;  %v212_v4 = vsel %vm204_vm0, %v696_v56, %v195_v60  ;;  %v237_v14 = vsel %vm229_vm1, %v220_v61, %v696_v56  ;;  %v253_v15 = vmul.f32 0.75, %v696_v56  ;;  %v384_v12 = vunpack.c.l.bf16 %v355_v2 }
  0x3e   : > { %v260_v62 = vadd.f32 %v252_v50, %v244_v57  ;;  %v276_v63 = vadd.f32 %v268_v58, %v252_v50  ;;  %v245_v10 = vmul.f32 0.25, %v212_v4  ;;  %v269_v11 = vmul.f32 0.25, %v237_v14 }
  0x3f   : > { %v385_v18 = vunpack.c.h.bf16 %v355_v2  ;;  %v386_v8 = vunpack.c.l.bf16 %v356_v6  ;;  %v387_v26 = vunpack.c.h.bf16 %v356_v6 }
  0x40   : > { %v290_v7 = vmul.f32 0.25, %v260_v62  ;;  %v291_v16 = vmul.f32 0.25, %v276_v63  ;;  %v304_v17 = vmul.f32 0.75, %v260_v62  ;;  %v305_v5 = vmul.f32 0.75, %v276_v63 }
  0x41   : > { %v261_v23 = vadd.f32 %v253_v15, %v245_v10  ;;  %v277_v24 = vadd.f32 %v269_v11, %v253_v15 }
  0x42   : > { %v336_v19 = vadd.f32 %v302_v31, %v290_v7  ;;  %v337_v20 = vadd.f32 %v303_v32, %v291_v16  ;;  %v320_v13 = vadd.f32 %v304_v17, %v288_v29  ;;  %v321_v22 = vadd.f32 %v305_v5, %v289_v30 }
  0x43   : > { %v324_v35 = vmul.f32 0.25, %v261_v23  ;;  %v325_v9 = vmul.f32 0.25, %v277_v24  ;;  %v306_v25 = vmul.f32 0.75, %v261_v23  ;;  %v307_v36 = vmul.f32 0.75, %v277_v24 }
  0x44   : > { %v412_v28 = vadd.f32 %v380_v59, %v336_v19  ;;  %v413_v33 = vadd.f32 %v381_v0, %v337_v20  ;;  %v414_v34 = vadd.f32 %v382_v1, %v320_v13  ;;  %v415_v21 = vadd.f32 %v383_v3, %v321_v22 }
  0x45   : > { %v388_v32 = vunpack.c.l.bf16 %v357_v27  ;;  %v389_v29 = vunpack.c.h.bf16 %v357_v27  ;;  %v338_v30 = vadd.f32 %v324_v35, %v304_v17  ;;  %v339_v40 = vadd.f32 %v325_v9, %v305_v5 }
  0x46   : > { %v676_v37 = vpack.c.bf16 %v413_v33, %v412_v28  ;;  %v677_v31 = vpack.c.bf16 %v415_v21, %v414_v34  ;;  %v322_v41 = vadd.f32 %v306_v25, %v290_v7  ;;  %v323_v44 = vadd.f32 %v307_v36, %v291_v16 }
  0x47   : > { %v340_v45 = vadd.f32 %v324_v35, %v306_v25  ;;  %v341_v46 = vadd.f32 %v325_v9, %v307_v36  ;;  %v416_v47 = vadd.f32 %v384_v12, %v338_v30  ;;  %v417_v48 = vadd.f32 %v385_v18, %v339_v40 }
  0x48   : > { %561 = vst [vmem:[%s788_s21 + $0x58] sm:$0xff] %v676_v37  ;;  %562 = vst [vmem:[%s788_s21 + $0x60] sm:$0xff] %v677_v31  ;;  %v418_v49 = vadd.f32 %v386_v8, %v322_v41  ;;  %v419_v38 = vadd.f32 %v387_v26, %v323_v44 }
  0x49   : > { %v420_v39 = vadd.f32 %v388_v32, %v340_v45  ;;  %v421_v42 = vadd.f32 %v389_v29, %v341_v46  ;;  %v678_v43 = vpack.c.bf16 %v417_v48, %v416_v47 }
  0x4a   : > { %v679_v50 = vpack.c.bf16 %v419_v38, %v418_v49 }
  0x4b   : > { %v680_v51 = vpack.c.bf16 %v421_v42, %v420_v39  ;;  %563 = vst [vmem:[%s788_s21 + $0x68] sm:$0xff] %v678_v43 }
  0x4c   : > { %564 = vst [vmem:[%s788_s21 + $0x70] sm:$0xff] %v679_v50 }
  0x4d   : > { %565 = vst [vmem:[%s788_s21 + $0x78] sm:$0xff] %v680_v51 }
  0x4e PF: > { %s12_s9 = sadd.s32 1, %s714_s9  }
  0x4f   : > { %p9_p4 = scmp.ge.s32.totalorder %s12_s9, 4  }
  0x51   :  { %11 = sbr.rel (!%p9_p4) target bundleno = 1 (0x1), region = 61 }

// kernel: upsample_block_forward.7
= control target key start
LH: loop header
LB: loop body
LE: loop exit
PB: predicated region body
PF: predicated region fallthrough
CT: control target
= control target key end

     0   :  { %s4608_s12 = smov 0   ;;  %s4610_s13 = smov 0   ;;  %s5444_s0 = inlined_call_operand.vmem [shape: bf16[2,16,16,128], index: 0, kind: input, shape index: {}]   ;;  %s5445_s1 = inlined_call_operand.vmem [shape: bf16[9,128,128], index: 1, kind: input, shape index: {}]   ;;  %s5446_s2 = inlined_call_operand.vmem [shape: f32[1,128], index: 2, kind: input, shape index: {}]   ;;  %s5447_s3 = inlined_call_operand.vmem [shape: bf16[2,16,16,128], index: 3, kind: output, shape index: {}]  }
   0x1   :  { %s4612_s14 = smov 0  }
   0x2 LB: > { %s25_s15 = sadd.s32 1, %s4581_s13  ;;  %p3136_p0 = scmp.ge.s32.totalorder %s4585_s14, 1  ;;  %s4585_s14 = sphi %s4612_s14, %s13_s14   ;;  %s4581_s13 = sphi %s4610_s13, %s5462_s13   ;;  %s4577_s12 = sphi %s4608_s12, %s5461_s12  }
   0x3   : > { %p27_p1 = scmp.ge.s32.totalorder %s25_s15, 2  ;;  %p168_p2 = scmp.lt.s32.totalorder %s4585_s14, 3 }
   0x5   : > { %s5464_s15 = smov (%p27_p1, %s25_s15), 0  ;;  %p169_p3 = pnand %p3136_p0, %p168_p2 }
   0x6   : > { %v4467_v0 = vld [vmem:[%s5445_s1 + $0x40] sm:$0xff] (!%p169_p3)   ;;  %v5448_v2 = vmov (!%p169_p3), 0   ;;  %v4469_v3 = vld [vmem:[%s5445_s1 + $0x48] sm:$0xff] (!%p169_p3)   ;;  %p202_p4 = scmp.lt.s32.totalorder (!%p169_p3), %s4577_s12, 1  ;;  %v4471_v5 = vld [vmem:[%s5445_s1 + $0x50] sm:$0xff] (!%p169_p3)   ;;  %vm530_vm0 = vcmask (!%p169_p3), 1047552  }
   0x7   : > { %172 = sbr.rel (%p169_p3) target bundleno = 542 (0x21e), region = 32  ;;  %v4468_v1 = vld [vmem:[%s5445_s1 + $0x100] sm:$0xff] (!%p169_p3)   ;;  %3754 = vmatprep.mubr.bf16.mxu1 (!%p169_p3), %v5448_v2  ;;  %3738 = vmatprep.subr.bf16.mxu1 (!%p169_p3), %v4467_v0  ;;  %v4470_v4 = vld [vmem:[%s5445_s1 + $0x108] sm:$0xff] (!%p169_p3)   ;;  %v4472_v6 = vld [vmem:[%s5445_s1 + $0x110] sm:$0xff] (!%p169_p3)   ;;  %vm531_vm1 = vsmask.f32 (!%p169_p3), 7424 }
   0x8   : > { %3930 = vmatprep.subr.bf16.mxu0 (!%p169_p3), %v4468_v1  ;;  %3739 = vmatpush3.bf16.msra.mxu1 (!%p169_p3), %v4467_v0  ;;  %v4473_v7 = vld [vmem:[%s5445_s1 + $0x58] sm:$0xff] (!%p169_p3)   ;;  %v4475_v9 = vld [vmem:[%s5445_s1 + $0x60] sm:$0xff] (!%p169_p3)   ;;  %v4477_v11 = vld [vmem:[%s5445_s1 + $0x68] sm:$0xff] (!%p169_p3)   ;;  %vm463_vm3 = vcmask (!%p169_p3), 1040384   ;;  %vm464_vm4 = vsmask.f32 (!%p169_p3), 256 }
   0x9   : > { %3931 = vmatpush3.bf16.msra.mxu0 (!%p169_p3), %v4468_v1  ;;  %3740 = vmatprep.subr.bf16.mxu1 (!%p169_p3), %v4469_v3  ;;  %v4474_v8 = vld [vmem:[%s5445_s1 + $0x118] sm:$0xff] (!%p169_p3)   ;;  %v4476_v10 = vld [vmem:[%s5445_s1 + $0x120] sm:$0xff] (!%p169_p3)   ;;  %v4478_v13 = vld [vmem:[%s5445_s1 + $0x128] sm:$0xff] (!%p169_p3)  }
   0xa   : > { %3932 = vmatprep.subr.bf16.mxu0 (!%p169_p3), %v4470_v4  ;;  %v4479_v14 = vld [vmem:[%s5445_s1 + $0x70] sm:$0xff] (!%p169_p3)   ;;  %v4481_v16 = vld [vmem:[%s5445_s1 + $0x78] sm:$0xff] (!%p169_p3)   ;;  %v4484_v18 = vld [vmem:[%s5445_s1] sm:$0xff] (!%p169_p3)  }
   0xb   : > { %v4480_v15 = vld [vmem:[%s5445_s1 + $0x130] sm:$0xff] (!%p169_p3)   ;;  %v4482_v17 = vld [vmem:[%s5445_s1 + $0x138] sm:$0xff] (!%p169_p3)   ;;  %v4486_v19 = vld [vmem:[%s5445_s1 + $0x140] sm:$0xff] (!%p169_p3)  }
   0xc   : > { %3741 = vmatpush3.bf16.msra.mxu1 (!%p169_p3), %v4469_v3  ;;  %v4487_v21 = vld [vmem:[%s5445_s1 + $0x148] sm:$0xff] (!%p169_p3)   ;;  %v4494_v24 = vld [vmem:[%s5445_s1 + $0x10] sm:$0xff] (!%p169_p3)   ;;  %v4492_v28 = vld [vmem:[%s5445_s1 + $0x158] sm:$0xff] (!%p169_p3)  }
   0xd   : > { %3933 = vmatpush3.bf16.msra.mxu0 (!%p169_p3), %v4470_v4  ;;  %3742 = vmatprep.subr.bf16.mxu1 (!%p169_p3), %v4471_v5  ;;  %v4489_v23 = vld [vmem:[%s5445_s1 + $0x8] sm:$0xff] (!%p169_p3)   ;;  %v4491_v25 = vld [vmem:[%s5445_s1 + $0x150] sm:$0xff] (!%p169_p3)   ;;  %v4499_v29 = vld [vmem:[%s5445_s1 + $0x18] sm:$0xff] (!%p169_p3)  }
   0xe   : > { %s5466_s12 = smov (!%p202_p4, %s4577_s12), 1  ;;  %3934 = vmatprep.subr.bf16.mxu0 %v4472_v6  ;;  %v4496_v30 = vld [vmem:[%s5445_s1 + $0x160] sm:$0xff]   ;;  %v4497_v36 = vld [vmem:[%s5445_s1 + $0x168] sm:$0xff]   ;;  %v4501_v41 = vld [vmem:[%s5445_s1 + $0x170] sm:$0xff]  }
   0xf   : > { %s3393_s5 = sshll.u32 %s5466_s12, 7  ;;  %v4504_v32 = vld [vmem:[%s5445_s1 + $0x20] sm:$0xff]   ;;  %v4508_v38 = vld [vmem:[%s5445_s1 + $0x28] sm:$0xff]   ;;  %vm4766_vm2 = vmand %vm530_vm0, %vm531_vm1 }
  0x10   : > { %3743 = vmatpush3.bf16.msra.mxu1 %v4471_v5  ;;  %s4665_s16 = scalar_lea.vmem %s5444_s0, %s3393_s5  ;;  %v4512_v44 = vld [vmem:[%s5445_s1 + $0x30] sm:$0xff]   ;;  %v4502_v50 = vld [vmem:[%s5445_s1 + $0x178] sm:$0xff]   ;;  %v4505_v57 = vld [vmem:[%s5445_s1 + $0x180] sm:$0xff]   ;;  %s5388_s4 = scalar_lea.vmem %s5447_s3, %s3393_s5 }
  0x11   : > { %3935 = vmatpush3.bf16.msra.mxu0 %v4472_v6  ;;  %3744 = vmatprep.subr.bf16.mxu1 %v4473_v7  ;;  %v4671_v12 = vld [vmem:[%s4665_s16] sm:$0xff]   ;;  %v4696_v20 = vld [vmem:[%s4665_s16 + $0x8] sm:$0xff]   ;;  %v4702_v22 = vld [vmem:[%s4665_s16 + $0x10] sm:$0xff]  }
  0x12   : > { %3936 = vmatprep.subr.bf16.mxu0 %v4474_v8  ;;  %3946 = vmatprep.mubr.bf16.mxu0 %v4671_v12  ;;  %v4718_v26 = vld [vmem:[%s4665_s16 + $0x18] sm:$0xff]   ;;  %v4721_v27 = vld [vmem:[%s4665_s16 + $0x20] sm:$0xff]   ;;  %v339_v31 = vshll.u32 %v4671_v12, 16  ;;  %v4741_v33 = vld [vmem:[%s4665_s16 + $0x28] sm:$0xff]   ;;  %v336_v35 = vshrl.u32 %v4671_v12, 16  ;;  %v346_v39 = vshll.u32 %v4696_v20, 16 }
  0x13   : > { %v4744_v34 = vld [vmem:[%s4665_s16 + $0x30] sm:$0xff]   ;;  %v353_v40 = vshll.u32 %v4702_v22, 16  ;;  %v4774_v45 = vld [vmem:[%s4665_s16 + $0x38] sm:$0xff]   ;;  %v343_v46 = vshrl.u32 %v4696_v20, 16  ;;  %v350_v48 = vshrl.u32 %v4702_v22, 16  ;;  %v360_v54 = vshll.u32 %v4718_v26, 16  ;;  %vm4946_vm5 = vmand %vm463_vm3, %vm464_vm4 }
  0x14   : > { %3745 = vmatpush3.bf16.msra.mxu1 %v4473_v7  ;;  %v482_v37 = vrot.slane %v339_v31, 1  ;;  %v484_v47 = vrot.slane %v346_v39, 1  ;;  %v4516_v52 = vld [vmem:[%s5445_s1 + $0x38] sm:$0xff]   ;;  %v367_v55 = vshll.u32 %v4721_v27, 16  ;;  %v4801_v56 = vld [vmem:[%s4665_s16 + $0x40] sm:$0xff]   ;;  %v4814_v60 = vld [vmem:[%s4665_s16 + $0x48] sm:$0xff]  }
  0x15   : > { %3937 = vmatpush3.bf16.msra.mxu0 %v4474_v8  ;;  %3746 = vmatprep.subr.bf16.mxu1 %v4475_v9  ;;  %v486_v49 = vrot.slane %v353_v40, 1  ;;  %v4811_v59 = vld [vmem:[%s5445_s1 + $0x80] sm:$0xff]   ;;  %v357_v61 = vshrl.u32 %v4718_v26, 16  ;;  %v488_v63 = vrot.slane %v360_v54, 1  ;;  %v364_v0 = vshrl.u32 %v4721_v27, 16  ;;  %v4509_v4 = vld [vmem:[%s5445_s1 + $0x188] sm:$0xff]  }
  0x16   : > { %3938 = vmatprep.subr.bf16.mxu0 %v4476_v10  ;;  %v483_v42 = vor.u32 %v482_v37, %v336_v35  ;;  %v485_v53 = vor.u32 %v484_v47, %v343_v46  ;;  %v490_v1 = vrot.slane %v367_v55, 1  ;;  %v374_v5 = vshll.u32 %v4741_v33, 16  ;;  %v4513_v8 = vld [vmem:[%s5445_s1 + $0x190] sm:$0xff]   ;;  %v4894_v37 = vld [vmem:[%s4665_s16 + $0x68] sm:$0xff]  }
  0x17   : > { %v487_v58 = vor.u32 %v486_v49, %v350_v48  ;;  %v489_v6 = vor.u32 %v488_v63, %v357_v61  ;;  %v338_v47 = vrot.slane %v336_v35, 7  ;;  %v402_v35 = vshll.u32 %v4814_v60, 16 }
  0x18   : > { %3747 = vmatpush3.bf16.msra.mxu1 %v4475_v9  ;;  %v4787_v51 = vsel %vm4766_vm2, %v483_v42, 0  ;;  %v4819_v62 = vsel %vm4766_vm2, %v485_v53, 0  ;;  %v491_v7 = vor.u32 %v490_v1, %v364_v0  ;;  %v381_v9 = vshll.u32 %v4744_v34, 16 }
  0x19   : > { %3939 = vmatpush3.bf16.msra.mxu0 %v4476_v10  ;;  %3748 = vmatprep.subr.bf16.mxu1 %v4477_v11  ;;  %v4828_v3 = vsel %vm4766_vm2, %v487_v58, 0  ;;  %v4848_v10 = vld [vmem:[%s4665_s16 + $0x50] sm:$0xff]   ;;  %v399_v63 = vshrl.u32 %v4814_v60, 16  ;;  %v345_v1 = vrot.slane %v343_v46, 7 }
  0x1a   : > { %3940 = vmatprep.subr.bf16.mxu0 %v4478_v13  ;;  %v409_v53 = vshll.u32 %v4848_v10, 16  ;;  %v4547_v46 = vld [vmem:[%s5445_s1 + $0xf0] sm:$0xff]  }
  0x1c   : > { %3749 = vmatpush3.bf16.msra.mxu1 %v4477_v11  ;;  %v371_v11 = vshrl.u32 %v4741_v33, 16 }
  0x1d   : > { %3941 = vmatpush3.bf16.msra.mxu0 %v4478_v13  ;;  %3750 = vmatprep.subr.bf16.mxu1 %v4479_v14  ;;  %v4852_v13 = vld [vmem:[%s4665_s16 + $0x58] sm:$0xff]  }
  0x1e   : > { %3942 = vmatprep.subr.bf16.mxu0 %v4480_v15 }
  0x20   : > { %3751 = vmatpush3.bf16.msra.mxu1 %v4479_v14  ;;  %v492_v14 = vrot.slane %v374_v5, 1 }
  0x21   : > { %3943 = vmatpush3.bf16.msra.mxu0 %v4480_v15  ;;  %3752 = vmatprep.subr.bf16.mxu1 %v4481_v16  ;;  %v4858_v15 = vsel %vm4766_vm2, %v489_v6, 0 }
  0x22   : > { %3944 = vmatprep.subr.bf16.mxu0 %v4482_v17 }
  0x24   : > { %3753 = vmatpush3.bf16.msra.mxu1 %v4481_v16  ;;  %v4862_v16 = vsel %vm4766_vm2, %v491_v7, 0  ;;  %v500_v7 = vrot.slane %v402_v35, 1 }
  0x25   : > { %3945 = vmatpush3.bf16.msra.mxu0 %v4482_v17  ;;  %3786 = vmatprep.subr.bf16.mxu1 %v4484_v18  ;;  %v378_v17 = vshrl.u32 %v4744_v34, 16 }
  0x26   : > { %3978 = vmatprep.subr.bf16.mxu0 %v4486_v19 }
  0x27   : > { %3755 = vmatmul.mubr.bf16.vlgmr.msra.gmra.mrb[0].mxu1 %v4671_v12 }
  0x28   : > { %3947 = vmatmul.mubr.bf16.vlgmr.msra.gmra.mrb[0].mxu0 %v4696_v20  ;;  %3787 = vmatpush3.bf16.msra.mxu1 %v4484_v18  ;;  %v494_v18 = vrot.slane %v381_v9, 1 }
  0x29   : > { %3979 = vmatpush3.bf16.msra.mxu0 %v4486_v19  ;;  %3758 = vmatprep.mubr.bf16.mxu1 %v4696_v20  ;;  %v4517_v19 = vld [vmem:[%s5445_s1 + $0x198] sm:$0xff]  }
  0x2a   : > { %3980 = vmatprep.subr.bf16.mxu0 %v4487_v21  ;;  %3950 = vmatprep.mubr.bf16.mxu0 %v4702_v22 }
  0x2b   : > { %3788 = vmatprep.subr.bf16.mxu1 %v4489_v23 }
  0x2c   : > { %3789 = vmatpush3.bf16.msra.mxu1 %v4489_v23  ;;  %v493_v23 = vor.u32 %v492_v14, %v371_v11  ;;  %v4526_v14 = vld [vmem:[%s5445_s1 + $0x1b8] sm:$0xff]  }
  0x2d   : > { %3981 = vmatpush3.bf16.msra.mxu0 %v4487_v21  ;;  %3790 = vmatprep.subr.bf16.mxu1 %v4494_v24  ;;  %v388_v21 = vshll.u32 %v4774_v45, 16 }
  0x2e   : > { %3982 = vmatprep.subr.bf16.mxu0 %v4491_v25 }
  0x2f   : > { %3759 = vmatmul.mubr.bf16.gmra.mrb[4].mxu1 %v4702_v22 }
  0x30   : > { %3951 = vmatmul.mubr.bf16.gmra.mrb[4].mxu0 %v4718_v26  ;;  %3762 = vmatprep.mubr.bf16.mxu1 %v4718_v26 }
  0x31   : > { %3983 = vmatpush3.bf16.msra.mxu0 %v4491_v25  ;;  %3954 = vmatprep.mubr.bf16.mxu0 %v4721_v27  ;;  %v395_v25 = vshll.u32 %v4801_v56, 16 }
  0x32   : > { %3984 = vmatprep.subr.bf16.mxu0 %v4492_v28  ;;  %3791 = vmatpush3.bf16.msra.mxu1 %v4494_v24  ;;  %v4878_v24 = vld [vmem:[%s4665_s16 + $0x60] sm:$0xff]  }
  0x33   : > { %3792 = vmatprep.subr.bf16.mxu1 %v4499_v29 }
  0x35   : > { %3985 = vmatpush3.bf16.msra.mxu0 %v4492_v28  ;;  %v495_v28 = vor.u32 %v494_v18, %v378_v17  ;;  %v416_v18 = vshll.u32 %v4852_v13, 16 }
  0x36   : > { %3986 = vmatprep.subr.bf16.mxu0 %v4496_v30  ;;  %3793 = vmatpush3.bf16.msra.mxu1 %v4499_v29  ;;  %v4519_v29 = vld [vmem:[%s5445_s1 + $0x1a0] sm:$0xff]  }
  0x37   : > { %3763 = vmatmul.mubr.bf16.gmra.mrb[8].mxu1 %v4721_v27  ;;  %3794 = vmatprep.subr.bf16.mxu1 %v4504_v32  ;;  %v4901_v42 = vsel %vm4766_vm2, %v495_v28, 0  ;;  %v4959_v28 = vld [vmem:[%s5445_s1 + $0x1c0] sm:$0xff]  }
  0x38   : > { %3955 = vmatmul.mubr.bf16.gmra.mrb[8].mxu0 %v4741_v33  ;;  %3766 = vmatprep.mubr.bf16.mxu1 %v4741_v33 }
  0x39   : > { %3987 = vmatpush3.bf16.msra.mxu0 %v4496_v30  ;;  %3958 = vmatprep.mubr.bf16.mxu0 %v4744_v34  ;;  %v385_v30 = vshrl.u32 %v4774_v45, 16 }
  0x3a   : > { %3988 = vmatprep.subr.bf16.mxu0 %v4497_v36  ;;  %3795 = vmatpush3.bf16.msra.mxu1 %v4504_v32  ;;  %v496_v32 = vrot.slane %v388_v21, 1 }
  0x3b   : > { %3796 = vmatprep.subr.bf16.mxu1 %v4508_v38 }
  0x3c   : > { %v497_v49 = vor.u32 %v496_v32, %v385_v30  ;;  %v348_v32 = vor.u32 %v346_v39, %v345_v1  ;;  %v504_v39 = vrot.slane %v416_v18, 1  ;;  %v420_v1 = vshrl.u32 %v4878_v24, 16 }
  0x3d   : > { %3989 = vmatpush3.bf16.msra.mxu0 %v4497_v36  ;;  %v4891_v36 = vsel %vm4766_vm2, %v493_v23, 0  ;;  %v5452_v23 = vshll.u32 %v4878_v24, 16 }
  0x3e   : > { %3990 = vmatprep.subr.bf16.mxu0 %v4501_v41  ;;  %3797 = vmatpush3.bf16.msra.mxu1 %v4508_v38  ;;  %v392_v38 = vshrl.u32 %v4801_v56, 16  ;;  %v4926_v58 = vsel %vm4766_vm2, %v497_v49, 0  ;;  %v359_v49 = vrot.slane %v357_v61, 7 }
  0x3f   : > { %3767 = vmatmul.mubr.bf16.gmra.mrb[12].mxu1 %v4744_v34  ;;  %3798 = vmatprep.subr.bf16.mxu1 %v4512_v44 }
  0x40   : > { %3959 = vmatmul.mubr.bf16.gmra.mrb[12].mxu0 %v4774_v45  ;;  %3770 = vmatprep.mubr.bf16.mxu1 %v4774_v45 }
  0x41   : > { %3991 = vmatpush3.bf16.msra.mxu0 %v4501_v41  ;;  %3994 = vmatprep.mubr.bf16.mxu0 %v4787_v51  ;;  %v498_v41 = vrot.slane %v395_v25, 1 }
  0x42   : > { %3992 = vmatprep.subr.bf16.mxu0 %v4502_v50  ;;  %3799 = vmatpush3.bf16.msra.mxu1 %v4512_v44  ;;  %v4521_v44 = vld [vmem:[%s5445_s1 + $0x1a8] sm:$0xff]  }
  0x43   : > { %3800 = vmatprep.subr.bf16.mxu1 %v4516_v52 }
  0x45   : > { %3993 = vmatpush3.bf16.msra.mxu0 %v4502_v50  ;;  %v4915_v50 = vld [vmem:[%s4665_s16 + $0x70] sm:$0xff]  }
  0x46   : > { %4026 = vmatprep.subr.bf16.mxu0 %v4505_v57  ;;  %3801 = vmatpush3.bf16.msra.mxu1 %v4516_v52  ;;  %v499_v52 = vor.u32 %v498_v41, %v392_v38  ;;  %v352_v41 = vrot.slane %v350_v48, 7 }
  0x47   : > { %3771 = vmatmul.mubr.bf16.gmra.mrb[16].mxu1 %v4801_v56  ;;  %3834 = vmatprep.subr.bf16.mxu1 %v4811_v59 }
  0x48   : > { %3995 = vmatmul.mubr.bf16.vlgmr.msra.gmra.mrb[0].mxu0 %v4819_v62  ;;  %3774 = vmatprep.mubr.bf16.mxu1 %v4814_v60  ;;  %v4934_v6 = vsel %vm4766_vm2, %v499_v52, 0  ;;  %v4985_v52 = vsel %vm4946_vm5, 0, %v348_v32  ;;  %v355_v61 = vor.u32 %v353_v40, %v352_v41 }
  0x49   : > { %4027 = vmatpush3.bf16.msra.mxu0 %v4505_v57  ;;  %3998 = vmatprep.mubr.bf16.mxu0 %v4828_v3  ;;  %v4523_v57 = vld [vmem:[%s5445_s1 + $0x1b0] sm:$0xff]  }
  0x4a   : > { %4028 = vmatprep.subr.bf16.mxu0 %v4509_v4  ;;  %v5018_v32 = vsel %vm4946_vm5, 0, %v355_v61 }
  0x4d   : > { %4029 = vmatpush3.bf16.msra.mxu0 %v4509_v4  ;;  %v406_v4 = vshrl.u32 %v4848_v10, 16 }
  0x4e   : > { %4030 = vmatprep.subr.bf16.mxu0 %v4513_v8 }
  0x4f   : > { %3775 = vmatmul.mubr.bf16.gmra.mrb[20].mxu1 %v4848_v10 }
  0x50   : > { %3999 = vmatmul.mubr.bf16.gmra.mrb[4].mxu0 %v4858_v15  ;;  %3778 = vmatprep.mubr.bf16.mxu1 %v4852_v13 }
  0x51   : > { %4002 = vmatprep.mubr.bf16.mxu0 %v4862_v16  ;;  %4031 = vmatpush3.bf16.msra.mxu0 %v4513_v8  ;;  %v502_v8 = vrot.slane %v409_v53, 1 }
  0x52   : > { %4032 = vmatprep.subr.bf16.mxu0 %v4517_v19 }
  0x53   : > { %v503_v12 = vor.u32 %v502_v8, %v406_v4 }
  0x55   : > { %4033 = vmatpush3.bf16.msra.mxu0 %v4517_v19  ;;  %v341_v19 = vor.u32 %v339_v31, %v338_v47  ;;  %v413_v47 = vshrl.u32 %v4852_v13, 16  ;;  %v4989_v48 = vsel %vm4766_vm2, %v503_v12, 0  ;;  %v373_v12 = vrot.slane %v371_v11, 7 }
  0x56   : > { %4034 = vmatprep.subr.bf16.mxu0 %v4519_v29  ;;  %v434_v11 = vshrl.u32 %v4915_v50, 16 }
  0x57   : > { %3779 = vmatmul.mubr.bf16.gmra.mrb[24].mxu1 %v4878_v24  ;;  %v4970_v31 = vsel %vm4946_vm5, 0, %v341_v19  ;;  %v505_v8 = vor.u32 %v504_v39, %v413_v47  ;;  %v4522_v19 = vld [vmem:[%s5445_s1 + $0x90] sm:$0xff]  }
  0x58   : > { %4003 = vmatmul.mubr.bf16.gmra.mrb[8].mxu0 %v4891_v36  ;;  %3782 = vmatprep.mubr.bf16.mxu1 %v4894_v37 }
  0x59   : > { %4006 = vmatprep.mubr.bf16.mxu0 %v4901_v42  ;;  %4035 = vmatpush3.bf16.msra.mxu0 %v4519_v29  ;;  %v501_v29 = vor.u32 %v500_v7, %v399_v63  ;;  %v506_v7 = vrot.slane %v5452_v23, 1  ;;  %v5026_v41 = vsel %vm4766_vm2, %v505_v8, 0  ;;  %v4524_v8 = vld [vmem:[%s5445_s1 + $0x98] sm:$0xff]   ;;  %v4527_v23 = vld [vmem:[%s5445_s1 + $0xa0] sm:$0xff]  }
  0x5a   : > { %4036 = vmatprep.subr.bf16.mxu0 %v4521_v44 }
  0x5b   : > { %v507_v40 = vor.u32 %v506_v7, %v420_v1  ;;  %v5036_v7 = vld [vmem:[%s4665_s16 + $0x78] sm:$0xff]  }
  0x5d   : > { %4037 = vmatpush3.bf16.msra.mxu0 %v4521_v44  ;;  %v4976_v44 = vsel %vm4766_vm2, %v501_v29, 0  ;;  %v5450_v29 = vshll.u32 %v4915_v50, 16 }
  0x5e   : > { %4038 = vmatprep.subr.bf16.mxu0 %v4523_v57 }
  0x5f   : > { %3783 = vmatmul.mubr.bf16.gmra.mrb[28].mxu1 %v4915_v50  ;;  %v510_v61 = vrot.slane %v5450_v29, 1  ;;  %v444_v29 = vshll.u32 %v5036_v7, 16 }
  0x60   : > { %4007 = vmatmul.mubr.bf16.gmra.mrb[12].mxu0 %v4926_v58  ;;  %3802 = vmatprep.mubr.bf16.mxu1 %v5448_v2 }
  0x61   : > { %4010 = vmatprep.mubr.bf16.mxu0 %v4934_v6  ;;  %4039 = vmatpush3.bf16.msra.mxu0 %v4523_v57  ;;  %v4520_v57 = vld [vmem:[%s5445_s1 + $0x88] sm:$0xff]  }
  0x62   : > { %4040 = vmatprep.subr.bf16.mxu0 %v4526_v14 }
  0x65   : > { %4041 = vmatpush3.bf16.msra.mxu0 %v4526_v14  ;;  %v362_v14 = vor.u32 %v360_v54, %v359_v49  ;;  %v366_v54 = vrot.slane %v364_v0, 7  ;;  %v427_v49 = vshrl.u32 %v4894_v37, 16  ;;  %v5040_v0 = vsel %vm4766_vm2, %v507_v40, 0 }
  0x66   : > { %4074 = vmatprep.subr.bf16.mxu0 %v4959_v28  ;;  %v376_v40 = vor.u32 %v374_v5, %v373_v12  ;;  %v441_v12 = vshrl.u32 %v5036_v7, 16 }
  0x67   : > { %3803 = vmatmul.mubr.bf16.vlgmr.msra.gmra.mrb[0].mxu1 %v4970_v31  ;;  %v5030_v39 = vsel %vm4946_vm5, 0, %v362_v14  ;;  %v369_v14 = vor.u32 %v367_v55, %v366_v54 }
  0x68   : > { %4011 = vmatmul.mubr.bf16.gmra.mrb[16].mxu0 %v4976_v44  ;;  %3835 = vmatpush3.bf16.msra.mxu1 %v4811_v59  ;;  %v5451_v59 = vshll.u32 %v4894_v37, 16  ;;  %v5070_v5 = vsel %vm4946_vm5, 0, %v376_v40 }
  0x69   : > { %3806 = vmatprep.mubr.bf16.mxu1 %v4985_v52  ;;  %4014 = vmatprep.mubr.bf16.mxu0 %v4989_v48  ;;  %v5066_v55 = vsel %vm4946_vm5, 0, %v369_v14 }
  0x6a   : > { %3836 = vmatprep.subr.bf16.mxu1 %v4520_v57 }
  0x6c   : > { %3837 = vmatpush3.bf16.msra.mxu1 %v4520_v57  ;;  %v508_v57 = vrot.slane %v5451_v59, 1  ;;  %v511_v59 = vor.u32 %v510_v61, %v434_v11  ;;  %v387_v61 = vrot.slane %v385_v30, 7 }
  0x6d   : > { %3838 = vmatprep.subr.bf16.mxu1 %v4522_v19 }
  0x6e   : > { %v509_v2 = vor.u32 %v508_v57, %v427_v49  ;;  %v512_v57 = vrot.slane %v444_v29, 1  ;;  %v5085_v14 = vsel %vm4766_vm2, %v511_v59, 0  ;;  %v390_v59 = vor.u32 %v388_v21, %v387_v61 }
  0x6f   : > { %3807 = vmatmul.mubr.bf16.gmra.mrb[4].mxu1 %v5018_v32 }
  0x70   : > { %4015 = vmatmul.mubr.bf16.gmra.mrb[20].mxu0 %v5026_v41  ;;  %3810 = vmatprep.mubr.bf16.mxu1 %v5030_v39  ;;  %v5076_v54 = vsel %vm4766_vm2, %v509_v2, 0  ;;  %v513_v30 = vor.u32 %v512_v57, %v441_v12  ;;  %v5115_v21 = vsel %vm4946_vm5, 0, %v390_v59  ;;  %v4533_v57 = vld [vmem:[%s5445_s1 + $0xb8] sm:$0xff]  }
  0x71   : > { %4018 = vmatprep.mubr.bf16.mxu0 %v5040_v0  ;;  %3839 = vmatpush3.bf16.msra.mxu1 %v4522_v19  ;;  %v380_v19 = vrot.slane %v378_v17, 7  ;;  %v4529_v17 = vld [vmem:[%s5445_s1 + $0xa8] sm:$0xff]  }
  0x72   : > { %3840 = vmatprep.subr.bf16.mxu1 %v4524_v8 }
  0x73   : > { %v383_v2 = vor.u32 %v381_v9, %v380_v19  ;;  %v394_v9 = vrot.slane %v392_v38, 7  ;;  %v5111_v19 = vsel %vm4766_vm2, %v513_v30, 0  ;;  %v4532_v30 = vld [vmem:[%s5445_s1 + $0x1d0] sm:$0xff]  }
  0x75   : > { %3841 = vmatpush3.bf16.msra.mxu1 %v4524_v8  ;;  %v4531_v8 = vld [vmem:[%s5445_s1 + $0xb0] sm:$0xff]   ;;  %v5105_v40 = vsel %vm4946_vm5, 0, %v383_v2  ;;  %v397_v43 = vor.u32 %v395_v25, %v394_v9  ;;  %v4530_v2 = vld [vmem:[%s5445_s1 + $0x1c8] sm:$0xff]  }
  0x76   : > { %3842 = vmatprep.subr.bf16.mxu1 %v4527_v23 }
  0x77   : > { %3811 = vmatmul.mubr.bf16.gmra.mrb[8].mxu1 %v5066_v55  ;;  %v5135_v61 = vsel %vm4946_vm5, 0, %v397_v43 }
  0x78   : > { %4019 = vmatmul.mubr.bf16.gmra.mrb[24].mxu0 %v5076_v54  ;;  %3814 = vmatprep.mubr.bf16.mxu1 %v5070_v5 }
  0x79   : > { %4022 = vmatprep.mubr.bf16.mxu0 %v5085_v14  ;;  %3843 = vmatpush3.bf16.msra.mxu1 %v4527_v23  ;;  %v401_v23 = vrot.slane %v399_v63, 7  ;;  %v4535_v63 = vld [vmem:[%s5445_s1 + $0xc0] sm:$0xff]  }
  0x7a   : > { %3844 = vmatprep.subr.bf16.mxu1 %v4529_v17 }
  0x7b   : > { %v404_v38 = vor.u32 %v402_v35, %v401_v23  ;;  %v415_v35 = vrot.slane %v413_v47, 7  ;;  %v5458_v23 = vshll.u32 %v4894_v37, 16 }
  0x7d   : > { %3845 = vmatpush3.bf16.msra.mxu1 %v4529_v17  ;;  %v408_v17 = vrot.slane %v406_v4, 7  ;;  %v5141_v25 = vsel %vm4946_vm5, 0, %v404_v38  ;;  %v418_v47 = vor.u32 %v416_v18, %v415_v35  ;;  %v429_v18 = vrot.slane %v427_v49, 7  ;;  %v4538_v35 = vld [vmem:[%s5445_s1 + $0x1e8] sm:$0xff]  }
  0x7e   : > { %3846 = vmatprep.subr.bf16.mxu1 %v4531_v8  ;;  %v436_v38 = vrot.slane %v434_v11, 7  ;;  %v4540_v11 = vld [vmem:[%s5445_s1 + $0x1f0] sm:$0xff]  }
  0x7f   : > { %3815 = vmatmul.mubr.bf16.gmra.mrb[12].mxu1 %v5105_v40  ;;  %v411_v4 = vor.u32 %v409_v53, %v408_v17  ;;  %v5168_v53 = vsel %vm4946_vm5, 0, %v418_v47  ;;  %v432_v49 = vor.u32 %v5458_v23, %v429_v18  ;;  %v4544_v18 = vld [vmem:[%s5445_s1 + $0x200] sm:$0xff]  }
  0x80   : > { %4023 = vmatmul.mubr.bf16.gmra.mrb[28].mxu0 %v5111_v19  ;;  %3818 = vmatprep.mubr.bf16.mxu1 %v5115_v21 }
  0x81   : > { %4042 = vmatprep.mubr.bf16.mxu0 %v4985_v52  ;;  %3847 = vmatpush3.bf16.msra.mxu1 %v4531_v8  ;;  %v5162_v59 = vsel %vm4946_vm5, 0, %v411_v4  ;;  %v422_v8 = vrot.slane %v420_v1, 7  ;;  %v5457_v1 = vshll.u32 %v4878_v24, 16  ;;  %v5194_v17 = vsel %vm4946_vm5, 0, %v432_v49  ;;  %v4545_v49 = vld [vmem:[%s5445_s1 + $0xe8] sm:$0xff]  }
  0x82   : > { %3848 = vmatprep.subr.bf16.mxu1 %v4533_v57 }
  0x83   : > { %v425_v9 = vor.u32 %v5457_v1, %v422_v8  ;;  %v5460_v8 = vmov 0   ;;  %v4539_v1 = vld [vmem:[%s5445_s1 + $0xd0] sm:$0xff]  }
  0x85   : > { %3849 = vmatpush3.bf16.msra.mxu1 %v4533_v57  ;;  %v4536_v57 = vld [vmem:[%s5445_s1 + $0x1e0] sm:$0xff]   ;;  %v5188_v43 = vsel %vm4946_vm5, 0, %v425_v9  ;;  %v443_v9 = vrot.slane %v441_v12, 7 }
  0x86   : > { %3882 = vmatprep.subr.bf16.mxu1 %v4535_v63  ;;  %v4543_v12 = vld [vmem:[%s5445_s1 + $0xe0] sm:$0xff]  }
  0x87   : > { %3819 = vmatmul.mubr.bf16.gmra.mrb[16].mxu1 %v5135_v61 }
  0x88   : > { %4043 = vmatmul.mubr.bf16.vlgmr.msra.gmra.mrb[0].mxu0 %v5018_v32  ;;  %3822 = vmatprep.mubr.bf16.mxu1 %v5141_v25 }
  0x89   : > { %4075 = vmatpush3.bf16.msra.mxu0 %v4959_v28  ;;  %4046 = vmatprep.mubr.bf16.mxu0 %v5030_v39  ;;  %v4534_v28 = vld [vmem:[%s5445_s1 + $0x1d8] sm:$0xff]  }
  0x8a   : > { %4076 = vmatprep.subr.bf16.mxu0 %v4530_v2 }
  0x8d   : > { %4077 = vmatpush3.bf16.msra.mxu0 %v4530_v2  ;;  %v5459_v2 = vshll.u32 %v4915_v50, 16 }
  0x8e   : > { %4078 = vmatprep.subr.bf16.mxu0 %v4532_v30 }
  0x8f   : > { %3823 = vmatmul.mubr.bf16.gmra.mrb[20].mxu1 %v5162_v59  ;;  %v439_v4 = vor.u32 %v5459_v2, %v436_v38  ;;  %v4555_v38 = vld [vmem:[%s5445_s1 + $0x100] sm:$0xff]  }
  0x90   : > { %4047 = vmatmul.mubr.bf16.gmra.mrb[4].mxu0 %v5066_v55  ;;  %3826 = vmatprep.mubr.bf16.mxu1 %v5168_v53 }
  0x91   : > { %4050 = vmatprep.mubr.bf16.mxu0 %v5070_v5  ;;  %4079 = vmatpush3.bf16.msra.mxu0 %v4532_v30  ;;  %v5210_v47 = vsel %vm4946_vm5, 0, %v439_v4  ;;  %v4542_v30 = vld [vmem:[%s5445_s1 + $0x1f8] sm:$0xff]  }
  0x92   : > { %4080 = vmatprep.subr.bf16.mxu0 %v4534_v28 }
  0x95   : > { %4081 = vmatpush3.bf16.msra.mxu0 %v4534_v28  ;;  %v4537_v28 = vld [vmem:[%s5445_s1 + $0xc8] sm:$0xff]  }
  0x96   : > { %4082 = vmatprep.subr.bf16.mxu0 %v4536_v57 }
  0x97   : > { %3827 = vmatmul.mubr.bf16.gmra.mrb[24].mxu1 %v5188_v43 }
  0x98   : > { %4051 = vmatmul.mubr.bf16.gmra.mrb[8].mxu0 %v5105_v40  ;;  %3830 = vmatprep.mubr.bf16.mxu1 %v5194_v17 }
  0x99   : > { %4054 = vmatprep.mubr.bf16.mxu0 %v5115_v21  ;;  %4083 = vmatpush3.bf16.msra.mxu0 %v4536_v57  ;;  %v4546_v57 = vld [vmem:[%s5445_s1 + $0x208] sm:$0xff]  }
  0x9a   : > { %4084 = vmatprep.subr.bf16.mxu0 %v4538_v35 }
  0x9d   : > { %4085 = vmatpush3.bf16.msra.mxu0 %v4538_v35  ;;  %v4550_v35 = vld [vmem:[%s5445_s1 + $0x218] sm:$0xff]  }
  0x9e   : > { %4086 = vmatprep.subr.bf16.mxu0 %v4540_v11 }
  0x9f   : > { %3831 = vmatmul.mubr.bf16.gmra.mrb[28].mxu1 %v5210_v47 }
  0xa0   : > { %4055 = vmatmul.mubr.bf16.gmra.mrb[12].mxu0 %v5135_v61  ;;  %3850 = vmatprep.mubr.bf16.mxu1 %v5460_v8 }
  0xa1   : > { %4058 = vmatprep.mubr.bf16.mxu0 %v5141_v25  ;;  %4087 = vmatpush3.bf16.msra.mxu0 %v4540_v11 }
  0xa2   : > { %4088 = vmatprep.subr.bf16.mxu0 %v4542_v30 }
  0xa5   : > { %4089 = vmatpush3.bf16.msra.mxu0 %v4542_v30 }
  0xa6   : > { %4122 = vmatprep.subr.bf16.mxu0 %v4544_v18 }
  0xa7   : > { %3851 = vmatmul.mubr.bf16.vlgmr.msra.gmra.mrb[0].mxu1 %v4787_v51  ;;  %v4541_v51 = vld [vmem:[%s5445_s1 + $0xd8] sm:$0xff]  }
  0xa8   : > { %4059 = vmatmul.mubr.bf16.gmra.mrb[16].mxu0 %v5162_v59  ;;  %3883 = vmatpush3.bf16.msra.mxu1 %v4535_v63  ;;  %v446_v63 = vor.u32 %v444_v29, %v443_v9  ;;  %v4549_v29 = vld [vmem:[%s5445_s1 + $0xf8] sm:$0xff]  }
  0xa9   : > { %3854 = vmatprep.mubr.bf16.mxu1 %v4819_v62  ;;  %4062 = vmatprep.mubr.bf16.mxu0 %v5168_v53 }
  0xaa   : > { %3884 = vmatprep.subr.bf16.mxu1 %v4537_v28  ;;  %v5248_v23 = vsel %vm4946_vm5, 0, %v446_v63 }
  0xac   : > { %3885 = vmatpush3.bf16.msra.mxu1 %v4537_v28 }
  0xad   : > { %3886 = vmatprep.subr.bf16.mxu1 %v4539_v1 }
  0xaf   : > { %3855 = vmatmul.mubr.bf16.gmra.mrb[4].mxu1 %v4828_v3 }
  0xb0   : > { %4063 = vmatmul.mubr.bf16.gmra.mrb[20].mxu0 %v5188_v43  ;;  %3858 = vmatprep.mubr.bf16.mxu1 %v4858_v15 }
  0xb1   : > { %4066 = vmatprep.mubr.bf16.mxu0 %v5194_v17  ;;  %3887 = vmatpush3.bf16.msra.mxu1 %v4539_v1 }
  0xb2   : > { %3888 = vmatprep.subr.bf16.mxu1 %v4541_v51 }
  0xb5   : > { %3889 = vmatpush3.bf16.msra.mxu1 %v4541_v51 }
  0xb6   : > { %3890 = vmatprep.subr.bf16.mxu1 %v4543_v12 }
  0xb7   : > { %3859 = vmatmul.mubr.bf16.gmra.mrb[8].mxu1 %v4862_v16 }
  0xb8   : > { %4067 = vmatmul.mubr.bf16.gmra.mrb[24].mxu0 %v5210_v47  ;;  %3862 = vmatprep.mubr.bf16.mxu1 %v4891_v36 }
  0xb9   : > { %4070 = vmatprep.mubr.bf16.mxu0 %v5248_v23  ;;  %3891 = vmatpush3.bf16.msra.mxu1 %v4543_v12 }
  0xba   : > { %3892 = vmatprep.subr.bf16.mxu1 %v4545_v49 }
  0xbd   : > { %3893 = vmatpush3.bf16.msra.mxu1 %v4545_v49 }
  0xbe   : > { %3894 = vmatprep.subr.bf16.mxu1 %v4547_v46 }
  0xbf   : > { %3863 = vmatmul.mubr.bf16.gmra.mrb[12].mxu1 %v4901_v42 }
  0xc0   : > { %4071 = vmatmul.mubr.bf16.gmra.mrb[28].mxu0 %v5460_v8  ;;  %3866 = vmatprep.mubr.bf16.mxu1 %v4926_v58 }
  0xc1   : > { %4090 = vmatprep.mubr.bf16.mxu0 %v4696_v20  ;;  %3895 = vmatpush3.bf16.msra.mxu1 %v4547_v46  ;;  %v4548_v20 = vld [vmem:[%s5445_s1 + $0x210] sm:$0xff]  }
  0xc2   : > { %3896 = vmatprep.subr.bf16.mxu1 %v4549_v29 }
  0xc5   : > { %3897 = vmatpush3.bf16.msra.mxu1 %v4549_v29 }
  0xc6   : > { %4170 = vmatprep.subr.bf16.mxu1 %v4555_v38 }
  0xc7   : > { %3867 = vmatmul.mubr.bf16.gmra.mrb[16].mxu1 %v4934_v6 }
  0xc8   : > { %4091 = vmatmul.mubr.bf16.vlgmr.msra.gmra.mrb[0].mxu0 %v4702_v22  ;;  %3870 = vmatprep.mubr.bf16.mxu1 %v4976_v44  ;;  %v4551_v22 = vld [vmem:[%s5445_s1 + $0x220] sm:$0xff]  }
  0xc9   : > { %4123 = vmatpush3.bf16.msra.mxu0 %v4544_v18  ;;  %4094 = vmatprep.mubr.bf16.mxu0 %v4718_v26  ;;  %v4552_v26 = vld [vmem:[%s5445_s1 + $0x228] sm:$0xff]  }
  0xca   : > { %4124 = vmatprep.subr.bf16.mxu0 %v4546_v57 }
  0xcd   : > { %4125 = vmatpush3.bf16.msra.mxu0 %v4546_v57 }
  0xce   : > { %4126 = vmatprep.subr.bf16.mxu0 %v4548_v20 }
  0xcf   : > { %3871 = vmatmul.mubr.bf16.gmra.mrb[20].mxu1 %v4989_v48 }
  0xd0   : > { %4095 = vmatmul.mubr.bf16.gmra.mrb[4].mxu0 %v4721_v27  ;;  %3874 = vmatprep.mubr.bf16.mxu1 %v5026_v41  ;;  %v4553_v27 = vld [vmem:[%s5445_s1 + $0x230] sm:$0xff]  }
  0xd1   : > { %4098 = vmatprep.mubr.bf16.mxu0 %v4741_v33  ;;  %4127 = vmatpush3.bf16.msra.mxu0 %v4548_v20  ;;  %v4554_v33 = vld [vmem:[%s5445_s1 + $0x238] sm:$0xff]  }
  0xd2   : > { %4128 = vmatprep.subr.bf16.mxu0 %v4550_v35 }
  0xd5   : > { %4129 = vmatpush3.bf16.msra.mxu0 %v4550_v35 }
  0xd6   : > { %4130 = vmatprep.subr.bf16.mxu0 %v4551_v22 }
  0xd7   : > { %3875 = vmatmul.mubr.bf16.gmra.mrb[24].mxu1 %v5040_v0 }
  0xd8   : > { %4099 = vmatmul.mubr.bf16.gmra.mrb[8].mxu0 %v4744_v34  ;;  %3878 = vmatprep.mubr.bf16.mxu1 %v5076_v54  ;;  %v4556_v34 = vld [vmem:[%s5445_s1 + $0x108] sm:$0xff]  }
  0xd9   : > { %4102 = vmatprep.mubr.bf16.mxu0 %v4774_v45  ;;  %4131 = vmatpush3.bf16.msra.mxu0 %v4551_v22  ;;  %v4557_v45 = vld [vmem:[%s5445_s1 + $0x110] sm:$0xff]  }
  0xda   : > { %4132 = vmatprep.subr.bf16.mxu0 %v4552_v26 }
  0xdd   : > { %4133 = vmatpush3.bf16.msra.mxu0 %v4552_v26 }
  0xde   : > { %4134 = vmatprep.subr.bf16.mxu0 %v4553_v27 }
  0xdf   : > { %3879 = vmatmul.mubr.bf16.gmra.mrb[28].mxu1 %v5085_v14 }
  0xe0   : > { %4103 = vmatmul.mubr.bf16.gmra.mrb[12].mxu0 %v4801_v56  ;;  %3898 = vmatprep.mubr.bf16.mxu1 %v4970_v31  ;;  %v4558_v31 = vld [vmem:[%s5445_s1 + $0x118] sm:$0xff]  }
  0xe1   : > { %4106 = vmatprep.mubr.bf16.mxu0 %v4814_v60  ;;  %4135 = vmatpush3.bf16.msra.mxu0 %v4553_v27 }
  0xe2   : > { %4136 = vmatprep.subr.bf16.mxu0 %v4554_v33 }
  0xe5   : > { %4137 = vmatpush3.bf16.msra.mxu0 %v4554_v33 }
  0xe7   : > { %3899 = vmatmul.mubr.bf16.vlgmr.msra.gmra.mrb[0].mxu1 %v4985_v52  ;;  %v4559_v52 = vld [vmem:[%s5445_s1 + $0x120] sm:$0xff]  }
  0xe8   : > { %4107 = vmatmul.mubr.bf16.gmra.mrb[16].mxu0 %v4848_v10  ;;  %4178 = vmatpush3.bf16.msra.mxu1 %v4555_v38 }
  0xe9   : > { %3902 = vmatprep.mubr.bf16.mxu1 %v5018_v32  ;;  %4110 = vmatprep.mubr.bf16.mxu0 %v4852_v13  ;;  %v4560_v32 = vld [vmem:[%s5445_s1 + $0x128] sm:$0xff]  }
  0xea   : > { %4171 = vmatprep.subr.bf16.mxu1 %v4556_v34 }
  0xec   : > { %4179 = vmatpush3.bf16.msra.mxu1 %v4556_v34 }
  0xed   : > { %4172 = vmatprep.subr.bf16.mxu1 %v4557_v45 }
  0xef   : > { %3903 = vmatmul.mubr.bf16.gmra.mrb[4].mxu1 %v5030_v39  ;;  %v3325_v39 = vcombine.low %v5460_v8, %v5460_v8 }
  0xf0   : > { %4111 = vmatmul.mubr.bf16.gmra.mrb[20].mxu0 %v4878_v24  ;;  %3906 = vmatprep.mubr.bf16.mxu1 %v5066_v55  ;;  %v4561_v55 = vld [vmem:[%s5445_s1 + $0x130] sm:$0xff]  }
  0xf1   : > { %4114 = vmatprep.mubr.bf16.mxu0 %v4894_v37  ;;  %4180 = vmatpush3.bf16.msra.mxu1 %v4557_v45 }
  0xf2   : > { %4173 = vmatprep.subr.bf16.mxu1 %v4558_v31 }
  0xf5   : > { %4181 = vmatpush3.bf16.msra.mxu1 %v4558_v31 }
  0xf6   : > { %4174 = vmatprep.subr.bf16.mxu1 %v4559_v52 }
  0xf7   : > { %3907 = vmatmul.mubr.bf16.gmra.mrb[8].mxu1 %v5070_v5  ;;  %v4562_v5 = vld [vmem:[%s5445_s1 + $0x138] sm:$0xff]  }
  0xf8   : > { %4115 = vmatmul.mubr.bf16.gmra.mrb[24].mxu0 %v4915_v50  ;;  %3910 = vmatprep.mubr.bf16.mxu1 %v5105_v40 }
  0xf9   : > { %4118 = vmatprep.mubr.bf16.mxu0 %v5036_v7  ;;  %4182 = vmatpush3.bf16.msra.mxu1 %v4559_v52 }
  0xfa   : > { %4175 = vmatprep.subr.bf16.mxu1 %v4560_v32 }
  0xfd   : > { %4183 = vmatpush3.bf16.msra.mxu1 %v4560_v32 }
  0xfe   : > { %4176 = vmatprep.subr.bf16.mxu1 %v4561_v55 }
  0xff   : > { %3911 = vmatmul.mubr.bf16.gmra.mrb[12].mxu1 %v5115_v21 }
 0x100   : > { %4119 = vmatmul.mubr.bf16.gmra.mrb[28].mxu0 %v3325_v39  ;;  %3914 = vmatprep.mubr.bf16.mxu1 %v5135_v61 }
 0x101   : > { %4138 = vmatprep.mubr.bf16.mxu0 %v4819_v62  ;;  %4184 = vmatpush3.bf16.msra.mxu1 %v4561_v55 }
 0x102   : > { %4177 = vmatprep.subr.bf16.mxu1 %v4562_v5 }
 0x105   : > { %4185 = vmatpush3.bf16.msra.mxu1 %v4562_v5 }
 0x107   : > { %3915 = vmatmul.mubr.bf16.gmra.mrb[16].mxu1 %v5141_v25 }
 0x108   : > { %4139 = vmatmul.mubr.bf16.vlgmr.msra.gmra.mrb[0].mxu0 %v4828_v3  ;;  %3918 = vmatprep.mubr.bf16.mxu1 %v5162_v59 }
 0x109   : > { %4142 = vmatprep.mubr.bf16.mxu0 %v4858_v15 }
 0x10f   : > { %3919 = vmatmul.mubr.bf16.gmra.mrb[20].mxu1 %v5168_v53 }
 0x110   : > { %4143 = vmatmul.mubr.bf16.gmra.mrb[4].mxu0 %v4862_v16  ;;  %3922 = vmatprep.mubr.bf16.mxu1 %v5188_v43 }
 0x111   : > { %4146 = vmatprep.mubr.bf16.mxu0 %v4891_v36 }
 0x117   : > { %3923 = vmatmul.mubr.bf16.gmra.mrb[24].mxu1 %v5194_v17 }
 0x118   : > { %4147 = vmatmul.mubr.bf16.gmra.mrb[8].mxu0 %v4901_v42  ;;  %3926 = vmatprep.mubr.bf16.mxu1 %v5210_v47 }
 0x119   : > { %4150 = vmatprep.mubr.bf16.mxu0 %v4926_v58 }
 0x11f   : > { %3927 = vmatmul.mubr.bf16.gmra.mrb[28].mxu1 %v5248_v23 }
 0x120   : > { %4151 = vmatmul.mubr.bf16.gmra.mrb[12].mxu0 %v4934_v6  ;;  %3962 = vmatprep.mubr.bf16.mxu1 %v4801_v56 }
 0x121   : > { %4154 = vmatprep.mubr.bf16.mxu0 %v4976_v44 }
 0x127   : > { %3963 = vmatmul.mubr.bf16.vlgmr.msra.gmra.mrb[16].mxu1 %v4814_v60 }
 0x128   : > { %4155 = vmatmul.mubr.bf16.gmra.mrb[16].mxu0 %v4989_v48  ;;  %3966 = vmatprep.mubr.bf16.mxu1 %v4848_v10 }
 0x129   : > { %4158 = vmatprep.mubr.bf16.mxu0 %v5026_v41 }
 0x12f   : > { %3967 = vmatmul.mubr.bf16.gmra.mrb[20].mxu1 %v4852_v13 }
 0x130   : > { %4159 = vmatmul.mubr.bf16.gmra.mrb[20].mxu0 %v5040_v0  ;;  %3970 = vmatprep.mubr.bf16.mxu1 %v4878_v24  ;;  %v5378_v0 = vld [vmem:[%s5446_s2] ss:$0 sm:$0xff] }
 0x131   : > { %4162 = vmatprep.mubr.bf16.mxu0 %v5076_v54 }
 0x137   : > { %3971 = vmatmul.mubr.bf16.gmra.mrb[24].mxu1 %v4894_v37 }
 0x138   : > { %4163 = vmatmul.mubr.bf16.gmra.mrb[24].mxu0 %v5085_v14  ;;  %3974 = vmatprep.mubr.bf16.mxu1 %v4915_v50 }
 0x139   : > { %4166 = vmatprep.mubr.bf16.mxu0 %v5111_v19 }
 0x13f   : > { %3975 = vmatmul.mubr.bf16.gmra.mrb[28].mxu1 %v5036_v7 }
 0x140   : > { %4167 = vmatmul.mubr.bf16.gmra.mrb[28].mxu0 %v5460_v8 }
 0x1ba   : > { %v3900_v56 = vpop.f32.mrb[0].mxu1 }
 0x1bb   : > { %v1372_v60 = vpop.f32.mrb[1].mxu1 }
 0x1bc   : > { %v3901_v62 = vpop.f32.mrb[2].mxu1 }
 0x1bd   : > { %v1375_v3 = vpop.f32.mrb[3].mxu1 }
 0x1c2   : > { %v3904_v10 = vpop.f32.mrb[4].mxu1 }
 0x1c3   : > { %v1388_v13 = vpop.f32.mrb[5].mxu1 }
 0x1c4   : > { %v3905_v15 = vpop.f32.mrb[6].mxu1 }
 0x1c5   : > { %v1391_v16 = vpop.f32.mrb[7].mxu1 }
 0x1ca   : > { %v3908_v24 = vpop.f32.mrb[8].mxu1 }
 0x1cb   : > { %v1404_v36 = vpop.f32.mrb[9].mxu1 }
 0x1cc   : > { %v3909_v37 = vpop.f32.mrb[10].mxu1 }
 0x1cd   : > { %v1407_v42 = vpop.f32.mrb[11].mxu1 }
 0x1d2   : > { %v3912_v58 = vpop.f32.mrb[12].mxu1 }
 0x1d3   : > { %v1420_v50 = vpop.f32.mrb[13].mxu1 }
 0x1d4   : > { %v3913_v6 = vpop.f32.mrb[14].mxu1 }
 0x1d5   : > { %v1423_v44 = vpop.f32.mrb[15].mxu1 }
 0x1db   : > { %v4140_v48 = vpop.f32.mrb[0].mxu0 }
 0x1dc   : > { %v4186_v41 = vadd.f32 %v4140_v48, %v3900_v56  ;;  %v2667_v7 = vpop.f32.mrb[1].mxu0 }
 0x1dd   : > { %v4187_v54 = vadd.f32 %v2667_v7, %v1372_v60  ;;  %v4141_v14 = vpop.f32.mrb[2].mxu0 }
 0x1de   : > { %v4188_v40 = vadd.f32 %v4141_v14, %v3901_v62  ;;  %v2670_v19 = vpop.f32.mrb[3].mxu0  ;;  %v2835_v61 = vadd.f32 %v4186_v41, %v5378_v0 }
 0x1df   : > { %v4189_v21 = vadd.f32 %v2670_v19, %v1375_v3  ;;  %v2833_v59 = vadd.f32 %v4187_v54, %v5378_v0 }
 0x1e0   : > { %v2836_v25 = vadd.f32 %v4188_v40, %v5378_v0 }
 0x1e1   : > { %v2834_v53 = vadd.f32 %v4189_v21, %v5378_v0 }
 0x1e2   : > { %v3435_v43 = vpack.c.bf16 %v2836_v25, %v2835_v61 }
 0x1e3   : > { %v3430_v17 = vpack.c.bf16 %v2834_v53, %v2833_v59  ;;  %v4144_v2 = vpop.f32.mrb[4].mxu0 }
 0x1e4   : > { %3507 = vst [vmem:[%s5388_s4 + $0x8] sm:$0xff] %v3435_v43   ;;  %v4190_v4 = vadd.f32 %v4144_v2, %v3904_v10  ;;  %v2683_v11 = vpop.f32.mrb[5].mxu0 }
 0x1e5   : > { %3431 = vst [vmem:[%s5388_s4] sm:$0xff] %v3430_v17   ;;  %v4191_v47 = vadd.f32 %v2683_v11, %v1388_v13  ;;  %v4145_v30 = vpop.f32.mrb[6].mxu0 }
 0x1e6   : > { %v4192_v8 = vadd.f32 %v4145_v30, %v3905_v15  ;;  %v2686_v18 = vpop.f32.mrb[7].mxu0  ;;  %v2839_v1 = vadd.f32 %v4190_v4, %v5378_v0 }
 0x1e7   : > { %v4193_v28 = vadd.f32 %v2686_v18, %v1391_v16  ;;  %v2837_v51 = vadd.f32 %v4191_v47, %v5378_v0 }
 0x1e8   : > { %v2840_v9 = vadd.f32 %v4192_v8, %v5378_v0 }
 0x1e9   : > { %v2838_v63 = vadd.f32 %v4193_v28, %v5378_v0 }
 0x1ea   : > { %v3445_v12 = vpack.c.bf16 %v2840_v9, %v2839_v1 }
 0x1eb   : > { %v3440_v23 = vpack.c.bf16 %v2838_v63, %v2837_v51  ;;  %v4148_v49 = vpop.f32.mrb[8].mxu0 }
 0x1ec   : > { %3509 = vst [vmem:[%s5388_s4 + $0x18] sm:$0xff] %v3445_v12   ;;  %v4194_v46 = vadd.f32 %v4148_v49, %v3908_v24  ;;  %v2699_v29 = vpop.f32.mrb[9].mxu0 }
 0x1ed   : > { %3508 = vst [vmem:[%s5388_s4 + $0x10] sm:$0xff] %v3440_v23   ;;  %v4195_v57 = vadd.f32 %v2699_v29, %v1404_v36  ;;  %v4149_v38 = vpop.f32.mrb[10].mxu0 }
 0x1ee   : > { %v4196_v20 = vadd.f32 %v4149_v38, %v3909_v37  ;;  %v2702_v35 = vpop.f32.mrb[11].mxu0  ;;  %v2843_v26 = vadd.f32 %v4194_v46, %v5378_v0 }
 0x1ef   : > { %v4197_v22 = vadd.f32 %v2702_v35, %v1407_v42  ;;  %v2841_v33 = vadd.f32 %v4195_v57, %v5378_v0 }
 0x1f0   : > { %v2844_v27 = vadd.f32 %v4196_v20, %v5378_v0 }
 0x1f1   : > { %v2842_v34 = vadd.f32 %v4197_v22, %v5378_v0 }
 0x1f2   : > { %v3455_v45 = vpack.c.bf16 %v2844_v27, %v2843_v26 }
 0x1f3   : > { %v3450_v31 = vpack.c.bf16 %v2842_v34, %v2841_v33  ;;  %v4152_v52 = vpop.f32.mrb[12].mxu0 }
 0x1f4   : > { %3511 = vst [vmem:[%s5388_s4 + $0x28] sm:$0xff] %v3455_v45   ;;  %v4198_v32 = vadd.f32 %v4152_v52, %v3912_v58  ;;  %v2715_v39 = vpop.f32.mrb[13].mxu0 }
 0x1f5   : > { %3510 = vst [vmem:[%s5388_s4 + $0x20] sm:$0xff] %v3450_v31   ;;  %v4199_v55 = vadd.f32 %v2715_v39, %v1420_v50  ;;  %v4153_v5 = vpop.f32.mrb[14].mxu0 }
 0x1f6   : > { %v4200_v56 = vadd.f32 %v4153_v5, %v3913_v6  ;;  %v2718_v60 = vpop.f32.mrb[15].mxu0  ;;  %v2847_v3 = vadd.f32 %v4198_v32, %v5378_v0 }
 0x1f7   : > { %v4201_v62 = vadd.f32 %v2718_v60, %v1423_v44  ;;  %v2845_v13 = vadd.f32 %v4199_v55, %v5378_v0 }
 0x1f8   : > { %v2848_v10 = vadd.f32 %v4200_v56, %v5378_v0 }
 0x1f9   : > { %v2846_v15 = vadd.f32 %v4201_v62, %v5378_v0 }
 0x1fa   : > { %v3465_v16 = vpack.c.bf16 %v2848_v10, %v2847_v3  ;;  %v3964_v24 = vpop.f32.mrb[16].mxu1 }
 0x1fb   : > { %v3460_v36 = vpack.c.bf16 %v2846_v15, %v2845_v13  ;;  %v4156_v37 = vpop.f32.mrb[16].mxu0  ;;  %v1695_v42 = vpop.f32.mrb[17].mxu1 }
 0x1fc   : > { %3513 = vst [vmem:[%s5388_s4 + $0x38] sm:$0xff] %v3465_v16   ;;  %v4202_v58 = vadd.f32 %v4156_v37, %v3964_v24  ;;  %v2731_v50 = vpop.f32.mrb[17].mxu0  ;;  %v3965_v6 = vpop.f32.mrb[18].mxu1 }
 0x1fd   : > { %3512 = vst [vmem:[%s5388_s4 + $0x30] sm:$0xff] %v3460_v36   ;;  %v4203_v44 = vadd.f32 %v2731_v50, %v1695_v42  ;;  %v4157_v48 = vpop.f32.mrb[18].mxu0  ;;  %v1698_v41 = vpop.f32.mrb[19].mxu1 }
 0x1fe   : > { %v4204_v7 = vadd.f32 %v4157_v48, %v3965_v6  ;;  %v2734_v54 = vpop.f32.mrb[19].mxu0  ;;  %v2851_v40 = vadd.f32 %v4202_v58, %v5378_v0 }
 0x1ff   : > { %v4205_v14 = vadd.f32 %v2734_v54, %v1698_v41  ;;  %v2849_v21 = vadd.f32 %v4203_v44, %v5378_v0 }
 0x200   : > { %v2852_v19 = vadd.f32 %v4204_v7, %v5378_v0 }
 0x201   : > { %v2850_v61 = vadd.f32 %v4205_v14, %v5378_v0 }
 0x202   : > { %v3475_v25 = vpack.c.bf16 %v2852_v19, %v2851_v40  ;;  %v3968_v59 = vpop.f32.mrb[20].mxu1 }
 0x203   : > { %v3470_v53 = vpack.c.bf16 %v2850_v61, %v2849_v21  ;;  %v4160_v43 = vpop.f32.mrb[20].mxu0  ;;  %v1711_v17 = vpop.f32.mrb[21].mxu1 }
 0x204   : > { %3515 = vst [vmem:[%s5388_s4 + $0x48] sm:$0xff] %v3475_v25   ;;  %v4206_v2 = vadd.f32 %v4160_v43, %v3968_v59  ;;  %v2747_v4 = vpop.f32.mrb[21].mxu0  ;;  %v3969_v11 = vpop.f32.mrb[22].mxu1 }
 0x205   : > { %3514 = vst [vmem:[%s5388_s4 + $0x40] sm:$0xff] %v3470_v53   ;;  %v4207_v47 = vadd.f32 %v2747_v4, %v1711_v17  ;;  %v4161_v30 = vpop.f32.mrb[22].mxu0  ;;  %v1714_v8 = vpop.f32.mrb[23].mxu1 }
 0x206   : > { %v4208_v18 = vadd.f32 %v4161_v30, %v3969_v11  ;;  %v2750_v28 = vpop.f32.mrb[23].mxu0  ;;  %v2855_v9 = vadd.f32 %v4206_v2, %v5378_v0 }
 0x207   : > { %v4209_v1 = vadd.f32 %v2750_v28, %v1714_v8  ;;  %v2853_v63 = vadd.f32 %v4207_v47, %v5378_v0 }
 0x208   : > { %v2856_v51 = vadd.f32 %v4208_v18, %v5378_v0 }
 0x209   : > { %v2854_v12 = vadd.f32 %v4209_v1, %v5378_v0 }
 0x20a   : > { %v3485_v23 = vpack.c.bf16 %v2856_v51, %v2855_v9  ;;  %v3972_v49 = vpop.f32.mrb[24].mxu1 }
 0x20b   : > { %v3480_v46 = vpack.c.bf16 %v2854_v12, %v2853_v63  ;;  %v4164_v29 = vpop.f32.mrb[24].mxu0  ;;  %v1727_v57 = vpop.f32.mrb[25].mxu1 }
 0x20c   : > { %3517 = vst [vmem:[%s5388_s4 + $0x58] sm:$0xff] %v3485_v23   ;;  %v4210_v38 = vadd.f32 %v4164_v29, %v3972_v49  ;;  %v2763_v20 = vpop.f32.mrb[25].mxu0  ;;  %v3973_v35 = vpop.f32.mrb[26].mxu1 }
 0x20d   : > { %3516 = vst [vmem:[%s5388_s4 + $0x50] sm:$0xff] %v3480_v46   ;;  %v4211_v22 = vadd.f32 %v2763_v20, %v1727_v57  ;;  %v4165_v26 = vpop.f32.mrb[26].mxu0  ;;  %v1730_v27 = vpop.f32.mrb[27].mxu1 }
 0x20e   : > { %v4212_v33 = vadd.f32 %v4165_v26, %v3973_v35  ;;  %v2766_v34 = vpop.f32.mrb[27].mxu0  ;;  %v2859_v31 = vadd.f32 %v4210_v38, %v5378_v0 }
 0x20f   : > { %v4213_v45 = vadd.f32 %v2766_v34, %v1730_v27  ;;  %v2857_v32 = vadd.f32 %v4211_v22, %v5378_v0 }
 0x210   : > { %v2860_v52 = vadd.f32 %v4212_v33, %v5378_v0 }
 0x211   : > { %v2858_v39 = vadd.f32 %v4213_v45, %v5378_v0 }
 0x212   : > { %v3495_v55 = vpack.c.bf16 %v2860_v52, %v2859_v31  ;;  %v3976_v5 = vpop.f32.mrb[28].mxu1 }
 0x213   : > { %v3490_v56 = vpack.c.bf16 %v2858_v39, %v2857_v32  ;;  %v4168_v60 = vpop.f32.mrb[28].mxu0  ;;  %v1743_v62 = vpop.f32.mrb[29].mxu1 }
 0x214   : > { %3519 = vst [vmem:[%s5388_s4 + $0x68] sm:$0xff] %v3495_v55   ;;  %v4214_v3 = vadd.f32 %v4168_v60, %v3976_v5  ;;  %v2779_v10 = vpop.f32.mrb[29].mxu0  ;;  %v3977_v13 = vpop.f32.mrb[30].mxu1 }
 0x215   : > { %3518 = vst [vmem:[%s5388_s4 + $0x60] sm:$0xff] %v3490_v56   ;;  %v4215_v15 = vadd.f32 %v2779_v10, %v1743_v62  ;;  %v4169_v16 = vpop.f32.mrb[30].mxu0  ;;  %v1746_v24 = vpop.f32.mrb[31].mxu1 }
 0x216   : > { %v4216_v36 = vadd.f32 %v4169_v16, %v3977_v13  ;;  %v2782_v37 = vpop.f32.mrb[31].mxu0  ;;  %v2863_v58 = vadd.f32 %v4214_v3, %v5378_v0 }
 0x217   : > { %v4217_v42 = vadd.f32 %v2782_v37, %v1746_v24  ;;  %v2861_v6 = vadd.f32 %v4215_v15, %v5378_v0 }
 0x218   : > { %v2864_v50 = vadd.f32 %v4216_v36, %v5378_v0 }
 0x219   : > { %v2862_v44 = vadd.f32 %v4217_v42, %v5378_v0 }
 0x21a   : > { %v3505_v48 = vpack.c.bf16 %v2864_v50, %v2863_v58 }
 0x21b   : > { %v3500_v41 = vpack.c.bf16 %v2862_v44, %v2861_v6 }
 0x21c   : > { %3521 = vst [vmem:[%s5388_s4 + $0x78] sm:$0xff] %v3505_v48  }
 0x21d   : > { %3520 = vst [vmem:[%s5388_s4 + $0x70] sm:$0xff] %v3500_v41  }
 0x21e PF: > { %s13_s14 = sadd.s32 1, %s4585_s14   ;;  %s5461_s12 = smov %s4581_s13 }
 0x21f   : > { %p10_p5 = scmp.ge.s32.totalorder %s13_s14, 4   ;;  %s5462_s13 = smov %s5464_s15 }
 0x221   :  { %12 = sbr.rel (!%p10_p5) target bundleno = 2 (0x2), region = 76 }

// kernel: upsample_block_forward.8
= control target key start
LH: loop header
LB: loop body
LE: loop exit
PB: predicated region body
PF: predicated region fallthrough
CT: control target
= control target key end

     0   :  { %s4624_s12 = smov 0   ;;  %s4626_s13 = smov 0   ;;  %s5508_s0 = inlined_call_operand.vmem [shape: bf16[2,16,16,128], index: 0, kind: input, shape index: {}]   ;;  %s5509_s1 = inlined_call_operand.vmem [shape: bf16[9,128,128], index: 1, kind: input, shape index: {}]   ;;  %s5510_s2 = inlined_call_operand.vmem [shape: f32[1,128], index: 2, kind: input, shape index: {}]   ;;  %s5511_s3 = inlined_call_operand.vmem [shape: bf16[2,16,16,128], index: 3, kind: output, shape index: {}]  }
   0x1   :  { %s4628_s14 = smov 0  }
   0x2 LB: > { %s25_s15 = sadd.s32 1, %s4597_s13  ;;  %p3168_p0 = scmp.ge.s32.totalorder %s4601_s14, 1  ;;  %s4601_s14 = sphi %s4628_s14, %s13_s14   ;;  %s4597_s13 = sphi %s4626_s13, %s5526_s13   ;;  %s4593_s12 = sphi %s4624_s12, %s5525_s12  }
   0x3   : > { %p27_p1 = scmp.ge.s32.totalorder %s25_s15, 2  ;;  %p168_p2 = scmp.lt.s32.totalorder %s4601_s14, 3 }
   0x5   : > { %s5528_s15 = smov (%p27_p1, %s25_s15), 0  ;;  %p169_p3 = pnand %p3168_p0, %p168_p2 }
   0x6   : > { %v4499_v0 = vld [vmem:[%s5509_s1 + $0x40] sm:$0xff] (!%p169_p3)   ;;  %v5512_v2 = vmov (!%p169_p3), 0   ;;  %v4501_v3 = vld [vmem:[%s5509_s1 + $0x48] sm:$0xff] (!%p169_p3)   ;;  %p202_p4 = scmp.lt.s32.totalorder (!%p169_p3), %s4593_s12, 1  ;;  %v4503_v5 = vld [vmem:[%s5509_s1 + $0x50] sm:$0xff] (!%p169_p3)   ;;  %vm562_vm0 = vcmask (!%p169_p3), 1047552  }
   0x7   : > { %172 = sbr.rel (%p169_p3) target bundleno = 542 (0x21e), region = 32  ;;  %v4500_v1 = vld [vmem:[%s5509_s1 + $0x100] sm:$0xff] (!%p169_p3)   ;;  %3786 = vmatprep.mubr.bf16.mxu1 (!%p169_p3), %v5512_v2  ;;  %3770 = vmatprep.subr.bf16.mxu1 (!%p169_p3), %v4499_v0  ;;  %v4502_v4 = vld [vmem:[%s5509_s1 + $0x108] sm:$0xff] (!%p169_p3)   ;;  %v4504_v6 = vld [vmem:[%s5509_s1 + $0x110] sm:$0xff] (!%p169_p3)   ;;  %vm563_vm1 = vsmask.f32 (!%p169_p3), 7424 }
   0x8   : > { %3962 = vmatprep.subr.bf16.mxu0 (!%p169_p3), %v4500_v1  ;;  %3771 = vmatpush3.bf16.msra.mxu1 (!%p169_p3), %v4499_v0  ;;  %v4505_v7 = vld [vmem:[%s5509_s1 + $0x58] sm:$0xff] (!%p169_p3)   ;;  %v4507_v9 = vld [vmem:[%s5509_s1 + $0x60] sm:$0xff] (!%p169_p3)   ;;  %v4509_v11 = vld [vmem:[%s5509_s1 + $0x68] sm:$0xff] (!%p169_p3)   ;;  %vm495_vm3 = vcmask (!%p169_p3), 1040384   ;;  %vm496_vm4 = vsmask.f32 (!%p169_p3), 256 }
   0x9   : > { %3963 = vmatpush3.bf16.msra.mxu0 (!%p169_p3), %v4500_v1  ;;  %3772 = vmatprep.subr.bf16.mxu1 (!%p169_p3), %v4501_v3  ;;  %v4506_v8 = vld [vmem:[%s5509_s1 + $0x118] sm:$0xff] (!%p169_p3)   ;;  %v4508_v10 = vld [vmem:[%s5509_s1 + $0x120] sm:$0xff] (!%p169_p3)   ;;  %v4510_v14 = vld [vmem:[%s5509_s1 + $0x128] sm:$0xff] (!%p169_p3)  }
   0xa   : > { %3964 = vmatprep.subr.bf16.mxu0 (!%p169_p3), %v4502_v4  ;;  %v4511_v18 = vld [vmem:[%s5509_s1 + $0x70] sm:$0xff] (!%p169_p3)   ;;  %v4513_v20 = vld [vmem:[%s5509_s1 + $0x78] sm:$0xff] (!%p169_p3)   ;;  %v4515_v28 = vld [vmem:[%s5509_s1] sm:$0xff] (!%p169_p3)  }
   0xb   : > { %v4512_v19 = vld [vmem:[%s5509_s1 + $0x130] sm:$0xff] (!%p169_p3)   ;;  %v4514_v23 = vld [vmem:[%s5509_s1 + $0x138] sm:$0xff] (!%p169_p3)   ;;  %v4516_v29 = vld [vmem:[%s5509_s1 + $0x140] sm:$0xff] (!%p169_p3)  }
   0xc   : > { %3773 = vmatpush3.bf16.msra.mxu1 (!%p169_p3), %v4501_v3  ;;  %v4517_v35 = vld [vmem:[%s5509_s1 + $0x148] sm:$0xff] (!%p169_p3)   ;;  %v4521_v44 = vld [vmem:[%s5509_s1 + $0x10] sm:$0xff] (!%p169_p3)   ;;  %v4520_v50 = vld [vmem:[%s5509_s1 + $0x158] sm:$0xff] (!%p169_p3)  }
   0xd   : > { %3965 = vmatpush3.bf16.msra.mxu0 (!%p169_p3), %v4502_v4  ;;  %3774 = vmatprep.subr.bf16.mxu1 (!%p169_p3), %v4503_v5  ;;  %v4518_v39 = vld [vmem:[%s5509_s1 + $0x8] sm:$0xff] (!%p169_p3)   ;;  %v4519_v45 = vld [vmem:[%s5509_s1 + $0x150] sm:$0xff] (!%p169_p3)   ;;  %v4524_v53 = vld [vmem:[%s5509_s1 + $0x18] sm:$0xff] (!%p169_p3)  }
   0xe   : > { %s5530_s12 = smov (!%p202_p4, %s4593_s12), 1  ;;  %3966 = vmatprep.subr.bf16.mxu0 %v4504_v6  ;;  %v4522_v58 = vld [vmem:[%s5509_s1 + $0x160] sm:$0xff]   ;;  %v4523_v1 = vld [vmem:[%s5509_s1 + $0x168] sm:$0xff]   ;;  %vm4807_vm2 = vmand %vm562_vm0, %vm563_vm1 }
   0xf   : > { %s3425_s5 = sshll.u32 %s5530_s12, 7  ;;  %v4527_v60 = vld [vmem:[%s5509_s1 + $0x20] sm:$0xff]   ;;  %vm5012_vm5 = vmand %vm495_vm3, %vm496_vm4 }
  0x10   : > { %3775 = vmatpush3.bf16.msra.mxu1 %v4503_v5  ;;  %s4681_s16 = scalar_lea.vmem %s5508_s0, %s3425_s5  ;;  %s5452_s4 = scalar_lea.vmem %s5511_s3, %s3425_s5 }
  0x11   : > { %3967 = vmatpush3.bf16.msra.mxu0 %v4504_v6  ;;  %3776 = vmatprep.subr.bf16.mxu1 %v4505_v7  ;;  %v223_v12 = vld [vmem:[%s4681_s16] sm:$0xf]  ;;  %v224_v13 = vld [vmem:[%s4681_s16 + $0x4] sm:$0xf]  ;;  %v225_v21 = vld [vmem:[%s4681_s16 + $0x8] sm:$0xf] }
  0x12   : > { %3968 = vmatprep.subr.bf16.mxu0 %v4506_v8  ;;  %v255_v15 = vmax.bf16 %v5512_v2, %v223_v12  ;;  %v256_v16 = vmax.bf16 %v5512_v2, %v224_v13  ;;  %v226_v22 = vld [vmem:[%s4681_s16 + $0xc] sm:$0xf]  ;;  %v227_v24 = vld [vmem:[%s4681_s16 + $0x10] sm:$0xf]  ;;  %v228_v25 = vld [vmem:[%s4681_s16 + $0x14] sm:$0xf]  ;;  %v257_v26 = vmax.bf16 %v5512_v2, %v225_v21 }
  0x13   : > { %v258_v27 = vmax.bf16 %v5512_v2, %v226_v22  ;;  %v259_v30 = vmax.bf16 %v5512_v2, %v227_v24  ;;  %v260_v31 = vmax.bf16 %v5512_v2, %v228_v25  ;;  %v229_v33 = vld [vmem:[%s4681_s16 + $0x18] sm:$0xf]  ;;  %v230_v34 = vld [vmem:[%s4681_s16 + $0x1c] sm:$0xf]  ;;  %v231_v37 = vld [vmem:[%s4681_s16 + $0x20] sm:$0xf] }
  0x14   : > { %3777 = vmatpush3.bf16.msra.mxu1 %v4505_v7  ;;  %v4693_v17 = vcombine.low %v255_v15, %v256_v16  ;;  %v232_v38 = vld [vmem:[%s4681_s16 + $0x24] sm:$0xf]  ;;  %v261_v40 = vmax.bf16 %v5512_v2, %v229_v33  ;;  %v262_v41 = vmax.bf16 %v5512_v2, %v230_v34  ;;  %v263_v42 = vmax.bf16 %v5512_v2, %v231_v37  ;;  %v233_v48 = vld [vmem:[%s4681_s16 + $0x28] sm:$0xf]  ;;  %v234_v49 = vld [vmem:[%s4681_s16 + $0x2c] sm:$0xf] }
  0x15   : > { %3969 = vmatpush3.bf16.msra.mxu0 %v4506_v8  ;;  %3778 = vmatprep.subr.bf16.mxu1 %v4507_v9  ;;  %v4722_v32 = vcombine.low %v257_v26, %v258_v27  ;;  %v4729_v36 = vcombine.low %v259_v30, %v260_v31  ;;  %v264_v43 = vmax.bf16 %v5512_v2, %v232_v38  ;;  %v235_v51 = vld [vmem:[%s4681_s16 + $0x30] sm:$0xf]  ;;  %v236_v52 = vld [vmem:[%s4681_s16 + $0x34] sm:$0xf]  ;;  %v237_v62 = vld [vmem:[%s4681_s16 + $0x38] sm:$0xf] }
  0x16   : > { %3970 = vmatprep.subr.bf16.mxu0 %v4508_v10  ;;  %3978 = vmatprep.mubr.bf16.mxu0 %v4693_v17  ;;  %v4750_v46 = vcombine.low %v261_v40, %v262_v41  ;;  %v265_v54 = vmax.bf16 %v5512_v2, %v233_v48  ;;  %v266_v55 = vmax.bf16 %v5512_v2, %v234_v49  ;;  %v371_v59 = vshll.u32 %v4693_v17, 16  ;;  %v238_v0 = vld [vmem:[%s4681_s16 + $0x3c] sm:$0xf]  ;;  %v4529_v6 = vld [vmem:[%s5509_s1 + $0x28] sm:$0xff]   ;;  %v4531_v15 = vld [vmem:[%s5509_s1 + $0x30] sm:$0xff]  }
  0x17   : > { %v4752_v47 = vcombine.low %v263_v42, %v264_v43  ;;  %v267_v56 = vmax.bf16 %v5512_v2, %v235_v51  ;;  %v268_v57 = vmax.bf16 %v5512_v2, %v236_v52  ;;  %v368_v3 = vshrl.u32 %v4693_v17, 16  ;;  %v242_v21 = vld [vmem:[%s4681_s16 + $0x4c] sm:$0xf]  ;;  %v4526_v22 = vld [vmem:[%s5509_s1 + $0x178] sm:$0xff]   ;;  %v4528_v34 = vld [vmem:[%s5509_s1 + $0x180] sm:$0xff]  }
  0x18   : > { %3779 = vmatpush3.bf16.msra.mxu1 %v4507_v9  ;;  %v4779_v61 = vcombine.low %v265_v54, %v266_v55  ;;  %v514_v4 = vrot.slane %v371_v59, 1  ;;  %v378_v5 = vshll.u32 %v4722_v32, 16  ;;  %v269_v7 = vmax.bf16 %v5512_v2, %v237_v62  ;;  %v4525_v9 = vld [vmem:[%s5509_s1 + $0x170] sm:$0xff]   ;;  %v245_v42 = vld [vmem:[%s4681_s16 + $0x58] sm:$0xf] }
  0x19   : > { %3971 = vmatpush3.bf16.msra.mxu0 %v4508_v10  ;;  %3780 = vmatprep.subr.bf16.mxu1 %v4509_v11  ;;  %v4782_v63 = vcombine.low %v267_v56, %v268_v57  ;;  %v270_v8 = vmax.bf16 %v5512_v2, %v238_v0  ;;  %v375_v13 = vshrl.u32 %v4722_v32, 16  ;;  %v382_v24 = vshrl.u32 %v4729_v36, 16  ;;  %v243_v38 = vld [vmem:[%s4681_s16 + $0x50] sm:$0xf]  ;;  %v246_v43 = vld [vmem:[%s4681_s16 + $0x5c] sm:$0xf] }
  0x1a   : > { %3972 = vmatprep.subr.bf16.mxu0 %v4510_v14  ;;  %v515_v10 = vor.u32 %v514_v4, %v368_v3  ;;  %v274_v31 = vmax.bf16 %v5512_v2, %v242_v21  ;;  %v392_v33 = vshll.u32 %v4750_v46, 16  ;;  %v389_v41 = vshrl.u32 %v4750_v46, 16  ;;  %v247_v0 = vld [vmem:[%s4681_s16 + $0x60] sm:$0xf] }
  0x1b   : > { %v4817_v16 = vcombine.low %v269_v7, %v270_v8  ;;  %v275_v54 = vmax.bf16 %v5512_v2, %v243_v38  ;;  %v277_v57 = vmax.bf16 %v5512_v2, %v245_v42  ;;  %v406_v62 = vshll.u32 %v4779_v61, 16  ;;  %v252_v38 = vld [vmem:[%s4681_s16 + $0x74] sm:$0xf] }
  0x1c   : > { %3781 = vmatpush3.bf16.msra.mxu1 %v4509_v11  ;;  %v385_v11 = vshll.u32 %v4729_v36, 16  ;;  %v520_v49 = vrot.slane %v392_v33, 1  ;;  %v403_v4 = vshrl.u32 %v4779_v61, 16  ;;  %v413_v7 = vshll.u32 %v4782_v63, 16 }
  0x1d   : > { %3973 = vmatpush3.bf16.msra.mxu0 %v4510_v14  ;;  %3782 = vmatprep.subr.bf16.mxu1 %v4511_v18  ;;  %v516_v14 = vrot.slane %v378_v5, 1 }
  0x1e   : > { %3974 = vmatprep.subr.bf16.mxu0 %v4512_v19  ;;  %v518_v25 = vrot.slane %v385_v11, 1  ;;  %v521_v56 = vor.u32 %v520_v49, %v389_v41  ;;  %v526_v21 = vrot.slane %v413_v7, 1 }
  0x20   : > { %3783 = vmatpush3.bf16.msra.mxu1 %v4511_v18  ;;  %v239_v18 = vld [vmem:[%s4681_s16 + $0x40] sm:$0xf]  ;;  %v519_v37 = vor.u32 %v518_v25, %v382_v24  ;;  %v279_v25 = vmax.bf16 %v5512_v2, %v247_v0  ;;  %v284_v0 = vmax.bf16 %v5512_v2, %v252_v38 }
  0x21   : > { %3975 = vmatpush3.bf16.msra.mxu0 %v4512_v19  ;;  %3784 = vmatprep.subr.bf16.mxu1 %v4513_v20  ;;  %v240_v19 = vld [vmem:[%s4681_s16 + $0x44] sm:$0xf]  ;;  %v271_v26 = vmax.bf16 %v5512_v2, %v239_v18  ;;  %v410_v18 = vshrl.u32 %v4782_v63, 16 }
  0x22   : > { %3976 = vmatprep.subr.bf16.mxu0 %v4514_v23  ;;  %v272_v27 = vmax.bf16 %v5512_v2, %v240_v19  ;;  %v4878_v52 = vsel %vm4807_vm2, %v519_v37, 0  ;;  %v251_v37 = vld [vmem:[%s4681_s16 + $0x70] sm:$0xf] }
  0x24   : > { %3785 = vmatpush3.bf16.msra.mxu1 %v4513_v20  ;;  %v241_v20 = vld [vmem:[%s4681_s16 + $0x48] sm:$0xf]  ;;  %v4855_v40 = vcombine.low %v271_v26, %v272_v27  ;;  %v420_v27 = vshll.u32 %v4817_v16, 16 }
  0x25   : > { %3977 = vmatpush3.bf16.msra.mxu0 %v4514_v23  ;;  %3818 = vmatprep.subr.bf16.mxu1 %v4515_v28  ;;  %v4828_v23 = vsel %vm4807_vm2, %v515_v10, 0  ;;  %v273_v30 = vmax.bf16 %v5512_v2, %v241_v20  ;;  %v250_v10 = vld [vmem:[%s4681_s16 + $0x6c] sm:$0xf]  ;;  %v524_v20 = vrot.slane %v406_v62, 1 }
  0x26   : > { %4010 = vmatprep.subr.bf16.mxu0 %v4516_v29  ;;  %v528_v49 = vrot.slane %v420_v27, 1 }
  0x27   : > { %3787 = vmatmul.mubr.bf16.vlgmr.msra.gmra.mrb[0].mxu1 %v4693_v17  ;;  %v4869_v48 = vcombine.low %v273_v30, %v274_v31  ;;  %v427_v30 = vshll.u32 %v4855_v40, 16  ;;  %v525_v31 = vor.u32 %v524_v20, %v403_v4 }
  0x28   : > { %3979 = vmatmul.mubr.bf16.vlgmr.msra.gmra.mrb[0].mxu0 %v4722_v32  ;;  %3819 = vmatpush3.bf16.msra.mxu1 %v4515_v28  ;;  %v4533_v28 = vld [vmem:[%s5509_s1 + $0x38] sm:$0xff]  }
  0x29   : > { %4011 = vmatpush3.bf16.msra.mxu0 %v4516_v29  ;;  %3790 = vmatprep.mubr.bf16.mxu1 %v4722_v32  ;;  %v517_v29 = vor.u32 %v516_v14, %v375_v13  ;;  %v4910_v14 = vsel %vm4807_vm2, %v521_v56, 0  ;;  %v434_v56 = vshll.u32 %v4869_v48, 16  ;;  %v431_v20 = vshrl.u32 %v4869_v48, 16 }
  0x2a   : > { %4012 = vmatprep.subr.bf16.mxu0 %v4517_v35  ;;  %3982 = vmatprep.mubr.bf16.mxu0 %v4729_v36 }
  0x2b   : > { %3820 = vmatprep.subr.bf16.mxu1 %v4518_v39 }
  0x2c   : > { %3821 = vmatpush3.bf16.msra.mxu1 %v4518_v39  ;;  %v244_v39 = vld [vmem:[%s4681_s16 + $0x54] sm:$0xf] }
  0x2d   : > { %4013 = vmatpush3.bf16.msra.mxu0 %v4517_v35  ;;  %3822 = vmatprep.subr.bf16.mxu1 %v4521_v44  ;;  %v399_v35 = vshll.u32 %v4752_v47, 16  ;;  %v276_v55 = vmax.bf16 %v5512_v2, %v244_v39  ;;  %v4536_v39 = vld [vmem:[%s5509_s1 + $0x1a0] sm:$0xff]  }
  0x2e   : > { %4014 = vmatprep.subr.bf16.mxu0 %v4519_v45 }
  0x2f   : > { %3791 = vmatmul.mubr.bf16.gmra.mrb[4].mxu1 %v4729_v36  ;;  %v522_v51 = vrot.slane %v399_v35, 1  ;;  %v4904_v8 = vcombine.low %v275_v54, %v276_v55  ;;  %v530_v54 = vrot.slane %v427_v30, 1  ;;  %v4957_v55 = vsel %vm4807_vm2, %v525_v31, 0 }
  0x30   : > { %3983 = vmatmul.mubr.bf16.gmra.mrb[4].mxu0 %v4750_v46  ;;  %3794 = vmatprep.mubr.bf16.mxu1 %v4750_v46 }
  0x31   : > { %4015 = vmatpush3.bf16.msra.mxu0 %v4519_v45  ;;  %3986 = vmatprep.mubr.bf16.mxu0 %v4752_v47  ;;  %v4867_v45 = vsel %vm4807_vm2, %v517_v29, 0  ;;  %v282_v29 = vmax.bf16 %v5512_v2, %v250_v10 }
  0x32   : > { %4016 = vmatprep.subr.bf16.mxu0 %v4520_v50  ;;  %3823 = vmatpush3.bf16.msra.mxu1 %v4521_v44  ;;  %v4863_v44 = vld [vmem:[%s5509_s1 + $0x80] sm:$0xff]  }
  0x33   : > { %3824 = vmatprep.subr.bf16.mxu1 %v4524_v53 }
  0x35   : > { %4017 = vmatpush3.bf16.msra.mxu0 %v4520_v50  ;;  %v396_v50 = vshrl.u32 %v4752_v47, 16 }
  0x36   : > { %4018 = vmatprep.subr.bf16.mxu0 %v4522_v58  ;;  %3825 = vmatpush3.bf16.msra.mxu1 %v4524_v53  ;;  %v4530_v53 = vld [vmem:[%s5509_s1 + $0x188] sm:$0xff]  }
  0x37   : > { %3795 = vmatmul.mubr.bf16.gmra.mrb[8].mxu1 %v4752_v47  ;;  %3826 = vmatprep.subr.bf16.mxu1 %v4527_v60 }
  0x38   : > { %3987 = vmatmul.mubr.bf16.gmra.mrb[8].mxu0 %v4779_v61  ;;  %3798 = vmatprep.mubr.bf16.mxu1 %v4779_v61 }
  0x39   : > { %4019 = vmatpush3.bf16.msra.mxu0 %v4522_v58  ;;  %3990 = vmatprep.mubr.bf16.mxu0 %v4782_v63  ;;  %v278_v58 = vmax.bf16 %v5512_v2, %v246_v43  ;;  %v417_v43 = vshrl.u32 %v4817_v16, 16 }
  0x3a   : > { %4020 = vmatprep.subr.bf16.mxu0 %v4523_v1  ;;  %3827 = vmatpush3.bf16.msra.mxu1 %v4527_v60  ;;  %v523_v60 = vor.u32 %v522_v51, %v396_v50 }
  0x3b   : > { %3828 = vmatprep.subr.bf16.mxu1 %v4529_v6 }
  0x3c   : > { %v4917_v19 = vsel %vm4807_vm2, %v523_v60, 0  ;;  %v283_v60 = vmax.bf16 %v5512_v2, %v251_v37  ;;  %v4563_v37 = vld [vmem:[%s5509_s1 + $0xf0] sm:$0xff]  }
  0x3d   : > { %4021 = vmatpush3.bf16.msra.mxu0 %v4523_v1  ;;  %v248_v1 = vld [vmem:[%s4681_s16 + $0x64] sm:$0xf] }
  0x3e   : > { %4022 = vmatprep.subr.bf16.mxu0 %v4525_v9  ;;  %3829 = vmatpush3.bf16.msra.mxu1 %v4529_v6  ;;  %v4532_v6 = vld [vmem:[%s5509_s1 + $0x190] sm:$0xff]   ;;  %v280_v26 = vmax.bf16 %v5512_v2, %v248_v1  ;;  %v529_v1 = vor.u32 %v528_v49, %v417_v43 }
  0x3f   : > { %3799 = vmatmul.mubr.bf16.gmra.mrb[12].mxu1 %v4782_v63  ;;  %3830 = vmatprep.subr.bf16.mxu1 %v4531_v15 }
  0x40   : > { %3991 = vmatmul.mubr.bf16.gmra.mrb[12].mxu0 %v4817_v16  ;;  %3802 = vmatprep.mubr.bf16.mxu1 %v4817_v16  ;;  %v4945_v42 = vcombine.low %v279_v25, %v280_v26  ;;  %v4540_v25 = vld [vmem:[%s5509_s1 + $0x1b0] sm:$0xff]   ;;  %v4989_v26 = vcombine.low %v283_v60, %v284_v0  ;;  %v391_v0 = vrot.slane %v389_v41, 7 }
  0x41   : > { %4023 = vmatpush3.bf16.msra.mxu0 %v4525_v9  ;;  %4026 = vmatprep.mubr.bf16.mxu0 %v4828_v23  ;;  %v249_v9 = vld [vmem:[%s4681_s16 + $0x68] sm:$0xf] }
  0x42   : > { %4024 = vmatprep.subr.bf16.mxu0 %v4526_v22  ;;  %3831 = vmatpush3.bf16.msra.mxu1 %v4531_v15  ;;  %v4912_v15 = vcombine.low %v277_v57, %v278_v58  ;;  %v4538_v58 = vld [vmem:[%s5509_s1 + $0x1a8] sm:$0xff]  }
  0x43   : > { %3832 = vmatprep.subr.bf16.mxu1 %v4533_v28 }
  0x44   : > { %v448_v49 = vshll.u32 %v4912_v15, 16  ;;  %v445_v60 = vshrl.u32 %v4912_v15, 16 }
  0x45   : > { %4025 = vmatpush3.bf16.msra.mxu0 %v4526_v22  ;;  %v4534_v22 = vld [vmem:[%s5509_s1 + $0x198] sm:$0xff]  }
  0x46   : > { %4058 = vmatprep.subr.bf16.mxu0 %v4528_v34  ;;  %3833 = vmatpush3.bf16.msra.mxu1 %v4533_v28  ;;  %v281_v28 = vmax.bf16 %v5512_v2, %v249_v9  ;;  %v370_v9 = vrot.slane %v368_v3, 7  ;;  %v438_v3 = vshrl.u32 %v4904_v8, 16 }
  0x47   : > { %3803 = vmatmul.mubr.bf16.gmra.mrb[16].mxu1 %v4855_v40  ;;  %3866 = vmatprep.subr.bf16.mxu1 %v4863_v44 }
  0x48   : > { %4027 = vmatmul.mubr.bf16.vlgmr.msra.gmra.mrb[0].mxu0 %v4867_v45  ;;  %3806 = vmatprep.mubr.bf16.mxu1 %v4869_v48  ;;  %v4950_v51 = vcombine.low %v281_v28, %v282_v29  ;;  %v4993_v28 = vsel %vm4807_vm2, %v529_v1, 0 }
  0x49   : > { %4059 = vmatpush3.bf16.msra.mxu0 %v4528_v34  ;;  %4030 = vmatprep.mubr.bf16.mxu0 %v4878_v52  ;;  %v527_v34 = vor.u32 %v526_v21, %v410_v18  ;;  %v532_v21 = vrot.slane %v434_v56, 1 }
  0x4a   : > { %4060 = vmatprep.subr.bf16.mxu0 %v4530_v53 }
  0x4b   : > { %v4962_v57 = vsel %vm4807_vm2, %v527_v34, 0  ;;  %v373_v34 = vor.u32 %v371_v59, %v370_v9  ;;  %v533_v38 = vor.u32 %v532_v21, %v431_v20  ;;  %v5514_v59 = vshll.u32 %v4945_v42, 16 }
  0x4c   : > { %v452_v21 = vshrl.u32 %v4945_v42, 16 }
  0x4d   : > { %4061 = vmatpush3.bf16.msra.mxu0 %v4530_v53  ;;  %v424_v53 = vshrl.u32 %v4855_v40, 16  ;;  %v5040_v1 = vsel %vm4807_vm2, %v533_v38, 0 }
  0x4e   : > { %4062 = vmatprep.subr.bf16.mxu0 %v4532_v6 }
  0x4f   : > { %3807 = vmatmul.mubr.bf16.gmra.mrb[20].mxu1 %v4904_v8  ;;  %v531_v10 = vor.u32 %v530_v54, %v424_v53  ;;  %v5027_v54 = vld [vmem:[%s5509_s1 + $0x1c0] sm:$0xff]  }
  0x50   : > { %4031 = vmatmul.mubr.bf16.gmra.mrb[4].mxu0 %v4910_v14  ;;  %3810 = vmatprep.mubr.bf16.mxu1 %v4912_v15 }
  0x51   : > { %4034 = vmatprep.mubr.bf16.mxu0 %v4917_v19  ;;  %4063 = vmatpush3.bf16.msra.mxu0 %v4532_v6  ;;  %v441_v6 = vshll.u32 %v4904_v8, 16  ;;  %v4999_v31 = vsel %vm4807_vm2, %v531_v10, 0  ;;  %v4537_v10 = vld [vmem:[%s5509_s1 + $0x88] sm:$0xff]  }
  0x52   : > { %4064 = vmatprep.subr.bf16.mxu0 %v4534_v22 }
  0x53   : > { %v534_v29 = vrot.slane %v441_v6, 1 }
  0x55   : > { %4065 = vmatpush3.bf16.msra.mxu0 %v4534_v22  ;;  %v377_v22 = vrot.slane %v375_v13, 7  ;;  %v4542_v13 = vld [vmem:[%s5509_s1 + $0x1b8] sm:$0xff]   ;;  %v535_v17 = vor.u32 %v534_v29, %v438_v3 }
  0x56   : > { %4066 = vmatprep.subr.bf16.mxu0 %v4536_v39  ;;  %v254_v29 = vld [vmem:[%s4681_s16 + $0x7c] sm:$0xf] }
  0x57   : > { %3811 = vmatmul.mubr.bf16.gmra.mrb[24].mxu1 %v4945_v42  ;;  %v5054_v41 = vsel %vm4807_vm2, %v535_v17, 0  ;;  %v5516_v17 = vshll.u32 %v4950_v51, 16 }
  0x58   : > { %4035 = vmatmul.mubr.bf16.gmra.mrb[8].mxu0 %v4957_v55  ;;  %3814 = vmatprep.mubr.bf16.mxu1 %v4950_v51 }
  0x59   : > { %4038 = vmatprep.mubr.bf16.mxu0 %v4962_v57  ;;  %4067 = vmatpush3.bf16.msra.mxu0 %v4536_v39  ;;  %v380_v39 = vor.u32 %v378_v5, %v377_v22  ;;  %v384_v5 = vrot.slane %v382_v24, 7  ;;  %v536_v24 = vrot.slane %v448_v49, 1  ;;  %v538_v22 = vrot.slane %v5514_v59, 1 }
  0x5a   : > { %4068 = vmatprep.subr.bf16.mxu0 %v4538_v58 }
  0x5b   : > { %v5044_v9 = vsel %vm5012_vm5, 0, %v380_v39  ;;  %v537_v38 = vor.u32 %v536_v24, %v445_v60  ;;  %v4539_v39 = vld [vmem:[%s5509_s1 + $0x90] sm:$0xff]  }
  0x5d   : > { %4069 = vmatpush3.bf16.msra.mxu0 %v4538_v58  ;;  %v5031_v58 = vsel %vm5012_vm5, 0, %v373_v34  ;;  %v394_v34 = vor.u32 %v392_v33, %v391_v0  ;;  %v539_v33 = vor.u32 %v538_v22, %v452_v21  ;;  %v540_v22 = vrot.slane %v5516_v17, 1  ;;  %v4543_v17 = vld [vmem:[%s5509_s1 + $0xa0] sm:$0xff]  }
  0x5e   : > { %4070 = vmatprep.subr.bf16.mxu0 %v4540_v25 }
  0x5f   : > { %3815 = vmatmul.mubr.bf16.gmra.mrb[28].mxu1 %v4989_v26  ;;  %v5087_v24 = vsel %vm5012_vm5, 0, %v394_v34  ;;  %v5104_v34 = vsel %vm4807_vm2, %v539_v33, 0 }
  0x60   : > { %4039 = vmatmul.mubr.bf16.gmra.mrb[12].mxu0 %v4993_v28  ;;  %3834 = vmatprep.mubr.bf16.mxu1 %v5512_v2 }
  0x61   : > { %4042 = vmatprep.mubr.bf16.mxu0 %v4999_v31  ;;  %4071 = vmatpush3.bf16.msra.mxu0 %v4540_v25  ;;  %v253_v25 = vld [vmem:[%s4681_s16 + $0x78] sm:$0xf] }
  0x62   : > { %4072 = vmatprep.subr.bf16.mxu0 %v4542_v13 }
  0x65   : > { %4073 = vmatpush3.bf16.msra.mxu0 %v4542_v13  ;;  %v387_v13 = vor.u32 %v385_v11, %v384_v5  ;;  %v286_v11 = vmax.bf16 %v5512_v2, %v254_v29  ;;  %v5515_v5 = vshll.u32 %v4989_v26, 16  ;;  %v459_v29 = vshrl.u32 %v4950_v51, 16 }
  0x66   : > { %4106 = vmatprep.subr.bf16.mxu0 %v5027_v54 }
  0x67   : > { %3835 = vmatmul.mubr.bf16.vlgmr.msra.gmra.mrb[0].mxu1 %v5031_v58  ;;  %v5083_v0 = vsel %vm5012_vm5, 0, %v387_v13  ;;  %v542_v59 = vrot.slane %v5515_v5, 1 }
  0x68   : > { %4043 = vmatmul.mubr.bf16.gmra.mrb[16].mxu0 %v5040_v1  ;;  %3867 = vmatpush3.bf16.msra.mxu1 %v4863_v44  ;;  %v285_v44 = vmax.bf16 %v5512_v2, %v253_v25  ;;  %v398_v25 = vrot.slane %v396_v50, 7  ;;  %v5094_v2 = vsel %vm4807_vm2, %v537_v38, 0  ;;  %v466_v50 = vshrl.u32 %v4989_v26, 16  ;;  %v4541_v38 = vld [vmem:[%s5509_s1 + $0x98] sm:$0xff]  }
  0x69   : > { %3838 = vmatprep.mubr.bf16.mxu1 %v5044_v9  ;;  %4046 = vmatprep.mubr.bf16.mxu0 %v5054_v41 }
  0x6a   : > { %3868 = vmatprep.subr.bf16.mxu1 %v4537_v10  ;;  %v5100_v13 = vcombine.low %v285_v44, %v286_v11  ;;  %v541_v44 = vor.u32 %v540_v22, %v459_v29  ;;  %v543_v5 = vor.u32 %v542_v59, %v466_v50 }
  0x6c   : > { %3869 = vmatpush3.bf16.msra.mxu1 %v4537_v10  ;;  %v405_v10 = vrot.slane %v403_v4, 7  ;;  %v401_v4 = vor.u32 %v399_v35, %v398_v25  ;;  %v476_v33 = vshll.u32 %v5100_v13, 16  ;;  %v5138_v25 = vsel %vm4807_vm2, %v541_v44, 0  ;;  %v4547_v44 = vld [vmem:[%s5509_s1 + $0xb0] sm:$0xff]  }
  0x6d   : > { %3870 = vmatprep.subr.bf16.mxu1 %v4539_v39  ;;  %v473_v22 = vshrl.u32 %v5100_v13, 16 }
  0x6e   : > { %v408_v11 = vor.u32 %v406_v62, %v405_v10  ;;  %v5130_v35 = vsel %vm5012_vm5, 0, %v401_v4  ;;  %v419_v62 = vrot.slane %v417_v43, 7  ;;  %v544_v10 = vrot.slane %v476_v33, 1  ;;  %v4545_v43 = vld [vmem:[%s5509_s1 + $0xa8] sm:$0xff]  }
  0x6f   : > { %3839 = vmatmul.mubr.bf16.gmra.mrb[4].mxu1 %v5083_v0 }
  0x70   : > { %4047 = vmatmul.mubr.bf16.gmra.mrb[20].mxu0 %v5094_v2  ;;  %3842 = vmatprep.mubr.bf16.mxu1 %v5087_v24  ;;  %v5142_v59 = vsel %vm5012_vm5, 0, %v408_v11 }
  0x71   : > { %4050 = vmatprep.mubr.bf16.mxu0 %v5104_v34  ;;  %3871 = vmatpush3.bf16.msra.mxu1 %v4539_v39  ;;  %v412_v39 = vrot.slane %v410_v18, 7  ;;  %v5149_v18 = vsel %vm4807_vm2, %v543_v5, 0  ;;  %v545_v5 = vor.u32 %v544_v10, %v473_v22 }
  0x72   : > { %3872 = vmatprep.subr.bf16.mxu1 %v4541_v38 }
  0x73   : > { %v415_v4 = vor.u32 %v413_v7, %v412_v39  ;;  %v426_v7 = vrot.slane %v424_v53, 7  ;;  %v5175_v39 = vsel %vm4807_vm2, %v545_v5, 0  ;;  %v4548_v5 = vld [vmem:[%s5509_s1 + $0x1d0] sm:$0xff]  }
  0x75   : > { %3873 = vmatpush3.bf16.msra.mxu1 %v4541_v38  ;;  %v422_v38 = vor.u32 %v420_v27, %v419_v62  ;;  %v5169_v11 = vsel %vm5012_vm5, 0, %v415_v4  ;;  %v4549_v62 = vld [vmem:[%s5509_s1 + $0xb8] sm:$0xff]   ;;  %v429_v12 = vor.u32 %v427_v30, %v426_v7  ;;  %v4546_v4 = vld [vmem:[%s5509_s1 + $0x1c8] sm:$0xff]  }
  0x76   : > { %3874 = vmatprep.subr.bf16.mxu1 %v4543_v17 }
  0x77   : > { %3843 = vmatmul.mubr.bf16.gmra.mrb[8].mxu1 %v5130_v35  ;;  %v5179_v27 = vsel %vm5012_vm5, 0, %v422_v38  ;;  %v5199_v10 = vsel %vm5012_vm5, 0, %v429_v12 }
  0x78   : > { %4051 = vmatmul.mubr.bf16.gmra.mrb[24].mxu0 %v5138_v25  ;;  %3846 = vmatprep.mubr.bf16.mxu1 %v5142_v59 }
  0x79   : > { %4054 = vmatprep.mubr.bf16.mxu0 %v5149_v18  ;;  %3875 = vmatpush3.bf16.msra.mxu1 %v4543_v17  ;;  %v433_v17 = vrot.slane %v431_v20, 7  ;;  %v4551_v20 = vld [vmem:[%s5509_s1 + $0xc0] sm:$0xff]  }
  0x7a   : > { %3876 = vmatprep.subr.bf16.mxu1 %v4545_v43 }
  0x7b   : > { %v436_v53 = vor.u32 %v434_v56, %v433_v17  ;;  %v447_v56 = vrot.slane %v445_v60, 7  ;;  %v5522_v17 = vshll.u32 %v4950_v51, 16 }
  0x7d   : > { %3877 = vmatpush3.bf16.msra.mxu1 %v4545_v43  ;;  %v440_v43 = vrot.slane %v438_v3, 7  ;;  %v5205_v30 = vsel %vm5012_vm5, 0, %v436_v53  ;;  %v450_v60 = vor.u32 %v448_v49, %v447_v56  ;;  %v461_v49 = vrot.slane %v459_v29, 7  ;;  %v4554_v56 = vld [vmem:[%s5509_s1 + $0x1e8] sm:$0xff]  }
  0x7e   : > { %3878 = vmatprep.subr.bf16.mxu1 %v4547_v44  ;;  %v468_v53 = vrot.slane %v466_v50, 7  ;;  %v4556_v50 = vld [vmem:[%s5509_s1 + $0x1f0] sm:$0xff]  }
  0x7f   : > { %3847 = vmatmul.mubr.bf16.gmra.mrb[12].mxu1 %v5169_v11  ;;  %v443_v3 = vor.u32 %v441_v6, %v440_v43  ;;  %v5232_v6 = vsel %vm5012_vm5, 0, %v450_v60  ;;  %v464_v29 = vor.u32 %v5522_v17, %v461_v49  ;;  %v4560_v49 = vld [vmem:[%s5509_s1 + $0x200] sm:$0xff]  }
  0x80   : > { %4055 = vmatmul.mubr.bf16.gmra.mrb[28].mxu0 %v5175_v39  ;;  %3850 = vmatprep.mubr.bf16.mxu1 %v5179_v27 }
  0x81   : > { %4074 = vmatprep.mubr.bf16.mxu0 %v5044_v9  ;;  %3879 = vmatpush3.bf16.msra.mxu1 %v4547_v44  ;;  %v5226_v38 = vsel %vm5012_vm5, 0, %v443_v3  ;;  %v454_v44 = vrot.slane %v452_v21, 7  ;;  %v5521_v21 = vshll.u32 %v4945_v42, 16  ;;  %v5258_v43 = vsel %vm5012_vm5, 0, %v464_v29  ;;  %v4561_v29 = vld [vmem:[%s5509_s1 + $0xe8] sm:$0xff]  }
  0x82   : > { %3880 = vmatprep.subr.bf16.mxu1 %v4549_v62 }
  0x83   : > { %v457_v7 = vor.u32 %v5521_v21, %v454_v44  ;;  %v5524_v44 = vmov 0   ;;  %v4555_v21 = vld [vmem:[%s5509_s1 + $0xd0] sm:$0xff]  }
  0x85   : > { %3881 = vmatpush3.bf16.msra.mxu1 %v4549_v62  ;;  %v4552_v62 = vld [vmem:[%s5509_s1 + $0x1e0] sm:$0xff]   ;;  %v5252_v12 = vsel %vm5012_vm5, 0, %v457_v7  ;;  %v475_v7 = vrot.slane %v473_v22, 7 }
  0x86   : > { %3914 = vmatprep.subr.bf16.mxu1 %v4551_v20  ;;  %v4559_v22 = vld [vmem:[%s5509_s1 + $0xe0] sm:$0xff]  }
  0x87   : > { %3851 = vmatmul.mubr.bf16.gmra.mrb[16].mxu1 %v5199_v10 }
  0x88   : > { %4075 = vmatmul.mubr.bf16.vlgmr.msra.gmra.mrb[0].mxu0 %v5083_v0  ;;  %3854 = vmatprep.mubr.bf16.mxu1 %v5205_v30 }
  0x89   : > { %4107 = vmatpush3.bf16.msra.mxu0 %v5027_v54  ;;  %4078 = vmatprep.mubr.bf16.mxu0 %v5087_v24  ;;  %v4550_v54 = vld [vmem:[%s5509_s1 + $0x1d8] sm:$0xff]  }
  0x8a   : > { %4108 = vmatprep.subr.bf16.mxu0 %v4546_v4 }
  0x8d   : > { %4109 = vmatpush3.bf16.msra.mxu0 %v4546_v4  ;;  %v5523_v4 = vshll.u32 %v4989_v26, 16 }
  0x8e   : > { %4110 = vmatprep.subr.bf16.mxu0 %v4548_v5 }
  0x8f   : > { %3855 = vmatmul.mubr.bf16.gmra.mrb[20].mxu1 %v5226_v38  ;;  %v471_v3 = vor.u32 %v5523_v4, %v468_v53  ;;  %v4571_v53 = vld [vmem:[%s5509_s1 + $0x100] sm:$0xff]  }
  0x90   : > { %4079 = vmatmul.mubr.bf16.gmra.mrb[4].mxu0 %v5130_v35  ;;  %3858 = vmatprep.mubr.bf16.mxu1 %v5232_v6 }
  0x91   : > { %4082 = vmatprep.mubr.bf16.mxu0 %v5142_v59  ;;  %4111 = vmatpush3.bf16.msra.mxu0 %v4548_v5  ;;  %v5274_v60 = vsel %vm5012_vm5, 0, %v471_v3  ;;  %v4558_v5 = vld [vmem:[%s5509_s1 + $0x1f8] sm:$0xff]  }
  0x92   : > { %4112 = vmatprep.subr.bf16.mxu0 %v4550_v54 }
  0x95   : > { %4113 = vmatpush3.bf16.msra.mxu0 %v4550_v54  ;;  %v4553_v54 = vld [vmem:[%s5509_s1 + $0xc8] sm:$0xff]  }
  0x96   : > { %4114 = vmatprep.subr.bf16.mxu0 %v4552_v62 }
  0x97   : > { %3859 = vmatmul.mubr.bf16.gmra.mrb[24].mxu1 %v5252_v12 }
  0x98   : > { %4083 = vmatmul.mubr.bf16.gmra.mrb[8].mxu0 %v5169_v11  ;;  %3862 = vmatprep.mubr.bf16.mxu1 %v5258_v43 }
  0x99   : > { %4086 = vmatprep.mubr.bf16.mxu0 %v5179_v27  ;;  %4115 = vmatpush3.bf16.msra.mxu0 %v4552_v62  ;;  %v4562_v62 = vld [vmem:[%s5509_s1 + $0x208] sm:$0xff]  }
  0x9a   : > { %4116 = vmatprep.subr.bf16.mxu0 %v4554_v56 }
  0x9d   : > { %4117 = vmatpush3.bf16.msra.mxu0 %v4554_v56  ;;  %v4566_v56 = vld [vmem:[%s5509_s1 + $0x218] sm:$0xff]  }
  0x9e   : > { %4118 = vmatprep.subr.bf16.mxu0 %v4556_v50 }
  0x9f   : > { %3863 = vmatmul.mubr.bf16.gmra.mrb[28].mxu1 %v5274_v60 }
  0xa0   : > { %4087 = vmatmul.mubr.bf16.gmra.mrb[12].mxu0 %v5199_v10  ;;  %3882 = vmatprep.mubr.bf16.mxu1 %v5524_v44 }
  0xa1   : > { %4090 = vmatprep.mubr.bf16.mxu0 %v5205_v30  ;;  %4119 = vmatpush3.bf16.msra.mxu0 %v4556_v50 }
  0xa2   : > { %4120 = vmatprep.subr.bf16.mxu0 %v4558_v5 }
  0xa5   : > { %4121 = vmatpush3.bf16.msra.mxu0 %v4558_v5 }
  0xa6   : > { %4154 = vmatprep.subr.bf16.mxu0 %v4560_v49 }
  0xa7   : > { %3883 = vmatmul.mubr.bf16.vlgmr.msra.gmra.mrb[0].mxu1 %v4828_v23  ;;  %v4557_v23 = vld [vmem:[%s5509_s1 + $0xd8] sm:$0xff]  }
  0xa8   : > { %4091 = vmatmul.mubr.bf16.gmra.mrb[16].mxu0 %v5226_v38  ;;  %3915 = vmatpush3.bf16.msra.mxu1 %v4551_v20  ;;  %v478_v20 = vor.u32 %v476_v33, %v475_v7  ;;  %v4565_v33 = vld [vmem:[%s5509_s1 + $0xf8] sm:$0xff]  }
  0xa9   : > { %3886 = vmatprep.mubr.bf16.mxu1 %v4867_v45  ;;  %4094 = vmatprep.mubr.bf16.mxu0 %v5232_v6 }
  0xaa   : > { %3916 = vmatprep.subr.bf16.mxu1 %v4553_v54  ;;  %v5312_v17 = vsel %vm5012_vm5, 0, %v478_v20 }
  0xac   : > { %3917 = vmatpush3.bf16.msra.mxu1 %v4553_v54 }
  0xad   : > { %3918 = vmatprep.subr.bf16.mxu1 %v4555_v21 }
  0xaf   : > { %3887 = vmatmul.mubr.bf16.gmra.mrb[4].mxu1 %v4878_v52 }
  0xb0   : > { %4095 = vmatmul.mubr.bf16.gmra.mrb[20].mxu0 %v5252_v12  ;;  %3890 = vmatprep.mubr.bf16.mxu1 %v4910_v14 }
  0xb1   : > { %4098 = vmatprep.mubr.bf16.mxu0 %v5258_v43  ;;  %3919 = vmatpush3.bf16.msra.mxu1 %v4555_v21 }
  0xb2   : > { %3920 = vmatprep.subr.bf16.mxu1 %v4557_v23 }
  0xb5   : > { %3921 = vmatpush3.bf16.msra.mxu1 %v4557_v23 }
  0xb6   : > { %3922 = vmatprep.subr.bf16.mxu1 %v4559_v22 }
  0xb7   : > { %3891 = vmatmul.mubr.bf16.gmra.mrb[8].mxu1 %v4917_v19 }
  0xb8   : > { %4099 = vmatmul.mubr.bf16.gmra.mrb[24].mxu0 %v5274_v60  ;;  %3894 = vmatprep.mubr.bf16.mxu1 %v4957_v55 }
  0xb9   : > { %4102 = vmatprep.mubr.bf16.mxu0 %v5312_v17  ;;  %3923 = vmatpush3.bf16.msra.mxu1 %v4559_v22 }
  0xba   : > { %3924 = vmatprep.subr.bf16.mxu1 %v4561_v29 }
  0xbd   : > { %3925 = vmatpush3.bf16.msra.mxu1 %v4561_v29 }
  0xbe   : > { %3926 = vmatprep.subr.bf16.mxu1 %v4563_v37 }
  0xbf   : > { %3895 = vmatmul.mubr.bf16.gmra.mrb[12].mxu1 %v4962_v57 }
  0xc0   : > { %4103 = vmatmul.mubr.bf16.gmra.mrb[28].mxu0 %v5524_v44  ;;  %3898 = vmatprep.mubr.bf16.mxu1 %v4993_v28 }
  0xc1   : > { %4122 = vmatprep.mubr.bf16.mxu0 %v4722_v32  ;;  %3927 = vmatpush3.bf16.msra.mxu1 %v4563_v37  ;;  %v4564_v32 = vld [vmem:[%s5509_s1 + $0x210] sm:$0xff]  }
  0xc2   : > { %3928 = vmatprep.subr.bf16.mxu1 %v4565_v33 }
  0xc5   : > { %3929 = vmatpush3.bf16.msra.mxu1 %v4565_v33 }
  0xc6   : > { %4202 = vmatprep.subr.bf16.mxu1 %v4571_v53 }
  0xc7   : > { %3899 = vmatmul.mubr.bf16.gmra.mrb[16].mxu1 %v4999_v31 }
  0xc8   : > { %4123 = vmatmul.mubr.bf16.vlgmr.msra.gmra.mrb[0].mxu0 %v4729_v36  ;;  %3902 = vmatprep.mubr.bf16.mxu1 %v5040_v1  ;;  %v4567_v36 = vld [vmem:[%s5509_s1 + $0x220] sm:$0xff]  }
  0xc9   : > { %4155 = vmatpush3.bf16.msra.mxu0 %v4560_v49  ;;  %4126 = vmatprep.mubr.bf16.mxu0 %v4750_v46  ;;  %v4568_v46 = vld [vmem:[%s5509_s1 + $0x228] sm:$0xff]  }
  0xca   : > { %4156 = vmatprep.subr.bf16.mxu0 %v4562_v62 }
  0xcd   : > { %4157 = vmatpush3.bf16.msra.mxu0 %v4562_v62 }
  0xce   : > { %4158 = vmatprep.subr.bf16.mxu0 %v4564_v32 }
  0xcf   : > { %3903 = vmatmul.mubr.bf16.gmra.mrb[20].mxu1 %v5054_v41 }
  0xd0   : > { %4127 = vmatmul.mubr.bf16.gmra.mrb[4].mxu0 %v4752_v47  ;;  %3906 = vmatprep.mubr.bf16.mxu1 %v5094_v2  ;;  %v4569_v47 = vld [vmem:[%s5509_s1 + $0x230] sm:$0xff]  }
  0xd1   : > { %4130 = vmatprep.mubr.bf16.mxu0 %v4779_v61  ;;  %4159 = vmatpush3.bf16.msra.mxu0 %v4564_v32  ;;  %v4570_v61 = vld [vmem:[%s5509_s1 + $0x238] sm:$0xff]  }
  0xd2   : > { %4160 = vmatprep.subr.bf16.mxu0 %v4566_v56 }
  0xd5   : > { %4161 = vmatpush3.bf16.msra.mxu0 %v4566_v56 }
  0xd6   : > { %4162 = vmatprep.subr.bf16.mxu0 %v4567_v36 }
  0xd7   : > { %3907 = vmatmul.mubr.bf16.gmra.mrb[24].mxu1 %v5104_v34 }
  0xd8   : > { %4131 = vmatmul.mubr.bf16.gmra.mrb[8].mxu0 %v4782_v63  ;;  %3910 = vmatprep.mubr.bf16.mxu1 %v5138_v25  ;;  %v4572_v63 = vld [vmem:[%s5509_s1 + $0x108] sm:$0xff]  }
  0xd9   : > { %4134 = vmatprep.mubr.bf16.mxu0 %v4817_v16  ;;  %4163 = vmatpush3.bf16.msra.mxu0 %v4567_v36  ;;  %v4573_v16 = vld [vmem:[%s5509_s1 + $0x110] sm:$0xff]  }
  0xda   : > { %4164 = vmatprep.subr.bf16.mxu0 %v4568_v46 }
  0xdd   : > { %4165 = vmatpush3.bf16.msra.mxu0 %v4568_v46 }
  0xde   : > { %4166 = vmatprep.subr.bf16.mxu0 %v4569_v47 }
  0xdf   : > { %3911 = vmatmul.mubr.bf16.gmra.mrb[28].mxu1 %v5149_v18 }
  0xe0   : > { %4135 = vmatmul.mubr.bf16.gmra.mrb[12].mxu0 %v4855_v40  ;;  %3930 = vmatprep.mubr.bf16.mxu1 %v5031_v58  ;;  %v4574_v58 = vld [vmem:[%s5509_s1 + $0x118] sm:$0xff]  }
  0xe1   : > { %4138 = vmatprep.mubr.bf16.mxu0 %v4869_v48  ;;  %4167 = vmatpush3.bf16.msra.mxu0 %v4569_v47 }
  0xe2   : > { %4168 = vmatprep.subr.bf16.mxu0 %v4570_v61 }
  0xe5   : > { %4169 = vmatpush3.bf16.msra.mxu0 %v4570_v61 }
  0xe7   : > { %3931 = vmatmul.mubr.bf16.vlgmr.msra.gmra.mrb[0].mxu1 %v5044_v9  ;;  %v4575_v9 = vld [vmem:[%s5509_s1 + $0x120] sm:$0xff]  }
  0xe8   : > { %4139 = vmatmul.mubr.bf16.gmra.mrb[16].mxu0 %v4904_v8  ;;  %4210 = vmatpush3.bf16.msra.mxu1 %v4571_v53 }
  0xe9   : > { %3934 = vmatprep.mubr.bf16.mxu1 %v5083_v0  ;;  %4142 = vmatprep.mubr.bf16.mxu0 %v4912_v15  ;;  %v4576_v0 = vld [vmem:[%s5509_s1 + $0x128] sm:$0xff]  }
  0xea   : > { %4203 = vmatprep.subr.bf16.mxu1 %v4572_v63 }
  0xec   : > { %4211 = vmatpush3.bf16.msra.mxu1 %v4572_v63 }
  0xed   : > { %4204 = vmatprep.subr.bf16.mxu1 %v4573_v16 }
  0xef   : > { %3935 = vmatmul.mubr.bf16.gmra.mrb[4].mxu1 %v5087_v24  ;;  %v3357_v24 = vcombine.low %v5524_v44, %v5524_v44 }
  0xf0   : > { %4143 = vmatmul.mubr.bf16.gmra.mrb[20].mxu0 %v4945_v42  ;;  %3938 = vmatprep.mubr.bf16.mxu1 %v5130_v35  ;;  %v4577_v35 = vld [vmem:[%s5509_s1 + $0x130] sm:$0xff]  }
  0xf1   : > { %4146 = vmatprep.mubr.bf16.mxu0 %v4950_v51  ;;  %4212 = vmatpush3.bf16.msra.mxu1 %v4573_v16 }
  0xf2   : > { %4205 = vmatprep.subr.bf16.mxu1 %v4574_v58 }
  0xf5   : > { %4213 = vmatpush3.bf16.msra.mxu1 %v4574_v58 }
  0xf6   : > { %4206 = vmatprep.subr.bf16.mxu1 %v4575_v9 }
  0xf7   : > { %3939 = vmatmul.mubr.bf16.gmra.mrb[8].mxu1 %v5142_v59  ;;  %v4578_v59 = vld [vmem:[%s5509_s1 + $0x138] sm:$0xff]  }
  0xf8   : > { %4147 = vmatmul.mubr.bf16.gmra.mrb[24].mxu0 %v4989_v26  ;;  %3942 = vmatprep.mubr.bf16.mxu1 %v5169_v11 }
  0xf9   : > { %4150 = vmatprep.mubr.bf16.mxu0 %v5100_v13  ;;  %4214 = vmatpush3.bf16.msra.mxu1 %v4575_v9 }
  0xfa   : > { %4207 = vmatprep.subr.bf16.mxu1 %v4576_v0 }
  0xfd   : > { %4215 = vmatpush3.bf16.msra.mxu1 %v4576_v0 }
  0xfe   : > { %4208 = vmatprep.subr.bf16.mxu1 %v4577_v35 }
  0xff   : > { %3943 = vmatmul.mubr.bf16.gmra.mrb[12].mxu1 %v5179_v27 }
 0x100   : > { %4151 = vmatmul.mubr.bf16.gmra.mrb[28].mxu0 %v3357_v24  ;;  %3946 = vmatprep.mubr.bf16.mxu1 %v5199_v10 }
 0x101   : > { %4170 = vmatprep.mubr.bf16.mxu0 %v4867_v45  ;;  %4216 = vmatpush3.bf16.msra.mxu1 %v4577_v35 }
 0x102   : > { %4209 = vmatprep.subr.bf16.mxu1 %v4578_v59 }
 0x105   : > { %4217 = vmatpush3.bf16.msra.mxu1 %v4578_v59 }
 0x107   : > { %3947 = vmatmul.mubr.bf16.gmra.mrb[16].mxu1 %v5205_v30 }
 0x108   : > { %4171 = vmatmul.mubr.bf16.vlgmr.msra.gmra.mrb[0].mxu0 %v4878_v52  ;;  %3950 = vmatprep.mubr.bf16.mxu1 %v5226_v38 }
 0x109   : > { %4174 = vmatprep.mubr.bf16.mxu0 %v4910_v14 }
 0x10f   : > { %3951 = vmatmul.mubr.bf16.gmra.mrb[20].mxu1 %v5232_v6 }
 0x110   : > { %4175 = vmatmul.mubr.bf16.gmra.mrb[4].mxu0 %v4917_v19  ;;  %3954 = vmatprep.mubr.bf16.mxu1 %v5252_v12 }
 0x111   : > { %4178 = vmatprep.mubr.bf16.mxu0 %v4957_v55 }
 0x117   : > { %3955 = vmatmul.mubr.bf16.gmra.mrb[24].mxu1 %v5258_v43 }
 0x118   : > { %4179 = vmatmul.mubr.bf16.gmra.mrb[8].mxu0 %v4962_v57  ;;  %3958 = vmatprep.mubr.bf16.mxu1 %v5274_v60 }
 0x119   : > { %4182 = vmatprep.mubr.bf16.mxu0 %v4993_v28 }
 0x11f   : > { %3959 = vmatmul.mubr.bf16.gmra.mrb[28].mxu1 %v5312_v17 }
 0x120   : > { %4183 = vmatmul.mubr.bf16.gmra.mrb[12].mxu0 %v4999_v31  ;;  %3994 = vmatprep.mubr.bf16.mxu1 %v4855_v40 }
 0x121   : > { %4186 = vmatprep.mubr.bf16.mxu0 %v5040_v1 }
 0x127   : > { %3995 = vmatmul.mubr.bf16.vlgmr.msra.gmra.mrb[16].mxu1 %v4869_v48 }
 0x128   : > { %4187 = vmatmul.mubr.bf16.gmra.mrb[16].mxu0 %v5054_v41  ;;  %3998 = vmatprep.mubr.bf16.mxu1 %v4904_v8 }
 0x129   : > { %4190 = vmatprep.mubr.bf16.mxu0 %v5094_v2 }
 0x12f   : > { %3999 = vmatmul.mubr.bf16.gmra.mrb[20].mxu1 %v4912_v15 }
 0x130   : > { %4191 = vmatmul.mubr.bf16.gmra.mrb[20].mxu0 %v5104_v34  ;;  %4002 = vmatprep.mubr.bf16.mxu1 %v4945_v42  ;;  %v5442_v34 = vld [vmem:[%s5510_s2] ss:$0 sm:$0xff] }
 0x131   : > { %4194 = vmatprep.mubr.bf16.mxu0 %v5138_v25 }
 0x137   : > { %4003 = vmatmul.mubr.bf16.gmra.mrb[24].mxu1 %v4950_v51 }
 0x138   : > { %4195 = vmatmul.mubr.bf16.gmra.mrb[24].mxu0 %v5149_v18  ;;  %4006 = vmatprep.mubr.bf16.mxu1 %v4989_v26 }
 0x139   : > { %4198 = vmatprep.mubr.bf16.mxu0 %v5175_v39 }
 0x13f   : > { %4007 = vmatmul.mubr.bf16.gmra.mrb[28].mxu1 %v5100_v13 }
 0x140   : > { %4199 = vmatmul.mubr.bf16.gmra.mrb[28].mxu0 %v5524_v44 }
 0x1ba   : > { %v3932_v2 = vpop.f32.mrb[0].mxu1 }
 0x1bb   : > { %v1404_v40 = vpop.f32.mrb[1].mxu1 }
 0x1bc   : > { %v3933_v45 = vpop.f32.mrb[2].mxu1 }
 0x1bd   : > { %v1407_v48 = vpop.f32.mrb[3].mxu1 }
 0x1c2   : > { %v3936_v52 = vpop.f32.mrb[4].mxu1 }
 0x1c3   : > { %v1420_v8 = vpop.f32.mrb[5].mxu1 }
 0x1c4   : > { %v3937_v14 = vpop.f32.mrb[6].mxu1 }
 0x1c5   : > { %v1423_v15 = vpop.f32.mrb[7].mxu1 }
 0x1ca   : > { %v3940_v19 = vpop.f32.mrb[8].mxu1 }
 0x1cb   : > { %v1436_v42 = vpop.f32.mrb[9].mxu1 }
 0x1cc   : > { %v3941_v51 = vpop.f32.mrb[10].mxu1 }
 0x1cd   : > { %v1439_v55 = vpop.f32.mrb[11].mxu1 }
 0x1d2   : > { %v3944_v57 = vpop.f32.mrb[12].mxu1 }
 0x1d3   : > { %v1452_v26 = vpop.f32.mrb[13].mxu1 }
 0x1d4   : > { %v3945_v28 = vpop.f32.mrb[14].mxu1 }
 0x1d5   : > { %v1455_v31 = vpop.f32.mrb[15].mxu1 }
 0x1db   : > { %v4172_v1 = vpop.f32.mrb[0].mxu0 }
 0x1dc   : > { %v4218_v41 = vadd.f32 %v4172_v1, %v3932_v2  ;;  %v2699_v13 = vpop.f32.mrb[1].mxu0 }
 0x1dd   : > { %v4219_v25 = vadd.f32 %v2699_v13, %v1404_v40  ;;  %v4173_v18 = vpop.f32.mrb[2].mxu0 }
 0x1de   : > { %v4220_v11 = vadd.f32 %v4173_v18, %v3933_v45  ;;  %v2702_v39 = vpop.f32.mrb[3].mxu0  ;;  %v2867_v10 = vadd.f32 %v4218_v41, %v5442_v34 }
 0x1df   : > { %v4221_v27 = vadd.f32 %v2702_v39, %v1407_v48  ;;  %v2865_v38 = vadd.f32 %v4219_v25, %v5442_v34 }
 0x1e0   : > { %v2868_v30 = vadd.f32 %v4220_v11, %v5442_v34 }
 0x1e1   : > { %v2866_v6 = vadd.f32 %v4221_v27, %v5442_v34 }
 0x1e2   : > { %v3467_v12 = vpack.c.bf16 %v2868_v30, %v2867_v10 }
 0x1e3   : > { %v3462_v43 = vpack.c.bf16 %v2866_v6, %v2865_v38  ;;  %v4176_v4 = vpop.f32.mrb[4].mxu0 }
 0x1e4   : > { %3539 = vst [vmem:[%s5452_s4 + $0x8] sm:$0xff] %v3467_v12   ;;  %v4222_v3 = vadd.f32 %v4176_v4, %v3936_v52  ;;  %v2715_v50 = vpop.f32.mrb[5].mxu0 }
 0x1e5   : > { %3463 = vst [vmem:[%s5452_s4] sm:$0xff] %v3462_v43   ;;  %v4223_v60 = vadd.f32 %v2715_v50, %v1420_v8  ;;  %v4177_v5 = vpop.f32.mrb[6].mxu0 }
 0x1e6   : > { %v4224_v44 = vadd.f32 %v4177_v5, %v3937_v14  ;;  %v2718_v49 = vpop.f32.mrb[7].mxu0  ;;  %v2871_v21 = vadd.f32 %v4222_v3, %v5442_v34 }
 0x1e7   : > { %v4225_v54 = vadd.f32 %v2718_v49, %v1423_v15  ;;  %v2869_v23 = vadd.f32 %v4223_v60, %v5442_v34 }
 0x1e8   : > { %v2872_v7 = vadd.f32 %v4224_v44, %v5442_v34 }
 0x1e9   : > { %v2870_v20 = vadd.f32 %v4225_v54, %v5442_v34 }
 0x1ea   : > { %v3477_v22 = vpack.c.bf16 %v2872_v7, %v2871_v21 }
 0x1eb   : > { %v3472_v17 = vpack.c.bf16 %v2870_v20, %v2869_v23  ;;  %v4180_v29 = vpop.f32.mrb[8].mxu0 }
 0x1ec   : > { %3541 = vst [vmem:[%s5452_s4 + $0x18] sm:$0xff] %v3477_v22   ;;  %v4226_v37 = vadd.f32 %v4180_v29, %v3940_v19  ;;  %v2731_v33 = vpop.f32.mrb[9].mxu0 }
 0x1ed   : > { %3540 = vst [vmem:[%s5452_s4 + $0x10] sm:$0xff] %v3472_v17   ;;  %v4227_v62 = vadd.f32 %v2731_v33, %v1436_v42  ;;  %v4181_v53 = vpop.f32.mrb[10].mxu0 }
 0x1ee   : > { %v4228_v32 = vadd.f32 %v4181_v53, %v3941_v51  ;;  %v2734_v56 = vpop.f32.mrb[11].mxu0  ;;  %v2875_v46 = vadd.f32 %v4226_v37, %v5442_v34 }
 0x1ef   : > { %v4229_v36 = vadd.f32 %v2734_v56, %v1439_v55  ;;  %v2873_v61 = vadd.f32 %v4227_v62, %v5442_v34 }
 0x1f0   : > { %v2876_v47 = vadd.f32 %v4228_v32, %v5442_v34 }
 0x1f1   : > { %v2874_v63 = vadd.f32 %v4229_v36, %v5442_v34 }
 0x1f2   : > { %v3487_v16 = vpack.c.bf16 %v2876_v47, %v2875_v46 }
 0x1f3   : > { %v3482_v58 = vpack.c.bf16 %v2874_v63, %v2873_v61  ;;  %v4184_v9 = vpop.f32.mrb[12].mxu0 }
 0x1f4   : > { %3543 = vst [vmem:[%s5452_s4 + $0x28] sm:$0xff] %v3487_v16   ;;  %v4230_v0 = vadd.f32 %v4184_v9, %v3944_v57  ;;  %v2747_v24 = vpop.f32.mrb[13].mxu0 }
 0x1f5   : > { %3542 = vst [vmem:[%s5452_s4 + $0x20] sm:$0xff] %v3482_v58   ;;  %v4231_v35 = vadd.f32 %v2747_v24, %v1452_v26  ;;  %v4185_v59 = vpop.f32.mrb[14].mxu0 }
 0x1f6   : > { %v4232_v2 = vadd.f32 %v4185_v59, %v3945_v28  ;;  %v2750_v40 = vpop.f32.mrb[15].mxu0  ;;  %v2879_v48 = vadd.f32 %v4230_v0, %v5442_v34 }
 0x1f7   : > { %v4233_v45 = vadd.f32 %v2750_v40, %v1455_v31  ;;  %v2877_v8 = vadd.f32 %v4231_v35, %v5442_v34 }
 0x1f8   : > { %v2880_v52 = vadd.f32 %v4232_v2, %v5442_v34 }
 0x1f9   : > { %v2878_v14 = vadd.f32 %v4233_v45, %v5442_v34 }
 0x1fa   : > { %v3497_v15 = vpack.c.bf16 %v2880_v52, %v2879_v48  ;;  %v3996_v19 = vpop.f32.mrb[16].mxu1 }
 0x1fb   : > { %v3492_v42 = vpack.c.bf16 %v2878_v14, %v2877_v8  ;;  %v4188_v51 = vpop.f32.mrb[16].mxu0  ;;  %v1727_v55 = vpop.f32.mrb[17].mxu1 }
 0x1fc   : > { %3545 = vst [vmem:[%s5452_s4 + $0x38] sm:$0xff] %v3497_v15   ;;  %v4234_v57 = vadd.f32 %v4188_v51, %v3996_v19  ;;  %v2763_v26 = vpop.f32.mrb[17].mxu0  ;;  %v3997_v28 = vpop.f32.mrb[18].mxu1 }
 0x1fd   : > { %3544 = vst [vmem:[%s5452_s4 + $0x30] sm:$0xff] %v3492_v42   ;;  %v4235_v31 = vadd.f32 %v2763_v26, %v1727_v55  ;;  %v4189_v1 = vpop.f32.mrb[18].mxu0  ;;  %v1730_v41 = vpop.f32.mrb[19].mxu1 }
 0x1fe   : > { %v4236_v13 = vadd.f32 %v4189_v1, %v3997_v28  ;;  %v2766_v25 = vpop.f32.mrb[19].mxu0  ;;  %v2883_v11 = vadd.f32 %v4234_v57, %v5442_v34 }
 0x1ff   : > { %v4237_v18 = vadd.f32 %v2766_v25, %v1730_v41  ;;  %v2881_v27 = vadd.f32 %v4235_v31, %v5442_v34 }
 0x200   : > { %v2884_v39 = vadd.f32 %v4236_v13, %v5442_v34 }
 0x201   : > { %v2882_v10 = vadd.f32 %v4237_v18, %v5442_v34 }
 0x202   : > { %v3507_v30 = vpack.c.bf16 %v2884_v39, %v2883_v11  ;;  %v4000_v38 = vpop.f32.mrb[20].mxu1 }
 0x203   : > { %v3502_v6 = vpack.c.bf16 %v2882_v10, %v2881_v27  ;;  %v4192_v12 = vpop.f32.mrb[20].mxu0  ;;  %v1743_v43 = vpop.f32.mrb[21].mxu1 }
 0x204   : > { %3547 = vst [vmem:[%s5452_s4 + $0x48] sm:$0xff] %v3507_v30   ;;  %v4238_v4 = vadd.f32 %v4192_v12, %v4000_v38  ;;  %v2779_v3 = vpop.f32.mrb[21].mxu0  ;;  %v4001_v50 = vpop.f32.mrb[22].mxu1 }
 0x205   : > { %3546 = vst [vmem:[%s5452_s4 + $0x40] sm:$0xff] %v3502_v6   ;;  %v4239_v60 = vadd.f32 %v2779_v3, %v1743_v43  ;;  %v4193_v5 = vpop.f32.mrb[22].mxu0  ;;  %v1746_v44 = vpop.f32.mrb[23].mxu1 }
 0x206   : > { %v4240_v49 = vadd.f32 %v4193_v5, %v4001_v50  ;;  %v2782_v54 = vpop.f32.mrb[23].mxu0  ;;  %v2887_v7 = vadd.f32 %v4238_v4, %v5442_v34 }
 0x207   : > { %v4241_v21 = vadd.f32 %v2782_v54, %v1746_v44  ;;  %v2885_v20 = vadd.f32 %v4239_v60, %v5442_v34 }
 0x208   : > { %v2888_v23 = vadd.f32 %v4240_v49, %v5442_v34 }
 0x209   : > { %v2886_v22 = vadd.f32 %v4241_v21, %v5442_v34 }
 0x20a   : > { %v3517_v17 = vpack.c.bf16 %v2888_v23, %v2887_v7  ;;  %v4004_v29 = vpop.f32.mrb[24].mxu1 }
 0x20b   : > { %v3512_v37 = vpack.c.bf16 %v2886_v22, %v2885_v20  ;;  %v4196_v33 = vpop.f32.mrb[24].mxu0  ;;  %v1759_v62 = vpop.f32.mrb[25].mxu1 }
 0x20c   : > { %3549 = vst [vmem:[%s5452_s4 + $0x58] sm:$0xff] %v3517_v17   ;;  %v4242_v53 = vadd.f32 %v4196_v33, %v4004_v29  ;;  %v2795_v32 = vpop.f32.mrb[25].mxu0  ;;  %v4005_v56 = vpop.f32.mrb[26].mxu1 }
 0x20d   : > { %3548 = vst [vmem:[%s5452_s4 + $0x50] sm:$0xff] %v3512_v37   ;;  %v4243_v36 = vadd.f32 %v2795_v32, %v1759_v62  ;;  %v4197_v46 = vpop.f32.mrb[26].mxu0  ;;  %v1762_v47 = vpop.f32.mrb[27].mxu1 }
 0x20e   : > { %v4244_v61 = vadd.f32 %v4197_v46, %v4005_v56  ;;  %v2798_v63 = vpop.f32.mrb[27].mxu0  ;;  %v2891_v58 = vadd.f32 %v4242_v53, %v5442_v34 }
 0x20f   : > { %v4245_v16 = vadd.f32 %v2798_v63, %v1762_v47  ;;  %v2889_v0 = vadd.f32 %v4243_v36, %v5442_v34 }
 0x210   : > { %v2892_v9 = vadd.f32 %v4244_v61, %v5442_v34 }
 0x211   : > { %v2890_v24 = vadd.f32 %v4245_v16, %v5442_v34 }
 0x212   : > { %v3527_v35 = vpack.c.bf16 %v2892_v9, %v2891_v58  ;;  %v4008_v59 = vpop.f32.mrb[28].mxu1 }
 0x213   : > { %v3522_v2 = vpack.c.bf16 %v2890_v24, %v2889_v0  ;;  %v4200_v40 = vpop.f32.mrb[28].mxu0  ;;  %v1775_v45 = vpop.f32.mrb[29].mxu1 }
 0x214   : > { %3551 = vst [vmem:[%s5452_s4 + $0x68] sm:$0xff] %v3527_v35   ;;  %v4246_v48 = vadd.f32 %v4200_v40, %v4008_v59  ;;  %v2811_v52 = vpop.f32.mrb[29].mxu0  ;;  %v4009_v8 = vpop.f32.mrb[30].mxu1 }
 0x215   : > { %3550 = vst [vmem:[%s5452_s4 + $0x60] sm:$0xff] %v3522_v2   ;;  %v4247_v14 = vadd.f32 %v2811_v52, %v1775_v45  ;;  %v4201_v15 = vpop.f32.mrb[30].mxu0  ;;  %v1778_v19 = vpop.f32.mrb[31].mxu1 }
 0x216   : > { %v4248_v42 = vadd.f32 %v4201_v15, %v4009_v8  ;;  %v2814_v51 = vpop.f32.mrb[31].mxu0  ;;  %v2895_v57 = vadd.f32 %v4246_v48, %v5442_v34 }
 0x217   : > { %v4249_v55 = vadd.f32 %v2814_v51, %v1778_v19  ;;  %v2893_v28 = vadd.f32 %v4247_v14, %v5442_v34 }
 0x218   : > { %v2896_v26 = vadd.f32 %v4248_v42, %v5442_v34 }
 0x219   : > { %v2894_v31 = vadd.f32 %v4249_v55, %v5442_v34 }
 0x21a   : > { %v3537_v1 = vpack.c.bf16 %v2896_v26, %v2895_v57 }
 0x21b   : > { %v3532_v41 = vpack.c.bf16 %v2894_v31, %v2893_v28 }
 0x21c   : > { %3553 = vst [vmem:[%s5452_s4 + $0x78] sm:$0xff] %v3537_v1  }
 0x21d   : > { %3552 = vst [vmem:[%s5452_s4 + $0x70] sm:$0xff] %v3532_v41  }
 0x21e PF: > { %s13_s14 = sadd.s32 1, %s4601_s14   ;;  %s5525_s12 = smov %s4597_s13 }
 0x21f   : > { %p10_p5 = scmp.ge.s32.totalorder %s13_s14, 4   ;;  %s5526_s13 = smov %s5528_s15 }
 0x221   :  { %12 = sbr.rel (!%p10_p5) target bundleno = 2 (0x2), region = 76 }

// kernel: upsample_block_forward.9
= control target key start
LH: loop header
LB: loop body
LE: loop exit
PB: predicated region body
PF: predicated region fallthrough
CT: control target
= control target key end

     0   :  { %s4883_s15 = smov 0   ;;  %s4885_s16 = smov 0   ;;  %s5807_s0 = inlined_call_operand.vmem [shape: bf16[2,16,16,128], index: 0, kind: input, shape index: {}]   ;;  %s5808_s1 = inlined_call_operand.vmem [shape: bf16[9,128,128], index: 1, kind: input, shape index: {}]   ;;  %s5809_s2 = inlined_call_operand.vmem [shape: f32[1,128], index: 2, kind: input, shape index: {}]   ;;  %s5810_s3 = inlined_call_operand.vmem [shape: bf16[2,16,16,128], index: 3, kind: input, shape index: {}]   ;;  %s5811_s4 = inlined_call_operand.vmem [shape: bf16[2,16,16,128], index: 4, kind: output, shape index: {}]  }
   0x1   :  { %s4887_s17 = smov 0  }
   0x2 LB: > { %s26_s18 = sadd.s32 1, %s4851_s16  ;;  %p3340_p0 = scmp.ge.s32.totalorder %s4855_s17, 1  ;;  %s4855_s17 = sphi %s4887_s17, %s14_s17   ;;  %s4851_s16 = sphi %s4885_s16, %s5826_s16   ;;  %s4847_s15 = sphi %s4883_s15, %s5825_s15  }
   0x3   : > { %p28_p1 = scmp.ge.s32.totalorder %s26_s18, 2  ;;  %p208_p2 = scmp.lt.s32.totalorder %s4855_s17, 3 }
   0x5   : > { %s5828_s18 = smov (%p28_p1, %s26_s18), 0  ;;  %p209_p3 = pnand %p3340_p0, %p208_p2 }
   0x6   : > { %v4753_v0 = vld [vmem:[%s5808_s1 + $0x40] sm:$0xff] (!%p209_p3)   ;;  %v5812_v2 = vmov (!%p209_p3), 0   ;;  %v4755_v3 = vld [vmem:[%s5808_s1 + $0x48] sm:$0xff] (!%p209_p3)   ;;  %p252_p4 = scmp.lt.s32.totalorder (!%p209_p3), %s4847_s15, 1  ;;  %v4757_v5 = vld [vmem:[%s5808_s1 + $0x50] sm:$0xff] (!%p209_p3)   ;;  %vm620_vm0 = vcmask (!%p209_p3), 1047552  }
   0x7   : > { %212 = sbr.rel (%p209_p3) target bundleno = 544 (0x220), region = 36  ;;  %v4754_v1 = vld [vmem:[%s5808_s1 + $0x100] sm:$0xff] (!%p209_p3)   ;;  %4040 = vmatprep.mubr.bf16.mxu1 (!%p209_p3), %v5812_v2  ;;  %4024 = vmatprep.subr.bf16.mxu1 (!%p209_p3), %v4753_v0  ;;  %v4756_v4 = vld [vmem:[%s5808_s1 + $0x108] sm:$0xff] (!%p209_p3)   ;;  %v4758_v6 = vld [vmem:[%s5808_s1 + $0x110] sm:$0xff] (!%p209_p3)   ;;  %vm621_vm1 = vsmask.f32 (!%p209_p3), 7424 }
   0x8   : > { %4216 = vmatprep.subr.bf16.mxu0 (!%p209_p3), %v4754_v1  ;;  %4025 = vmatpush3.bf16.msra.mxu1 (!%p209_p3), %v4753_v0  ;;  %v4759_v7 = vld [vmem:[%s5808_s1 + $0x58] sm:$0xff] (!%p209_p3)   ;;  %v4761_v9 = vld [vmem:[%s5808_s1 + $0x60] sm:$0xff] (!%p209_p3)   ;;  %v4763_v11 = vld [vmem:[%s5808_s1 + $0x68] sm:$0xff] (!%p209_p3)   ;;  %vm553_vm3 = vcmask (!%p209_p3), 1040384   ;;  %vm554_vm4 = vsmask.f32 (!%p209_p3), 256 }
   0x9   : > { %4217 = vmatpush3.bf16.msra.mxu0 (!%p209_p3), %v4754_v1  ;;  %4026 = vmatprep.subr.bf16.mxu1 (!%p209_p3), %v4755_v3  ;;  %v4760_v8 = vld [vmem:[%s5808_s1 + $0x118] sm:$0xff] (!%p209_p3)   ;;  %v4762_v10 = vld [vmem:[%s5808_s1 + $0x120] sm:$0xff] (!%p209_p3)   ;;  %v4764_v14 = vld [vmem:[%s5808_s1 + $0x128] sm:$0xff] (!%p209_p3)  }
   0xa   : > { %4218 = vmatprep.subr.bf16.mxu0 (!%p209_p3), %v4756_v4  ;;  %v4765_v18 = vld [vmem:[%s5808_s1 + $0x70] sm:$0xff] (!%p209_p3)   ;;  %v4767_v20 = vld [vmem:[%s5808_s1 + $0x78] sm:$0xff] (!%p209_p3)   ;;  %v4769_v28 = vld [vmem:[%s5808_s1] sm:$0xff] (!%p209_p3)  }
   0xb   : > { %v4766_v19 = vld [vmem:[%s5808_s1 + $0x130] sm:$0xff] (!%p209_p3)   ;;  %v4768_v23 = vld [vmem:[%s5808_s1 + $0x138] sm:$0xff] (!%p209_p3)   ;;  %v4770_v29 = vld [vmem:[%s5808_s1 + $0x140] sm:$0xff] (!%p209_p3)  }
   0xc   : > { %4027 = vmatpush3.bf16.msra.mxu1 (!%p209_p3), %v4755_v3  ;;  %v4771_v35 = vld [vmem:[%s5808_s1 + $0x148] sm:$0xff] (!%p209_p3)   ;;  %v4775_v44 = vld [vmem:[%s5808_s1 + $0x10] sm:$0xff] (!%p209_p3)   ;;  %v4774_v50 = vld [vmem:[%s5808_s1 + $0x158] sm:$0xff] (!%p209_p3)  }
   0xd   : > { %4219 = vmatpush3.bf16.msra.mxu0 (!%p209_p3), %v4756_v4  ;;  %4028 = vmatprep.subr.bf16.mxu1 (!%p209_p3), %v4757_v5  ;;  %v4772_v39 = vld [vmem:[%s5808_s1 + $0x8] sm:$0xff] (!%p209_p3)   ;;  %v4773_v45 = vld [vmem:[%s5808_s1 + $0x150] sm:$0xff] (!%p209_p3)   ;;  %v4778_v53 = vld [vmem:[%s5808_s1 + $0x18] sm:$0xff] (!%p209_p3)  }
   0xe   : > { %s5830_s15 = smov (!%p252_p4, %s4847_s15), 1  ;;  %4220 = vmatprep.subr.bf16.mxu0 %v4758_v6  ;;  %v4776_v58 = vld [vmem:[%s5808_s1 + $0x160] sm:$0xff]   ;;  %v4777_v1 = vld [vmem:[%s5808_s1 + $0x168] sm:$0xff]   ;;  %vm5064_vm2 = vmand %vm620_vm0, %vm621_vm1 }
   0xf   : > { %s4926_s9 = sshll.u32 %s5830_s15, 7  ;;  %v4781_v60 = vld [vmem:[%s5808_s1 + $0x20] sm:$0xff]   ;;  %vm5269_vm5 = vmand %vm553_vm3, %vm554_vm4 }
  0x10   : > { %4029 = vmatpush3.bf16.msra.mxu1 %v4757_v5  ;;  %s4938_s20 = scalar_lea.vmem %s5807_s0, %s4926_s9  ;;  %s5714_s6 = scalar_lea.vmem %s5810_s3, %s4926_s9 }
  0x11   : > { %4221 = vmatpush3.bf16.msra.mxu0 %v4758_v6  ;;  %4030 = vmatprep.subr.bf16.mxu1 %v4759_v7  ;;  %v281_v12 = vld [vmem:[%s4938_s20] sm:$0xf]  ;;  %v282_v13 = vld [vmem:[%s4938_s20 + $0x4] sm:$0xf]  ;;  %v283_v21 = vld [vmem:[%s4938_s20 + $0x8] sm:$0xf]  ;;  %s5731_s12 = scalar_lea.vmem %s5811_s4, %s4926_s9 }
  0x12   : > { %4222 = vmatprep.subr.bf16.mxu0 %v4760_v8  ;;  %v313_v15 = vmax.bf16 %v5812_v2, %v281_v12  ;;  %v314_v16 = vmax.bf16 %v5812_v2, %v282_v13  ;;  %v284_v22 = vld [vmem:[%s4938_s20 + $0xc] sm:$0xf]  ;;  %v285_v24 = vld [vmem:[%s4938_s20 + $0x10] sm:$0xf]  ;;  %v286_v25 = vld [vmem:[%s4938_s20 + $0x14] sm:$0xf]  ;;  %v315_v26 = vmax.bf16 %v5812_v2, %v283_v21 }
  0x13   : > { %v316_v27 = vmax.bf16 %v5812_v2, %v284_v22  ;;  %v317_v30 = vmax.bf16 %v5812_v2, %v285_v24  ;;  %v318_v31 = vmax.bf16 %v5812_v2, %v286_v25  ;;  %v287_v33 = vld [vmem:[%s4938_s20 + $0x18] sm:$0xf]  ;;  %v288_v34 = vld [vmem:[%s4938_s20 + $0x1c] sm:$0xf]  ;;  %v289_v37 = vld [vmem:[%s4938_s20 + $0x20] sm:$0xf] }
  0x14   : > { %4031 = vmatpush3.bf16.msra.mxu1 %v4759_v7  ;;  %v4950_v17 = vcombine.low %v313_v15, %v314_v16  ;;  %v290_v38 = vld [vmem:[%s4938_s20 + $0x24] sm:$0xf]  ;;  %v319_v40 = vmax.bf16 %v5812_v2, %v287_v33  ;;  %v320_v41 = vmax.bf16 %v5812_v2, %v288_v34  ;;  %v321_v42 = vmax.bf16 %v5812_v2, %v289_v37  ;;  %v291_v48 = vld [vmem:[%s4938_s20 + $0x28] sm:$0xf]  ;;  %v292_v49 = vld [vmem:[%s4938_s20 + $0x2c] sm:$0xf] }
  0x15   : > { %4223 = vmatpush3.bf16.msra.mxu0 %v4760_v8  ;;  %4032 = vmatprep.subr.bf16.mxu1 %v4761_v9  ;;  %v4979_v32 = vcombine.low %v315_v26, %v316_v27  ;;  %v4986_v36 = vcombine.low %v317_v30, %v318_v31  ;;  %v322_v43 = vmax.bf16 %v5812_v2, %v290_v38  ;;  %v293_v51 = vld [vmem:[%s4938_s20 + $0x30] sm:$0xf]  ;;  %v294_v52 = vld [vmem:[%s4938_s20 + $0x34] sm:$0xf]  ;;  %v295_v62 = vld [vmem:[%s4938_s20 + $0x38] sm:$0xf] }
  0x16   : > { %4224 = vmatprep.subr.bf16.mxu0 %v4762_v10  ;;  %4232 = vmatprep.mubr.bf16.mxu0 %v4950_v17  ;;  %v5007_v46 = vcombine.low %v319_v40, %v320_v41  ;;  %v323_v54 = vmax.bf16 %v5812_v2, %v291_v48  ;;  %v324_v55 = vmax.bf16 %v5812_v2, %v292_v49  ;;  %v429_v59 = vshll.u32 %v4950_v17, 16  ;;  %v296_v0 = vld [vmem:[%s4938_s20 + $0x3c] sm:$0xf]  ;;  %v4783_v6 = vld [vmem:[%s5808_s1 + $0x28] sm:$0xff]   ;;  %v4785_v15 = vld [vmem:[%s5808_s1 + $0x30] sm:$0xff]  }
  0x17   : > { %v5009_v47 = vcombine.low %v321_v42, %v322_v43  ;;  %v325_v56 = vmax.bf16 %v5812_v2, %v293_v51  ;;  %v326_v57 = vmax.bf16 %v5812_v2, %v294_v52  ;;  %v426_v3 = vshrl.u32 %v4950_v17, 16  ;;  %v300_v21 = vld [vmem:[%s4938_s20 + $0x4c] sm:$0xf]  ;;  %v4780_v22 = vld [vmem:[%s5808_s1 + $0x178] sm:$0xff]   ;;  %v4782_v34 = vld [vmem:[%s5808_s1 + $0x180] sm:$0xff]  }
  0x18   : > { %4033 = vmatpush3.bf16.msra.mxu1 %v4761_v9  ;;  %v5036_v61 = vcombine.low %v323_v54, %v324_v55  ;;  %v572_v4 = vrot.slane %v429_v59, 1  ;;  %v436_v5 = vshll.u32 %v4979_v32, 16  ;;  %v327_v7 = vmax.bf16 %v5812_v2, %v295_v62  ;;  %v4779_v9 = vld [vmem:[%s5808_s1 + $0x170] sm:$0xff]   ;;  %v303_v42 = vld [vmem:[%s4938_s20 + $0x58] sm:$0xf] }
  0x19   : > { %4225 = vmatpush3.bf16.msra.mxu0 %v4762_v10  ;;  %4034 = vmatprep.subr.bf16.mxu1 %v4763_v11  ;;  %v5039_v63 = vcombine.low %v325_v56, %v326_v57  ;;  %v328_v8 = vmax.bf16 %v5812_v2, %v296_v0  ;;  %v433_v13 = vshrl.u32 %v4979_v32, 16  ;;  %v440_v24 = vshrl.u32 %v4986_v36, 16  ;;  %v301_v38 = vld [vmem:[%s4938_s20 + $0x50] sm:$0xf]  ;;  %v304_v43 = vld [vmem:[%s4938_s20 + $0x5c] sm:$0xf] }
  0x1a   : > { %4226 = vmatprep.subr.bf16.mxu0 %v4764_v14  ;;  %v573_v10 = vor.u32 %v572_v4, %v426_v3  ;;  %v332_v31 = vmax.bf16 %v5812_v2, %v300_v21  ;;  %v450_v33 = vshll.u32 %v5007_v46, 16  ;;  %v447_v41 = vshrl.u32 %v5007_v46, 16  ;;  %v305_v0 = vld [vmem:[%s4938_s20 + $0x60] sm:$0xf] }
  0x1b   : > { %v5074_v16 = vcombine.low %v327_v7, %v328_v8  ;;  %v333_v54 = vmax.bf16 %v5812_v2, %v301_v38  ;;  %v335_v57 = vmax.bf16 %v5812_v2, %v303_v42  ;;  %v464_v62 = vshll.u32 %v5036_v61, 16  ;;  %v310_v38 = vld [vmem:[%s4938_s20 + $0x74] sm:$0xf] }
  0x1c   : > { %4035 = vmatpush3.bf16.msra.mxu1 %v4763_v11  ;;  %v443_v11 = vshll.u32 %v4986_v36, 16  ;;  %v578_v49 = vrot.slane %v450_v33, 1  ;;  %v461_v4 = vshrl.u32 %v5036_v61, 16  ;;  %v471_v7 = vshll.u32 %v5039_v63, 16 }
  0x1d   : > { %4227 = vmatpush3.bf16.msra.mxu0 %v4764_v14  ;;  %4036 = vmatprep.subr.bf16.mxu1 %v4765_v18  ;;  %v574_v14 = vrot.slane %v436_v5, 1 }
  0x1e   : > { %4228 = vmatprep.subr.bf16.mxu0 %v4766_v19  ;;  %v576_v25 = vrot.slane %v443_v11, 1  ;;  %v579_v56 = vor.u32 %v578_v49, %v447_v41  ;;  %v584_v21 = vrot.slane %v471_v7, 1 }
  0x20   : > { %4037 = vmatpush3.bf16.msra.mxu1 %v4765_v18  ;;  %v297_v18 = vld [vmem:[%s4938_s20 + $0x40] sm:$0xf]  ;;  %v577_v37 = vor.u32 %v576_v25, %v440_v24  ;;  %v337_v25 = vmax.bf16 %v5812_v2, %v305_v0  ;;  %v342_v0 = vmax.bf16 %v5812_v2, %v310_v38 }
  0x21   : > { %4229 = vmatpush3.bf16.msra.mxu0 %v4766_v19  ;;  %4038 = vmatprep.subr.bf16.mxu1 %v4767_v20  ;;  %v298_v19 = vld [vmem:[%s4938_s20 + $0x44] sm:$0xf]  ;;  %v329_v26 = vmax.bf16 %v5812_v2, %v297_v18  ;;  %v468_v18 = vshrl.u32 %v5039_v63, 16 }
  0x22   : > { %4230 = vmatprep.subr.bf16.mxu0 %v4768_v23  ;;  %v330_v27 = vmax.bf16 %v5812_v2, %v298_v19  ;;  %v5135_v52 = vsel %vm5064_vm2, %v577_v37, 0  ;;  %v309_v37 = vld [vmem:[%s4938_s20 + $0x70] sm:$0xf] }
  0x24   : > { %4039 = vmatpush3.bf16.msra.mxu1 %v4767_v20  ;;  %v299_v20 = vld [vmem:[%s4938_s20 + $0x48] sm:$0xf]  ;;  %v5112_v40 = vcombine.low %v329_v26, %v330_v27  ;;  %v478_v27 = vshll.u32 %v5074_v16, 16 }
  0x25   : > { %4231 = vmatpush3.bf16.msra.mxu0 %v4768_v23  ;;  %4072 = vmatprep.subr.bf16.mxu1 %v4769_v28  ;;  %v5085_v23 = vsel %vm5064_vm2, %v573_v10, 0  ;;  %v331_v30 = vmax.bf16 %v5812_v2, %v299_v20  ;;  %v308_v10 = vld [vmem:[%s4938_s20 + $0x6c] sm:$0xf]  ;;  %v582_v20 = vrot.slane %v464_v62, 1 }
  0x26   : > { %4264 = vmatprep.subr.bf16.mxu0 %v4770_v29  ;;  %v586_v49 = vrot.slane %v478_v27, 1 }
  0x27   : > { %4041 = vmatmul.mubr.bf16.vlgmr.msra.gmra.mrb[0].mxu1 %v4950_v17  ;;  %v5126_v48 = vcombine.low %v331_v30, %v332_v31  ;;  %v485_v30 = vshll.u32 %v5112_v40, 16  ;;  %v583_v31 = vor.u32 %v582_v20, %v461_v4 }
  0x28   : > { %4233 = vmatmul.mubr.bf16.vlgmr.msra.gmra.mrb[0].mxu0 %v4979_v32  ;;  %4073 = vmatpush3.bf16.msra.mxu1 %v4769_v28  ;;  %v4787_v28 = vld [vmem:[%s5808_s1 + $0x38] sm:$0xff]  }
  0x29   : > { %4265 = vmatpush3.bf16.msra.mxu0 %v4770_v29  ;;  %4044 = vmatprep.mubr.bf16.mxu1 %v4979_v32  ;;  %v575_v29 = vor.u32 %v574_v14, %v433_v13  ;;  %v5167_v14 = vsel %vm5064_vm2, %v579_v56, 0  ;;  %v492_v56 = vshll.u32 %v5126_v48, 16  ;;  %v489_v20 = vshrl.u32 %v5126_v48, 16 }
  0x2a   : > { %4266 = vmatprep.subr.bf16.mxu0 %v4771_v35  ;;  %4236 = vmatprep.mubr.bf16.mxu0 %v4986_v36 }
  0x2b   : > { %4074 = vmatprep.subr.bf16.mxu1 %v4772_v39 }
  0x2c   : > { %4075 = vmatpush3.bf16.msra.mxu1 %v4772_v39  ;;  %v302_v39 = vld [vmem:[%s4938_s20 + $0x54] sm:$0xf] }
  0x2d   : > { %4267 = vmatpush3.bf16.msra.mxu0 %v4771_v35  ;;  %4076 = vmatprep.subr.bf16.mxu1 %v4775_v44  ;;  %v457_v35 = vshll.u32 %v5009_v47, 16  ;;  %v334_v55 = vmax.bf16 %v5812_v2, %v302_v39  ;;  %v4790_v39 = vld [vmem:[%s5808_s1 + $0x1a0] sm:$0xff]  }
  0x2e   : > { %4268 = vmatprep.subr.bf16.mxu0 %v4773_v45 }
  0x2f   : > { %4045 = vmatmul.mubr.bf16.gmra.mrb[4].mxu1 %v4986_v36  ;;  %v580_v51 = vrot.slane %v457_v35, 1  ;;  %v5161_v8 = vcombine.low %v333_v54, %v334_v55  ;;  %v588_v54 = vrot.slane %v485_v30, 1  ;;  %v5214_v55 = vsel %vm5064_vm2, %v583_v31, 0 }
  0x30   : > { %4237 = vmatmul.mubr.bf16.gmra.mrb[4].mxu0 %v5007_v46  ;;  %4048 = vmatprep.mubr.bf16.mxu1 %v5007_v46 }
  0x31   : > { %4269 = vmatpush3.bf16.msra.mxu0 %v4773_v45  ;;  %4240 = vmatprep.mubr.bf16.mxu0 %v5009_v47  ;;  %v5124_v45 = vsel %vm5064_vm2, %v575_v29, 0  ;;  %v340_v29 = vmax.bf16 %v5812_v2, %v308_v10 }
  0x32   : > { %4270 = vmatprep.subr.bf16.mxu0 %v4774_v50  ;;  %4077 = vmatpush3.bf16.msra.mxu1 %v4775_v44  ;;  %v5120_v44 = vld [vmem:[%s5808_s1 + $0x80] sm:$0xff]  }
  0x33   : > { %4078 = vmatprep.subr.bf16.mxu1 %v4778_v53 }
  0x35   : > { %4271 = vmatpush3.bf16.msra.mxu0 %v4774_v50  ;;  %v454_v50 = vshrl.u32 %v5009_v47, 16 }
  0x36   : > { %4272 = vmatprep.subr.bf16.mxu0 %v4776_v58  ;;  %4079 = vmatpush3.bf16.msra.mxu1 %v4778_v53  ;;  %v4784_v53 = vld [vmem:[%s5808_s1 + $0x188] sm:$0xff]  }
  0x37   : > { %4049 = vmatmul.mubr.bf16.gmra.mrb[8].mxu1 %v5009_v47  ;;  %4080 = vmatprep.subr.bf16.mxu1 %v4781_v60 }
  0x38   : > { %4241 = vmatmul.mubr.bf16.gmra.mrb[8].mxu0 %v5036_v61  ;;  %4052 = vmatprep.mubr.bf16.mxu1 %v5036_v61 }
  0x39   : > { %4273 = vmatpush3.bf16.msra.mxu0 %v4776_v58  ;;  %4244 = vmatprep.mubr.bf16.mxu0 %v5039_v63  ;;  %v336_v58 = vmax.bf16 %v5812_v2, %v304_v43  ;;  %v475_v43 = vshrl.u32 %v5074_v16, 16 }
  0x3a   : > { %4274 = vmatprep.subr.bf16.mxu0 %v4777_v1  ;;  %4081 = vmatpush3.bf16.msra.mxu1 %v4781_v60  ;;  %v581_v60 = vor.u32 %v580_v51, %v454_v50 }
  0x3b   : > { %4082 = vmatprep.subr.bf16.mxu1 %v4783_v6 }
  0x3c   : > { %v5174_v19 = vsel %vm5064_vm2, %v581_v60, 0  ;;  %v341_v60 = vmax.bf16 %v5812_v2, %v309_v37  ;;  %v4817_v37 = vld [vmem:[%s5808_s1 + $0xf0] sm:$0xff]  }
  0x3d   : > { %4275 = vmatpush3.bf16.msra.mxu0 %v4777_v1  ;;  %v306_v1 = vld [vmem:[%s4938_s20 + $0x64] sm:$0xf] }
  0x3e   : > { %4276 = vmatprep.subr.bf16.mxu0 %v4779_v9  ;;  %4083 = vmatpush3.bf16.msra.mxu1 %v4783_v6  ;;  %v4786_v6 = vld [vmem:[%s5808_s1 + $0x190] sm:$0xff]   ;;  %v338_v26 = vmax.bf16 %v5812_v2, %v306_v1  ;;  %v587_v1 = vor.u32 %v586_v49, %v475_v43 }
  0x3f   : > { %4053 = vmatmul.mubr.bf16.gmra.mrb[12].mxu1 %v5039_v63  ;;  %4084 = vmatprep.subr.bf16.mxu1 %v4785_v15 }
  0x40   : > { %4245 = vmatmul.mubr.bf16.gmra.mrb[12].mxu0 %v5074_v16  ;;  %4056 = vmatprep.mubr.bf16.mxu1 %v5074_v16  ;;  %v5202_v42 = vcombine.low %v337_v25, %v338_v26  ;;  %v4794_v25 = vld [vmem:[%s5808_s1 + $0x1b0] sm:$0xff]   ;;  %v5246_v26 = vcombine.low %v341_v60, %v342_v0  ;;  %v449_v0 = vrot.slane %v447_v41, 7 }
  0x41   : > { %4277 = vmatpush3.bf16.msra.mxu0 %v4779_v9  ;;  %4280 = vmatprep.mubr.bf16.mxu0 %v5085_v23  ;;  %v307_v9 = vld [vmem:[%s4938_s20 + $0x68] sm:$0xf] }
  0x42   : > { %4278 = vmatprep.subr.bf16.mxu0 %v4780_v22  ;;  %4085 = vmatpush3.bf16.msra.mxu1 %v4785_v15  ;;  %v5169_v15 = vcombine.low %v335_v57, %v336_v58  ;;  %v4792_v58 = vld [vmem:[%s5808_s1 + $0x1a8] sm:$0xff]  }
  0x43   : > { %4086 = vmatprep.subr.bf16.mxu1 %v4787_v28 }
  0x44   : > { %v506_v49 = vshll.u32 %v5169_v15, 16  ;;  %v503_v60 = vshrl.u32 %v5169_v15, 16 }
  0x45   : > { %4279 = vmatpush3.bf16.msra.mxu0 %v4780_v22  ;;  %v4788_v22 = vld [vmem:[%s5808_s1 + $0x198] sm:$0xff]  }
  0x46   : > { %4312 = vmatprep.subr.bf16.mxu0 %v4782_v34  ;;  %4087 = vmatpush3.bf16.msra.mxu1 %v4787_v28  ;;  %v339_v28 = vmax.bf16 %v5812_v2, %v307_v9  ;;  %v428_v9 = vrot.slane %v426_v3, 7  ;;  %v496_v3 = vshrl.u32 %v5161_v8, 16 }
  0x47   : > { %4057 = vmatmul.mubr.bf16.gmra.mrb[16].mxu1 %v5112_v40  ;;  %4120 = vmatprep.subr.bf16.mxu1 %v5120_v44 }
  0x48   : > { %4281 = vmatmul.mubr.bf16.vlgmr.msra.gmra.mrb[0].mxu0 %v5124_v45  ;;  %4060 = vmatprep.mubr.bf16.mxu1 %v5126_v48  ;;  %v5207_v51 = vcombine.low %v339_v28, %v340_v29  ;;  %v5250_v28 = vsel %vm5064_vm2, %v587_v1, 0 }
  0x49   : > { %4313 = vmatpush3.bf16.msra.mxu0 %v4782_v34  ;;  %4284 = vmatprep.mubr.bf16.mxu0 %v5135_v52  ;;  %v585_v34 = vor.u32 %v584_v21, %v468_v18  ;;  %v590_v21 = vrot.slane %v492_v56, 1 }
  0x4a   : > { %4314 = vmatprep.subr.bf16.mxu0 %v4784_v53 }
  0x4b   : > { %v5219_v57 = vsel %vm5064_vm2, %v585_v34, 0  ;;  %v431_v34 = vor.u32 %v429_v59, %v428_v9  ;;  %v591_v38 = vor.u32 %v590_v21, %v489_v20  ;;  %v5814_v59 = vshll.u32 %v5202_v42, 16 }
  0x4c   : > { %v510_v21 = vshrl.u32 %v5202_v42, 16 }
  0x4d   : > { %4315 = vmatpush3.bf16.msra.mxu0 %v4784_v53  ;;  %v482_v53 = vshrl.u32 %v5112_v40, 16  ;;  %v5297_v1 = vsel %vm5064_vm2, %v591_v38, 0 }
  0x4e   : > { %4316 = vmatprep.subr.bf16.mxu0 %v4786_v6 }
  0x4f   : > { %4061 = vmatmul.mubr.bf16.gmra.mrb[20].mxu1 %v5161_v8  ;;  %v589_v10 = vor.u32 %v588_v54, %v482_v53  ;;  %v5284_v54 = vld [vmem:[%s5808_s1 + $0x1c0] sm:$0xff]  }
  0x50   : > { %4285 = vmatmul.mubr.bf16.gmra.mrb[4].mxu0 %v5167_v14  ;;  %4064 = vmatprep.mubr.bf16.mxu1 %v5169_v15 }
  0x51   : > { %4288 = vmatprep.mubr.bf16.mxu0 %v5174_v19  ;;  %4317 = vmatpush3.bf16.msra.mxu0 %v4786_v6  ;;  %v499_v6 = vshll.u32 %v5161_v8, 16  ;;  %v5256_v31 = vsel %vm5064_vm2, %v589_v10, 0  ;;  %v4791_v10 = vld [vmem:[%s5808_s1 + $0x88] sm:$0xff]  }
  0x52   : > { %4318 = vmatprep.subr.bf16.mxu0 %v4788_v22 }
  0x53   : > { %v592_v29 = vrot.slane %v499_v6, 1 }
  0x55   : > { %4319 = vmatpush3.bf16.msra.mxu0 %v4788_v22  ;;  %v435_v22 = vrot.slane %v433_v13, 7  ;;  %v4796_v13 = vld [vmem:[%s5808_s1 + $0x1b8] sm:$0xff]   ;;  %v593_v17 = vor.u32 %v592_v29, %v496_v3 }
  0x56   : > { %4320 = vmatprep.subr.bf16.mxu0 %v4790_v39  ;;  %v312_v29 = vld [vmem:[%s4938_s20 + $0x7c] sm:$0xf] }
  0x57   : > { %4065 = vmatmul.mubr.bf16.gmra.mrb[24].mxu1 %v5202_v42  ;;  %v5311_v41 = vsel %vm5064_vm2, %v593_v17, 0  ;;  %v5816_v17 = vshll.u32 %v5207_v51, 16 }
  0x58   : > { %4289 = vmatmul.mubr.bf16.gmra.mrb[8].mxu0 %v5214_v55  ;;  %4068 = vmatprep.mubr.bf16.mxu1 %v5207_v51 }
  0x59   : > { %4292 = vmatprep.mubr.bf16.mxu0 %v5219_v57  ;;  %4321 = vmatpush3.bf16.msra.mxu0 %v4790_v39  ;;  %v438_v39 = vor.u32 %v436_v5, %v435_v22  ;;  %v442_v5 = vrot.slane %v440_v24, 7  ;;  %v594_v24 = vrot.slane %v506_v49, 1  ;;  %v596_v22 = vrot.slane %v5814_v59, 1 }
  0x5a   : > { %4322 = vmatprep.subr.bf16.mxu0 %v4792_v58 }
  0x5b   : > { %v5301_v9 = vsel %vm5269_vm5, 0, %v438_v39  ;;  %v595_v38 = vor.u32 %v594_v24, %v503_v60  ;;  %v4793_v39 = vld [vmem:[%s5808_s1 + $0x90] sm:$0xff]  }
  0x5d   : > { %4323 = vmatpush3.bf16.msra.mxu0 %v4792_v58  ;;  %v5288_v58 = vsel %vm5269_vm5, 0, %v431_v34  ;;  %v452_v34 = vor.u32 %v450_v33, %v449_v0  ;;  %v597_v33 = vor.u32 %v596_v22, %v510_v21  ;;  %v598_v22 = vrot.slane %v5816_v17, 1  ;;  %v4797_v17 = vld [vmem:[%s5808_s1 + $0xa0] sm:$0xff]  }
  0x5e   : > { %4324 = vmatprep.subr.bf16.mxu0 %v4794_v25 }
  0x5f   : > { %4069 = vmatmul.mubr.bf16.gmra.mrb[28].mxu1 %v5246_v26  ;;  %v5344_v24 = vsel %vm5269_vm5, 0, %v452_v34  ;;  %v5361_v34 = vsel %vm5064_vm2, %v597_v33, 0 }
  0x60   : > { %4293 = vmatmul.mubr.bf16.gmra.mrb[12].mxu0 %v5250_v28  ;;  %4088 = vmatprep.mubr.bf16.mxu1 %v5812_v2 }
  0x61   : > { %4296 = vmatprep.mubr.bf16.mxu0 %v5256_v31  ;;  %4325 = vmatpush3.bf16.msra.mxu0 %v4794_v25  ;;  %v311_v25 = vld [vmem:[%s4938_s20 + $0x78] sm:$0xf] }
  0x62   : > { %4326 = vmatprep.subr.bf16.mxu0 %v4796_v13 }
  0x65   : > { %4327 = vmatpush3.bf16.msra.mxu0 %v4796_v13  ;;  %v445_v13 = vor.u32 %v443_v11, %v442_v5  ;;  %v344_v11 = vmax.bf16 %v5812_v2, %v312_v29  ;;  %v5815_v5 = vshll.u32 %v5246_v26, 16  ;;  %v517_v29 = vshrl.u32 %v5207_v51, 16 }
  0x66   : > { %4360 = vmatprep.subr.bf16.mxu0 %v5284_v54 }
  0x67   : > { %4089 = vmatmul.mubr.bf16.vlgmr.msra.gmra.mrb[0].mxu1 %v5288_v58  ;;  %v5340_v0 = vsel %vm5269_vm5, 0, %v445_v13  ;;  %v600_v59 = vrot.slane %v5815_v5, 1 }
  0x68   : > { %4297 = vmatmul.mubr.bf16.gmra.mrb[16].mxu0 %v5297_v1  ;;  %4121 = vmatpush3.bf16.msra.mxu1 %v5120_v44  ;;  %v343_v44 = vmax.bf16 %v5812_v2, %v311_v25  ;;  %v456_v25 = vrot.slane %v454_v50, 7  ;;  %v5351_v2 = vsel %vm5064_vm2, %v595_v38, 0  ;;  %v524_v50 = vshrl.u32 %v5246_v26, 16  ;;  %v4795_v38 = vld [vmem:[%s5808_s1 + $0x98] sm:$0xff]  }
  0x69   : > { %4092 = vmatprep.mubr.bf16.mxu1 %v5301_v9  ;;  %4300 = vmatprep.mubr.bf16.mxu0 %v5311_v41 }
  0x6a   : > { %4122 = vmatprep.subr.bf16.mxu1 %v4791_v10  ;;  %v5357_v13 = vcombine.low %v343_v44, %v344_v11  ;;  %v599_v44 = vor.u32 %v598_v22, %v517_v29  ;;  %v601_v5 = vor.u32 %v600_v59, %v524_v50 }
  0x6c   : > { %4123 = vmatpush3.bf16.msra.mxu1 %v4791_v10  ;;  %v463_v10 = vrot.slane %v461_v4, 7  ;;  %v459_v4 = vor.u32 %v457_v35, %v456_v25  ;;  %v534_v33 = vshll.u32 %v5357_v13, 16  ;;  %v5395_v25 = vsel %vm5064_vm2, %v599_v44, 0  ;;  %v4801_v44 = vld [vmem:[%s5808_s1 + $0xb0] sm:$0xff]  }
  0x6d   : > { %4124 = vmatprep.subr.bf16.mxu1 %v4793_v39  ;;  %v531_v22 = vshrl.u32 %v5357_v13, 16 }
  0x6e   : > { %v466_v11 = vor.u32 %v464_v62, %v463_v10  ;;  %v5387_v35 = vsel %vm5269_vm5, 0, %v459_v4  ;;  %v477_v62 = vrot.slane %v475_v43, 7  ;;  %v602_v10 = vrot.slane %v534_v33, 1  ;;  %v4799_v43 = vld [vmem:[%s5808_s1 + $0xa8] sm:$0xff]  }
  0x6f   : > { %4093 = vmatmul.mubr.bf16.gmra.mrb[4].mxu1 %v5340_v0 }
  0x70   : > { %4301 = vmatmul.mubr.bf16.gmra.mrb[20].mxu0 %v5351_v2  ;;  %4096 = vmatprep.mubr.bf16.mxu1 %v5344_v24  ;;  %v5399_v59 = vsel %vm5269_vm5, 0, %v466_v11 }
  0x71   : > { %4304 = vmatprep.mubr.bf16.mxu0 %v5361_v34  ;;  %4125 = vmatpush3.bf16.msra.mxu1 %v4793_v39  ;;  %v470_v39 = vrot.slane %v468_v18, 7  ;;  %v5406_v18 = vsel %vm5064_vm2, %v601_v5, 0  ;;  %v603_v5 = vor.u32 %v602_v10, %v531_v22 }
  0x72   : > { %4126 = vmatprep.subr.bf16.mxu1 %v4795_v38 }
  0x73   : > { %v473_v4 = vor.u32 %v471_v7, %v470_v39  ;;  %v484_v7 = vrot.slane %v482_v53, 7  ;;  %v5432_v39 = vsel %vm5064_vm2, %v603_v5, 0  ;;  %v4802_v5 = vld [vmem:[%s5808_s1 + $0x1d0] sm:$0xff]  }
  0x75   : > { %4127 = vmatpush3.bf16.msra.mxu1 %v4795_v38  ;;  %v480_v38 = vor.u32 %v478_v27, %v477_v62  ;;  %v5426_v11 = vsel %vm5269_vm5, 0, %v473_v4  ;;  %v4803_v62 = vld [vmem:[%s5808_s1 + $0xb8] sm:$0xff]   ;;  %v487_v12 = vor.u32 %v485_v30, %v484_v7  ;;  %v4800_v4 = vld [vmem:[%s5808_s1 + $0x1c8] sm:$0xff]  }
  0x76   : > { %4128 = vmatprep.subr.bf16.mxu1 %v4797_v17 }
  0x77   : > { %4097 = vmatmul.mubr.bf16.gmra.mrb[8].mxu1 %v5387_v35  ;;  %v5436_v27 = vsel %vm5269_vm5, 0, %v480_v38  ;;  %v5456_v10 = vsel %vm5269_vm5, 0, %v487_v12 }
  0x78   : > { %4305 = vmatmul.mubr.bf16.gmra.mrb[24].mxu0 %v5395_v25  ;;  %4100 = vmatprep.mubr.bf16.mxu1 %v5399_v59 }
  0x79   : > { %4308 = vmatprep.mubr.bf16.mxu0 %v5406_v18  ;;  %4129 = vmatpush3.bf16.msra.mxu1 %v4797_v17  ;;  %v491_v17 = vrot.slane %v489_v20, 7  ;;  %v4805_v20 = vld [vmem:[%s5808_s1 + $0xc0] sm:$0xff]  }
  0x7a   : > { %4130 = vmatprep.subr.bf16.mxu1 %v4799_v43 }
  0x7b   : > { %v494_v53 = vor.u32 %v492_v56, %v491_v17  ;;  %v505_v56 = vrot.slane %v503_v60, 7  ;;  %v5822_v17 = vshll.u32 %v5207_v51, 16 }
  0x7d   : > { %4131 = vmatpush3.bf16.msra.mxu1 %v4799_v43  ;;  %v498_v43 = vrot.slane %v496_v3, 7  ;;  %v5462_v30 = vsel %vm5269_vm5, 0, %v494_v53  ;;  %v508_v60 = vor.u32 %v506_v49, %v505_v56  ;;  %v519_v49 = vrot.slane %v517_v29, 7  ;;  %v4808_v56 = vld [vmem:[%s5808_s1 + $0x1e8] sm:$0xff]  }
  0x7e   : > { %4132 = vmatprep.subr.bf16.mxu1 %v4801_v44  ;;  %v526_v53 = vrot.slane %v524_v50, 7  ;;  %v4810_v50 = vld [vmem:[%s5808_s1 + $0x1f0] sm:$0xff]  }
  0x7f   : > { %4101 = vmatmul.mubr.bf16.gmra.mrb[12].mxu1 %v5426_v11  ;;  %v501_v3 = vor.u32 %v499_v6, %v498_v43  ;;  %v5489_v6 = vsel %vm5269_vm5, 0, %v508_v60  ;;  %v522_v29 = vor.u32 %v5822_v17, %v519_v49  ;;  %v4814_v49 = vld [vmem:[%s5808_s1 + $0x200] sm:$0xff]  }
  0x80   : > { %4309 = vmatmul.mubr.bf16.gmra.mrb[28].mxu0 %v5432_v39  ;;  %4104 = vmatprep.mubr.bf16.mxu1 %v5436_v27 }
  0x81   : > { %4328 = vmatprep.mubr.bf16.mxu0 %v5301_v9  ;;  %4133 = vmatpush3.bf16.msra.mxu1 %v4801_v44  ;;  %v5483_v38 = vsel %vm5269_vm5, 0, %v501_v3  ;;  %v512_v44 = vrot.slane %v510_v21, 7  ;;  %v5821_v21 = vshll.u32 %v5202_v42, 16  ;;  %v5515_v43 = vsel %vm5269_vm5, 0, %v522_v29  ;;  %v4815_v29 = vld [vmem:[%s5808_s1 + $0xe8] sm:$0xff]  }
  0x82   : > { %4134 = vmatprep.subr.bf16.mxu1 %v4803_v62 }
  0x83   : > { %v515_v7 = vor.u32 %v5821_v21, %v512_v44  ;;  %v5824_v44 = vmov 0   ;;  %v4809_v21 = vld [vmem:[%s5808_s1 + $0xd0] sm:$0xff]  }
  0x85   : > { %4135 = vmatpush3.bf16.msra.mxu1 %v4803_v62  ;;  %v4806_v62 = vld [vmem:[%s5808_s1 + $0x1e0] sm:$0xff]   ;;  %v5509_v12 = vsel %vm5269_vm5, 0, %v515_v7  ;;  %v533_v7 = vrot.slane %v531_v22, 7 }
  0x86   : > { %4168 = vmatprep.subr.bf16.mxu1 %v4805_v20  ;;  %v4813_v22 = vld [vmem:[%s5808_s1 + $0xe0] sm:$0xff]  }
  0x87   : > { %4105 = vmatmul.mubr.bf16.gmra.mrb[16].mxu1 %v5456_v10 }
  0x88   : > { %4329 = vmatmul.mubr.bf16.vlgmr.msra.gmra.mrb[0].mxu0 %v5340_v0  ;;  %4108 = vmatprep.mubr.bf16.mxu1 %v5462_v30 }
  0x89   : > { %4361 = vmatpush3.bf16.msra.mxu0 %v5284_v54  ;;  %4332 = vmatprep.mubr.bf16.mxu0 %v5344_v24  ;;  %v4804_v54 = vld [vmem:[%s5808_s1 + $0x1d8] sm:$0xff]  }
  0x8a   : > { %4362 = vmatprep.subr.bf16.mxu0 %v4800_v4 }
  0x8d   : > { %4363 = vmatpush3.bf16.msra.mxu0 %v4800_v4  ;;  %v5823_v4 = vshll.u32 %v5246_v26, 16 }
  0x8e   : > { %4364 = vmatprep.subr.bf16.mxu0 %v4802_v5 }
  0x8f   : > { %4109 = vmatmul.mubr.bf16.gmra.mrb[20].mxu1 %v5483_v38  ;;  %v529_v3 = vor.u32 %v5823_v4, %v526_v53  ;;  %v4825_v53 = vld [vmem:[%s5808_s1 + $0x100] sm:$0xff]  }
  0x90   : > { %4333 = vmatmul.mubr.bf16.gmra.mrb[4].mxu0 %v5387_v35  ;;  %4112 = vmatprep.mubr.bf16.mxu1 %v5489_v6 }
  0x91   : > { %4336 = vmatprep.mubr.bf16.mxu0 %v5399_v59  ;;  %4365 = vmatpush3.bf16.msra.mxu0 %v4802_v5  ;;  %v5531_v60 = vsel %vm5269_vm5, 0, %v529_v3  ;;  %v4812_v5 = vld [vmem:[%s5808_s1 + $0x1f8] sm:$0xff]  }
  0x92   : > { %4366 = vmatprep.subr.bf16.mxu0 %v4804_v54 }
  0x95   : > { %4367 = vmatpush3.bf16.msra.mxu0 %v4804_v54  ;;  %v4807_v54 = vld [vmem:[%s5808_s1 + $0xc8] sm:$0xff]  }
  0x96   : > { %4368 = vmatprep.subr.bf16.mxu0 %v4806_v62 }
  0x97   : > { %4113 = vmatmul.mubr.bf16.gmra.mrb[24].mxu1 %v5509_v12 }
  0x98   : > { %4337 = vmatmul.mubr.bf16.gmra.mrb[8].mxu0 %v5426_v11  ;;  %4116 = vmatprep.mubr.bf16.mxu1 %v5515_v43 }
  0x99   : > { %4340 = vmatprep.mubr.bf16.mxu0 %v5436_v27  ;;  %4369 = vmatpush3.bf16.msra.mxu0 %v4806_v62  ;;  %v4816_v62 = vld [vmem:[%s5808_s1 + $0x208] sm:$0xff]  }
  0x9a   : > { %4370 = vmatprep.subr.bf16.mxu0 %v4808_v56 }
  0x9d   : > { %4371 = vmatpush3.bf16.msra.mxu0 %v4808_v56  ;;  %v4820_v56 = vld [vmem:[%s5808_s1 + $0x218] sm:$0xff]  }
  0x9e   : > { %4372 = vmatprep.subr.bf16.mxu0 %v4810_v50 }
  0x9f   : > { %4117 = vmatmul.mubr.bf16.gmra.mrb[28].mxu1 %v5531_v60 }
  0xa0   : > { %4341 = vmatmul.mubr.bf16.gmra.mrb[12].mxu0 %v5456_v10  ;;  %4136 = vmatprep.mubr.bf16.mxu1 %v5824_v44 }
  0xa1   : > { %4344 = vmatprep.mubr.bf16.mxu0 %v5462_v30  ;;  %4373 = vmatpush3.bf16.msra.mxu0 %v4810_v50 }
  0xa2   : > { %4374 = vmatprep.subr.bf16.mxu0 %v4812_v5 }
  0xa5   : > { %4375 = vmatpush3.bf16.msra.mxu0 %v4812_v5 }
  0xa6   : > { %4408 = vmatprep.subr.bf16.mxu0 %v4814_v49 }
  0xa7   : > { %4137 = vmatmul.mubr.bf16.vlgmr.msra.gmra.mrb[0].mxu1 %v5085_v23  ;;  %v4811_v23 = vld [vmem:[%s5808_s1 + $0xd8] sm:$0xff]  }
  0xa8   : > { %4345 = vmatmul.mubr.bf16.gmra.mrb[16].mxu0 %v5483_v38  ;;  %4169 = vmatpush3.bf16.msra.mxu1 %v4805_v20  ;;  %v536_v20 = vor.u32 %v534_v33, %v533_v7  ;;  %v4819_v33 = vld [vmem:[%s5808_s1 + $0xf8] sm:$0xff]  }
  0xa9   : > { %4140 = vmatprep.mubr.bf16.mxu1 %v5124_v45  ;;  %4348 = vmatprep.mubr.bf16.mxu0 %v5489_v6  ;;  %v3780_v7 = vld [vmem:[%s5714_s6 + $0x18] sm:$0xff]  }
  0xaa   : > { %4170 = vmatprep.subr.bf16.mxu1 %v4807_v54  ;;  %v5569_v17 = vsel %vm5269_vm5, 0, %v536_v20 }
  0xac   : > { %4171 = vmatpush3.bf16.msra.mxu1 %v4807_v54 }
  0xad   : > { %4172 = vmatprep.subr.bf16.mxu1 %v4809_v21 }
  0xaf   : > { %4141 = vmatmul.mubr.bf16.gmra.mrb[4].mxu1 %v5135_v52 }
  0xb0   : > { %4349 = vmatmul.mubr.bf16.gmra.mrb[20].mxu0 %v5509_v12  ;;  %4144 = vmatprep.mubr.bf16.mxu1 %v5167_v14 }
  0xb1   : > { %4352 = vmatprep.mubr.bf16.mxu0 %v5515_v43  ;;  %4173 = vmatpush3.bf16.msra.mxu1 %v4809_v21 }
  0xb2   : > { %4174 = vmatprep.subr.bf16.mxu1 %v4811_v23 }
  0xb5   : > { %4175 = vmatpush3.bf16.msra.mxu1 %v4811_v23 }
  0xb6   : > { %4176 = vmatprep.subr.bf16.mxu1 %v4813_v22 }
  0xb7   : > { %4145 = vmatmul.mubr.bf16.gmra.mrb[8].mxu1 %v5174_v19 }
  0xb8   : > { %4353 = vmatmul.mubr.bf16.gmra.mrb[24].mxu0 %v5531_v60  ;;  %4148 = vmatprep.mubr.bf16.mxu1 %v5214_v55 }
  0xb9   : > { %4356 = vmatprep.mubr.bf16.mxu0 %v5569_v17  ;;  %4177 = vmatpush3.bf16.msra.mxu1 %v4813_v22 }
  0xba   : > { %4178 = vmatprep.subr.bf16.mxu1 %v4815_v29 }
  0xbd   : > { %4179 = vmatpush3.bf16.msra.mxu1 %v4815_v29 }
  0xbe   : > { %4180 = vmatprep.subr.bf16.mxu1 %v4817_v37 }
  0xbf   : > { %4149 = vmatmul.mubr.bf16.gmra.mrb[12].mxu1 %v5219_v57 }
  0xc0   : > { %4357 = vmatmul.mubr.bf16.gmra.mrb[28].mxu0 %v5824_v44  ;;  %4152 = vmatprep.mubr.bf16.mxu1 %v5250_v28 }
  0xc1   : > { %4376 = vmatprep.mubr.bf16.mxu0 %v4979_v32  ;;  %4181 = vmatpush3.bf16.msra.mxu1 %v4817_v37  ;;  %v4818_v32 = vld [vmem:[%s5808_s1 + $0x210] sm:$0xff]  }
  0xc2   : > { %4182 = vmatprep.subr.bf16.mxu1 %v4819_v33 }
  0xc5   : > { %4183 = vmatpush3.bf16.msra.mxu1 %v4819_v33 }
  0xc6   : > { %4456 = vmatprep.subr.bf16.mxu1 %v4825_v53 }
  0xc7   : > { %4153 = vmatmul.mubr.bf16.gmra.mrb[16].mxu1 %v5256_v31 }
  0xc8   : > { %4377 = vmatmul.mubr.bf16.vlgmr.msra.gmra.mrb[0].mxu0 %v4986_v36  ;;  %4156 = vmatprep.mubr.bf16.mxu1 %v5297_v1  ;;  %v4821_v36 = vld [vmem:[%s5808_s1 + $0x220] sm:$0xff]  }
  0xc9   : > { %4409 = vmatpush3.bf16.msra.mxu0 %v4814_v49  ;;  %4380 = vmatprep.mubr.bf16.mxu0 %v5007_v46  ;;  %v4822_v46 = vld [vmem:[%s5808_s1 + $0x228] sm:$0xff]  }
  0xca   : > { %4410 = vmatprep.subr.bf16.mxu0 %v4816_v62 }
  0xcd   : > { %4411 = vmatpush3.bf16.msra.mxu0 %v4816_v62 }
  0xce   : > { %4412 = vmatprep.subr.bf16.mxu0 %v4818_v32 }
  0xcf   : > { %4157 = vmatmul.mubr.bf16.gmra.mrb[20].mxu1 %v5311_v41 }
  0xd0   : > { %4381 = vmatmul.mubr.bf16.gmra.mrb[4].mxu0 %v5009_v47  ;;  %4160 = vmatprep.mubr.bf16.mxu1 %v5351_v2  ;;  %v4823_v47 = vld [vmem:[%s5808_s1 + $0x230] sm:$0xff]  }
  0xd1   : > { %4384 = vmatprep.mubr.bf16.mxu0 %v5036_v61  ;;  %4413 = vmatpush3.bf16.msra.mxu0 %v4818_v32  ;;  %v4824_v61 = vld [vmem:[%s5808_s1 + $0x238] sm:$0xff]  }
  0xd2   : > { %4414 = vmatprep.subr.bf16.mxu0 %v4820_v56 }
  0xd5   : > { %4415 = vmatpush3.bf16.msra.mxu0 %v4820_v56  ;;  %v3649_v56 = vunpack.c.h.bf16 %v3780_v7 }
  0xd6   : > { %4416 = vmatprep.subr.bf16.mxu0 %v4821_v36 }
  0xd7   : > { %4161 = vmatmul.mubr.bf16.gmra.mrb[24].mxu1 %v5361_v34 }
  0xd8   : > { %4385 = vmatmul.mubr.bf16.gmra.mrb[8].mxu0 %v5039_v63  ;;  %4164 = vmatprep.mubr.bf16.mxu1 %v5395_v25  ;;  %v4826_v63 = vld [vmem:[%s5808_s1 + $0x108] sm:$0xff]  }
  0xd9   : > { %4388 = vmatprep.mubr.bf16.mxu0 %v5074_v16  ;;  %4417 = vmatpush3.bf16.msra.mxu0 %v4821_v36  ;;  %v4827_v16 = vld [vmem:[%s5808_s1 + $0x110] sm:$0xff]  }
  0xda   : > { %4418 = vmatprep.subr.bf16.mxu0 %v4822_v46 }
  0xdd   : > { %4419 = vmatpush3.bf16.msra.mxu0 %v4822_v46 }
  0xde   : > { %4420 = vmatprep.subr.bf16.mxu0 %v4823_v47 }
  0xdf   : > { %4165 = vmatmul.mubr.bf16.gmra.mrb[28].mxu1 %v5406_v18 }
  0xe0   : > { %4389 = vmatmul.mubr.bf16.gmra.mrb[12].mxu0 %v5112_v40  ;;  %4184 = vmatprep.mubr.bf16.mxu1 %v5288_v58  ;;  %v4828_v58 = vld [vmem:[%s5808_s1 + $0x118] sm:$0xff]  }
  0xe1   : > { %4392 = vmatprep.mubr.bf16.mxu0 %v5126_v48  ;;  %4421 = vmatpush3.bf16.msra.mxu0 %v4823_v47 }
  0xe2   : > { %4422 = vmatprep.subr.bf16.mxu0 %v4824_v61 }
  0xe5   : > { %4423 = vmatpush3.bf16.msra.mxu0 %v4824_v61 }
  0xe7   : > { %4185 = vmatmul.mubr.bf16.vlgmr.msra.gmra.mrb[0].mxu1 %v5301_v9  ;;  %v4829_v9 = vld [vmem:[%s5808_s1 + $0x120] sm:$0xff]  }
  0xe8   : > { %4393 = vmatmul.mubr.bf16.gmra.mrb[16].mxu0 %v5161_v8  ;;  %4464 = vmatpush3.bf16.msra.mxu1 %v4825_v53  ;;  %v3648_v53 = vunpack.c.l.bf16 %v3780_v7 }
  0xe9   : > { %4188 = vmatprep.mubr.bf16.mxu1 %v5340_v0  ;;  %4396 = vmatprep.mubr.bf16.mxu0 %v5169_v15  ;;  %v4830_v0 = vld [vmem:[%s5808_s1 + $0x128] sm:$0xff]  }
  0xea   : > { %4457 = vmatprep.subr.bf16.mxu1 %v4826_v63 }
  0xec   : > { %4465 = vmatpush3.bf16.msra.mxu1 %v4826_v63 }
  0xed   : > { %4458 = vmatprep.subr.bf16.mxu1 %v4827_v16 }
  0xef   : > { %4189 = vmatmul.mubr.bf16.gmra.mrb[4].mxu1 %v5344_v24  ;;  %v3531_v24 = vcombine.low %v5824_v44, %v5824_v44 }
  0xf0   : > { %4397 = vmatmul.mubr.bf16.gmra.mrb[20].mxu0 %v5202_v42  ;;  %4192 = vmatprep.mubr.bf16.mxu1 %v5387_v35  ;;  %v4831_v35 = vld [vmem:[%s5808_s1 + $0x130] sm:$0xff]  }
  0xf1   : > { %4400 = vmatprep.mubr.bf16.mxu0 %v5207_v51  ;;  %4466 = vmatpush3.bf16.msra.mxu1 %v4827_v16 }
  0xf2   : > { %4459 = vmatprep.subr.bf16.mxu1 %v4828_v58 }
  0xf5   : > { %4467 = vmatpush3.bf16.msra.mxu1 %v4828_v58 }
  0xf6   : > { %4460 = vmatprep.subr.bf16.mxu1 %v4829_v9 }
  0xf7   : > { %4193 = vmatmul.mubr.bf16.gmra.mrb[8].mxu1 %v5399_v59  ;;  %v4832_v59 = vld [vmem:[%s5808_s1 + $0x138] sm:$0xff]  }
  0xf8   : > { %4401 = vmatmul.mubr.bf16.gmra.mrb[24].mxu0 %v5246_v26  ;;  %4196 = vmatprep.mubr.bf16.mxu1 %v5426_v11 }
  0xf9   : > { %4404 = vmatprep.mubr.bf16.mxu0 %v5357_v13  ;;  %4468 = vmatpush3.bf16.msra.mxu1 %v4829_v9 }
  0xfa   : > { %4461 = vmatprep.subr.bf16.mxu1 %v4830_v0 }
  0xfd   : > { %4469 = vmatpush3.bf16.msra.mxu1 %v4830_v0 }
  0xfe   : > { %4462 = vmatprep.subr.bf16.mxu1 %v4831_v35 }
  0xff   : > { %4197 = vmatmul.mubr.bf16.gmra.mrb[12].mxu1 %v5436_v27 }
 0x100   : > { %4405 = vmatmul.mubr.bf16.gmra.mrb[28].mxu0 %v3531_v24  ;;  %4200 = vmatprep.mubr.bf16.mxu1 %v5456_v10 }
 0x101   : > { %4424 = vmatprep.mubr.bf16.mxu0 %v5124_v45  ;;  %4470 = vmatpush3.bf16.msra.mxu1 %v4831_v35 }
 0x102   : > { %4463 = vmatprep.subr.bf16.mxu1 %v4832_v59 }
 0x105   : > { %4471 = vmatpush3.bf16.msra.mxu1 %v4832_v59 }
 0x107   : > { %4201 = vmatmul.mubr.bf16.gmra.mrb[16].mxu1 %v5462_v30 }
 0x108   : > { %4425 = vmatmul.mubr.bf16.vlgmr.msra.gmra.mrb[0].mxu0 %v5135_v52  ;;  %4204 = vmatprep.mubr.bf16.mxu1 %v5483_v38 }
 0x109   : > { %4428 = vmatprep.mubr.bf16.mxu0 %v5167_v14 }
 0x10f   : > { %4205 = vmatmul.mubr.bf16.gmra.mrb[20].mxu1 %v5489_v6 }
 0x110   : > { %4429 = vmatmul.mubr.bf16.gmra.mrb[4].mxu0 %v5174_v19  ;;  %4208 = vmatprep.mubr.bf16.mxu1 %v5509_v12 }
 0x111   : > { %4432 = vmatprep.mubr.bf16.mxu0 %v5214_v55 }
 0x117   : > { %4209 = vmatmul.mubr.bf16.gmra.mrb[24].mxu1 %v5515_v43 }
 0x118   : > { %4433 = vmatmul.mubr.bf16.gmra.mrb[8].mxu0 %v5219_v57  ;;  %4212 = vmatprep.mubr.bf16.mxu1 %v5531_v60 }
 0x119   : > { %4436 = vmatprep.mubr.bf16.mxu0 %v5250_v28 }
 0x11f   : > { %4213 = vmatmul.mubr.bf16.gmra.mrb[28].mxu1 %v5569_v17  ;;  %v3779_v17 = vld [vmem:[%s5714_s6 + $0x10] sm:$0xff]  }
 0x120   : > { %4437 = vmatmul.mubr.bf16.gmra.mrb[12].mxu0 %v5256_v31  ;;  %4248 = vmatprep.mubr.bf16.mxu1 %v5112_v40  ;;  %v3644_v47 = vunpack.c.l.bf16 %v3779_v17  ;;  %v3645_v63 = vunpack.c.h.bf16 %v3779_v17 }
 0x121   : > { %4440 = vmatprep.mubr.bf16.mxu0 %v5297_v1 }
 0x127   : > { %4249 = vmatmul.mubr.bf16.vlgmr.msra.gmra.mrb[16].mxu1 %v5126_v48 }
 0x128   : > { %4441 = vmatmul.mubr.bf16.gmra.mrb[16].mxu0 %v5311_v41  ;;  %4252 = vmatprep.mubr.bf16.mxu1 %v5161_v8  ;;  %v5719_v41 = vld [vmem:[%s5809_s2] ss:$0 sm:$0xff] }
 0x129   : > { %4444 = vmatprep.mubr.bf16.mxu0 %v5351_v2 }
 0x12f   : > { %4253 = vmatmul.mubr.bf16.gmra.mrb[20].mxu1 %v5169_v15 }
 0x130   : > { %4445 = vmatmul.mubr.bf16.gmra.mrb[20].mxu0 %v5361_v34  ;;  %4256 = vmatprep.mubr.bf16.mxu1 %v5202_v42 }
 0x131   : > { %4448 = vmatprep.mubr.bf16.mxu0 %v5395_v25 }
 0x137   : > { %4257 = vmatmul.mubr.bf16.gmra.mrb[24].mxu1 %v5207_v51 }
 0x138   : > { %4449 = vmatmul.mubr.bf16.gmra.mrb[24].mxu0 %v5406_v18  ;;  %4260 = vmatprep.mubr.bf16.mxu1 %v5246_v26  ;;  %v3635_v18 = vld [vmem:[%s5714_s6] sm:$0xff]  }
 0x139   : > { %4452 = vmatprep.mubr.bf16.mxu0 %v5432_v39  ;;  %v3636_v43 = vunpack.c.l.bf16 %v3635_v18  ;;  %v3637_v3 = vunpack.c.h.bf16 %v3635_v18 }
 0x13f   : > { %4261 = vmatmul.mubr.bf16.gmra.mrb[28].mxu1 %v5357_v13  ;;  %v3778_v13 = vld [vmem:[%s5714_s6 + $0x8] sm:$0xff]  }
 0x140   : > { %4453 = vmatmul.mubr.bf16.gmra.mrb[28].mxu0 %v5824_v44  ;;  %v3640_v10 = vunpack.c.l.bf16 %v3778_v13  ;;  %v3641_v38 = vunpack.c.h.bf16 %v3778_v13 }
 0x1ba   : > { %v4186_v2 = vpop.f32.mrb[0].mxu1 }
 0x1bb   : > { %v1462_v40 = vpop.f32.mrb[1].mxu1 }
 0x1bc   : > { %v4187_v45 = vpop.f32.mrb[2].mxu1 }
 0x1bd   : > { %v1465_v48 = vpop.f32.mrb[3].mxu1 }
 0x1c2   : > { %v4190_v52 = vpop.f32.mrb[4].mxu1 }
 0x1c3   : > { %v1478_v8 = vpop.f32.mrb[5].mxu1 }
 0x1c4   : > { %v4191_v14 = vpop.f32.mrb[6].mxu1 }
 0x1c5   : > { %v1481_v15 = vpop.f32.mrb[7].mxu1 }
 0x1ca   : > { %v4194_v19 = vpop.f32.mrb[8].mxu1 }
 0x1cb   : > { %v5696_v42 = vpop.f32.mrb[9].mxu1 }
 0x1cc   : > { %v5698_v51 = vpop.f32.mrb[10].mxu1 }
 0x1cd   : > { %v5700_v55 = vpop.f32.mrb[11].mxu1 }
 0x1d2   : > { %v5702_v57 = vpop.f32.mrb[12].mxu1 }
 0x1d3   : > { %v5704_v26 = vpop.f32.mrb[13].mxu1 }
 0x1d4   : > { %v5706_v28 = vpop.f32.mrb[14].mxu1 }
 0x1d5   : > { %v5708_v31 = vpop.f32.mrb[15].mxu1 }
 0x1db   : > { %v4426_v1 = vpop.f32.mrb[0].mxu0 }
 0x1dc   : > { %v4472_v34 = vadd.f32 %v4426_v1, %v4186_v2  ;;  %v2757_v25 = vpop.f32.mrb[1].mxu0  ;;  %v3782_v2 = vld [vmem:[%s5714_s6 + $0x28] sm:$0xff]  }
 0x1dd   : > { %v4473_v11 = vadd.f32 %v2757_v25, %v1462_v40  ;;  %v4427_v39 = vpop.f32.mrb[2].mxu0  ;;  %v3656_v13 = vunpack.c.l.bf16 %v3782_v2  ;;  %v3657_v25 = vunpack.c.h.bf16 %v3782_v2 }
 0x1de   : > { %v2925_v27 = vadd.f32 %v4472_v34, %v5719_v41  ;;  %v4474_v30 = vadd.f32 %v4427_v39, %v4187_v45  ;;  %v2760_v6 = vpop.f32.mrb[3].mxu0 }
 0x1df   : > { %v2923_v12 = vadd.f32 %v4473_v11, %v5719_v41  ;;  %v4475_v4 = vadd.f32 %v2760_v6, %v1465_v48 }
 0x1e0   : > { %v2926_v50 = vadd.f32 %v4474_v30, %v5719_v41  ;;  %v3021_v5 = vadd.f32 %v3640_v10, %v2925_v27 }
 0x1e1   : > { %v2924_v60 = vadd.f32 %v4475_v4, %v5719_v41  ;;  %v3019_v49 = vadd.f32 %v3636_v43, %v2923_v12  ;;  %v3784_v43 = vld [vmem:[%s5714_s6 + $0x38] sm:$0xff]  }
 0x1e2   : > { %v3022_v44 = vadd.f32 %v3641_v38, %v2926_v50  ;;  %v3665_v7 = vunpack.c.h.bf16 %v3784_v43 }
 0x1e3   : > { %v3020_v54 = vadd.f32 %v3637_v3, %v2924_v60  ;;  %v4430_v21 = vpop.f32.mrb[4].mxu0  ;;  %v3783_v60 = vld [vmem:[%s5714_s6 + $0x30] sm:$0xff]  }
 0x1e4   : > { %v3706_v23 = vpack.c.bf16 %v3022_v44, %v3021_v5  ;;  %v4476_v20 = vadd.f32 %v4430_v21, %v4190_v52  ;;  %v2773_v22 = vpop.f32.mrb[5].mxu0  ;;  %v3781_v52 = vld [vmem:[%s5714_s6 + $0x20] sm:$0xff]   ;;  %v3661_v17 = vunpack.c.h.bf16 %v3783_v60 }
 0x1e5   : > { %v3701_v29 = vpack.c.bf16 %v3020_v54, %v3019_v49  ;;  %v4477_v37 = vadd.f32 %v2773_v22, %v1478_v8  ;;  %v4431_v33 = vpop.f32.mrb[6].mxu0  ;;  %v3653_v27 = vunpack.c.h.bf16 %v3781_v52  ;;  %v3664_v54 = vunpack.c.l.bf16 %v3784_v43 }
 0x1e6   : > { %3793 = vst [vmem:[%s5731_s12 + $0x8] sm:$0xff] %v3706_v23   ;;  %v2929_v62 = vadd.f32 %v4476_v20, %v5719_v41  ;;  %v4478_v32 = vadd.f32 %v4431_v33, %v4191_v14  ;;  %v2776_v36 = vpop.f32.mrb[7].mxu0  ;;  %v3660_v22 = vunpack.c.l.bf16 %v3783_v60 }
 0x1e7   : > { %3702 = vst [vmem:[%s5731_s12] sm:$0xff] %v3701_v29   ;;  %v2927_v46 = vadd.f32 %v4477_v37, %v5719_v41  ;;  %v4479_v61 = vadd.f32 %v2776_v36, %v1481_v15 }
 0x1e8   : > { %v2930_v16 = vadd.f32 %v4478_v32, %v5719_v41  ;;  %v3025_v9 = vadd.f32 %v3648_v53, %v2929_v62 }
 0x1e9   : > { %v2928_v58 = vadd.f32 %v4479_v61, %v5719_v41  ;;  %v3023_v24 = vadd.f32 %v3644_v47, %v2927_v46 }
 0x1ea   : > { %v3026_v0 = vadd.f32 %v3649_v56, %v2930_v16  ;;  %v3786_v56 = vld [vmem:[%s5714_s6 + $0x48] sm:$0xff]  }
 0x1eb   : > { %v3024_v35 = vadd.f32 %v3645_v63, %v2928_v58  ;;  %v4434_v59 = vpop.f32.mrb[8].mxu0  ;;  %v3785_v63 = vld [vmem:[%s5714_s6 + $0x40] sm:$0xff]   ;;  %v3673_v2 = vunpack.c.h.bf16 %v3786_v56 }
 0x1ec   : > { %v3716_v40 = vpack.c.bf16 %v3026_v0, %v3025_v9  ;;  %v4480_v45 = vadd.f32 %v4434_v59, %v4194_v19  ;;  %v2789_v48 = vpop.f32.mrb[9].mxu0  ;;  %v3652_v19 = vunpack.c.l.bf16 %v3781_v52 }
 0x1ed   : > { %v3711_v8 = vpack.c.bf16 %v3024_v35, %v3023_v24  ;;  %v4481_v14 = vadd.f32 %v2789_v48, %v5696_v42  ;;  %v4435_v15 = vpop.f32.mrb[10].mxu0  ;;  %v3672_v35 = vunpack.c.l.bf16 %v3786_v56  ;;  %v3668_v48 = vunpack.c.l.bf16 %v3785_v63 }
 0x1ee   : > { %3795 = vst [vmem:[%s5731_s12 + $0x18] sm:$0xff] %v3716_v40   ;;  %v2933_v1 = vadd.f32 %v4480_v45, %v5719_v41  ;;  %v4482_v34 = vadd.f32 %v4435_v15, %v5698_v51  ;;  %v2792_v18 = vpop.f32.mrb[11].mxu0 }
 0x1ef   : > { %3794 = vst [vmem:[%s5731_s12 + $0x10] sm:$0xff] %v3711_v8   ;;  %v2931_v11 = vadd.f32 %v4481_v14, %v5719_v41  ;;  %v4483_v39 = vadd.f32 %v2792_v18, %v5700_v55  ;;  %v3669_v8 = vunpack.c.h.bf16 %v3785_v63 }
 0x1f0   : > { %v2934_v42 = vadd.f32 %v4482_v34, %v5719_v41  ;;  %v3029_v30 = vadd.f32 %v3656_v13, %v2933_v1 }
 0x1f1   : > { %v2932_v10 = vadd.f32 %v4483_v39, %v5719_v41  ;;  %v3027_v6 = vadd.f32 %v3652_v19, %v2931_v11  ;;  %v3788_v19 = vld [vmem:[%s5714_s6 + $0x58] sm:$0xff]  }
 0x1f2   : > { %v3030_v38 = vadd.f32 %v3657_v25, %v2934_v42  ;;  %v3681_v60 = vunpack.c.h.bf16 %v3788_v19 }
 0x1f3   : > { %v3028_v12 = vadd.f32 %v3653_v27, %v2932_v10  ;;  %v4438_v51 = vpop.f32.mrb[12].mxu0 }
 0x1f4   : > { %v3726_v4 = vpack.c.bf16 %v3030_v38, %v3029_v30  ;;  %v4484_v3 = vadd.f32 %v4438_v51, %v5702_v57  ;;  %v2805_v50 = vpop.f32.mrb[13].mxu0  ;;  %v3787_v30 = vld [vmem:[%s5714_s6 + $0x50] sm:$0xff]  }
 0x1f5   : > { %v3721_v5 = vpack.c.bf16 %v3028_v12, %v3027_v6  ;;  %v4485_v55 = vadd.f32 %v2805_v50, %v5704_v26  ;;  %v4439_v44 = vpop.f32.mrb[14].mxu0 }
 0x1f6   : > { %3797 = vst [vmem:[%s5731_s12 + $0x28] sm:$0xff] %v3726_v4   ;;  %v2937_v49 = vadd.f32 %v4484_v3, %v5719_v41  ;;  %v4486_v21 = vadd.f32 %v4439_v44, %v5706_v28  ;;  %v2808_v23 = vpop.f32.mrb[15].mxu0  ;;  %v3680_v3 = vunpack.c.l.bf16 %v3788_v19  ;;  %v3676_v44 = vunpack.c.l.bf16 %v3787_v30 }
 0x1f7   : > { %3796 = vst [vmem:[%s5731_s12 + $0x20] sm:$0xff] %v3721_v5   ;;  %v2935_v20 = vadd.f32 %v4485_v55, %v5719_v41  ;;  %v4487_v57 = vadd.f32 %v2808_v23, %v5708_v31 }
 0x1f8   : > { %v2938_v26 = vadd.f32 %v4486_v21, %v5719_v41  ;;  %v3033_v37 = vadd.f32 %v3664_v54, %v2937_v49  ;;  %v3677_v54 = vunpack.c.h.bf16 %v3787_v30 }
 0x1f9   : > { %v2936_v29 = vadd.f32 %v4487_v57, %v5719_v41  ;;  %v3031_v28 = vadd.f32 %v3660_v22, %v2935_v20 }
 0x1fa   : > { %v3034_v33 = vadd.f32 %v3665_v7, %v2938_v26  ;;  %v4250_v62 = vpop.f32.mrb[16].mxu1 }
 0x1fb   : > { %v3032_v53 = vadd.f32 %v3661_v17, %v2936_v29  ;;  %v4442_v32 = vpop.f32.mrb[16].mxu0  ;;  %v1785_v36 = vpop.f32.mrb[17].mxu1  ;;  %v3790_v29 = vld [vmem:[%s5714_s6 + $0x68] sm:$0xff]  }
 0x1fc   : > { %v3736_v46 = vpack.c.bf16 %v3034_v33, %v3033_v37  ;;  %v4488_v47 = vadd.f32 %v4442_v32, %v4250_v62  ;;  %v2821_v61 = vpop.f32.mrb[17].mxu0  ;;  %v4251_v31 = vpop.f32.mrb[18].mxu1  ;;  %v3688_v63 = vunpack.c.l.bf16 %v3790_v29 }
 0x1fd   : > { %v3731_v16 = vpack.c.bf16 %v3032_v53, %v3031_v28  ;;  %v4489_v58 = vadd.f32 %v2821_v61, %v1785_v36  ;;  %v4443_v9 = vpop.f32.mrb[18].mxu0  ;;  %v1788_v0 = vpop.f32.mrb[19].mxu1  ;;  %v3789_v53 = vld [vmem:[%s5714_s6 + $0x60] sm:$0xff]  }
 0x1fe   : > { %3799 = vst [vmem:[%s5731_s12 + $0x38] sm:$0xff] %v3736_v46   ;;  %v2941_v24 = vadd.f32 %v4488_v47, %v5719_v41  ;;  %v4490_v59 = vadd.f32 %v4443_v9, %v4251_v31  ;;  %v2824_v40 = vpop.f32.mrb[19].mxu0 }
 0x1ff   : > { %3798 = vst [vmem:[%s5731_s12 + $0x30] sm:$0xff] %v3731_v16   ;;  %v2939_v45 = vadd.f32 %v4489_v58, %v5719_v41  ;;  %v4491_v52 = vadd.f32 %v2824_v40, %v1788_v0  ;;  %v3689_v16 = vunpack.c.h.bf16 %v3790_v29  ;;  %v3684_v0 = vunpack.c.l.bf16 %v3789_v53 }
 0x200   : > { %v2942_v14 = vadd.f32 %v4490_v59, %v5719_v41  ;;  %v3037_v1 = vadd.f32 %v3672_v35, %v2941_v24  ;;  %v3685_v35 = vunpack.c.h.bf16 %v3789_v53 }
 0x201   : > { %v2940_v15 = vadd.f32 %v4491_v52, %v5719_v41  ;;  %v3035_v25 = vadd.f32 %v3668_v48, %v2939_v45 }
 0x202   : > { %v3038_v13 = vadd.f32 %v3673_v2, %v2942_v14  ;;  %v4254_v34 = vpop.f32.mrb[20].mxu1 }
 0x203   : > { %v3036_v18 = vadd.f32 %v3669_v8, %v2940_v15  ;;  %v4446_v11 = vpop.f32.mrb[20].mxu0  ;;  %v1801_v39 = vpop.f32.mrb[21].mxu1  ;;  %v3792_v15 = vld [vmem:[%s5714_s6 + $0x78] sm:$0xff]  }
 0x204   : > { %v3746_v27 = vpack.c.bf16 %v3038_v13, %v3037_v1  ;;  %v4492_v42 = vadd.f32 %v4446_v11, %v4254_v34  ;;  %v2837_v10 = vpop.f32.mrb[21].mxu0  ;;  %v4255_v38 = vpop.f32.mrb[22].mxu1  ;;  %v3696_v30 = vunpack.c.l.bf16 %v3792_v15 }
 0x205   : > { %v3741_v6 = vpack.c.bf16 %v3036_v18, %v3035_v25  ;;  %v4493_v12 = vadd.f32 %v2837_v10, %v1801_v39  ;;  %v4447_v51 = vpop.f32.mrb[22].mxu0  ;;  %v1804_v43 = vpop.f32.mrb[23].mxu1  ;;  %v3791_v18 = vld [vmem:[%s5714_s6 + $0x70] sm:$0xff]  }
 0x206   : > { %3801 = vst [vmem:[%s5731_s12 + $0x48] sm:$0xff] %v3746_v27   ;;  %v2945_v4 = vadd.f32 %v4492_v42, %v5719_v41  ;;  %v4494_v50 = vadd.f32 %v4447_v51, %v4255_v38  ;;  %v2840_v5 = vpop.f32.mrb[23].mxu0 }
 0x207   : > { %3800 = vst [vmem:[%s5731_s12 + $0x40] sm:$0xff] %v3741_v6   ;;  %v2943_v55 = vadd.f32 %v4493_v12, %v5719_v41  ;;  %v4495_v49 = vadd.f32 %v2840_v5, %v1804_v43  ;;  %v3697_v6 = vunpack.c.h.bf16 %v3792_v15  ;;  %v3692_v43 = vunpack.c.l.bf16 %v3791_v18 }
 0x208   : > { %v2946_v21 = vadd.f32 %v4494_v50, %v5719_v41  ;;  %v3041_v23 = vadd.f32 %v3680_v3, %v2945_v4  ;;  %v3693_v3 = vunpack.c.h.bf16 %v3791_v18 }
 0x209   : > { %v2944_v7 = vadd.f32 %v4495_v49, %v5719_v41  ;;  %v3039_v57 = vadd.f32 %v3676_v44, %v2943_v55 }
 0x20a   : > { %v3042_v20 = vadd.f32 %v3681_v60, %v2946_v21  ;;  %v4258_v22 = vpop.f32.mrb[24].mxu1 }
 0x20b   : > { %v3040_v17 = vadd.f32 %v3677_v54, %v2944_v7  ;;  %v4450_v26 = vpop.f32.mrb[24].mxu0  ;;  %v1817_v37 = vpop.f32.mrb[25].mxu1 }
 0x20c   : > { %v3756_v33 = vpack.c.bf16 %v3042_v20, %v3041_v23  ;;  %v4496_v62 = vadd.f32 %v4450_v26, %v4258_v22  ;;  %v2853_v28 = vpop.f32.mrb[25].mxu0  ;;  %v4259_v32 = vpop.f32.mrb[26].mxu1 }
 0x20d   : > { %v3751_v56 = vpack.c.bf16 %v3040_v17, %v3039_v57  ;;  %v4497_v36 = vadd.f32 %v2853_v28, %v1817_v37  ;;  %v4451_v46 = vpop.f32.mrb[26].mxu0  ;;  %v1820_v47 = vpop.f32.mrb[27].mxu1 }
 0x20e   : > { %3803 = vst [vmem:[%s5731_s12 + $0x58] sm:$0xff] %v3756_v33   ;;  %v2949_v61 = vadd.f32 %v4496_v62, %v5719_v41  ;;  %v4498_v31 = vadd.f32 %v4451_v46, %v4259_v32  ;;  %v2856_v58 = vpop.f32.mrb[27].mxu0 }
 0x20f   : > { %3802 = vst [vmem:[%s5731_s12 + $0x50] sm:$0xff] %v3751_v56   ;;  %v2947_v9 = vadd.f32 %v4497_v36, %v5719_v41  ;;  %v4499_v24 = vadd.f32 %v2856_v58, %v1820_v47 }
 0x210   : > { %v2950_v59 = vadd.f32 %v4498_v31, %v5719_v41  ;;  %v3045_v40 = vadd.f32 %v3688_v63, %v2949_v61 }
 0x211   : > { %v2948_v2 = vadd.f32 %v4499_v24, %v5719_v41  ;;  %v3043_v52 = vadd.f32 %v3684_v0, %v2947_v9 }
 0x212   : > { %v3046_v45 = vadd.f32 %v3689_v16, %v2950_v59  ;;  %v4262_v48 = vpop.f32.mrb[28].mxu1 }
 0x213   : > { %v3044_v8 = vadd.f32 %v3685_v35, %v2948_v2  ;;  %v4454_v14 = vpop.f32.mrb[28].mxu0  ;;  %v1833_v1 = vpop.f32.mrb[29].mxu1 }
 0x214   : > { %v3766_v13 = vpack.c.bf16 %v3046_v45, %v3045_v40  ;;  %v4500_v34 = vadd.f32 %v4454_v14, %v4262_v48  ;;  %v2869_v25 = vpop.f32.mrb[29].mxu0  ;;  %v4263_v11 = vpop.f32.mrb[30].mxu1 }
 0x215   : > { %v3761_v19 = vpack.c.bf16 %v3044_v8, %v3043_v52  ;;  %v4501_v39 = vadd.f32 %v2869_v25, %v1833_v1  ;;  %v4455_v27 = vpop.f32.mrb[30].mxu0  ;;  %v1836_v42 = vpop.f32.mrb[31].mxu1 }
 0x216   : > { %3805 = vst [vmem:[%s5731_s12 + $0x68] sm:$0xff] %v3766_v13   ;;  %v2953_v10 = vadd.f32 %v4500_v34, %v5719_v41  ;;  %v4502_v38 = vadd.f32 %v4455_v27, %v4263_v11  ;;  %v2872_v12 = vpop.f32.mrb[31].mxu0 }
 0x217   : > { %3804 = vst [vmem:[%s5731_s12 + $0x60] sm:$0xff] %v3761_v19   ;;  %v2951_v51 = vadd.f32 %v4501_v39, %v5719_v41  ;;  %v4503_v4 = vadd.f32 %v2872_v12, %v1836_v42 }
 0x218   : > { %v2954_v50 = vadd.f32 %v4502_v38, %v5719_v41  ;;  %v3049_v5 = vadd.f32 %v3696_v30, %v2953_v10 }
 0x219   : > { %v2952_v60 = vadd.f32 %v4503_v4, %v5719_v41  ;;  %v3047_v44 = vadd.f32 %v3692_v43, %v2951_v51 }
 0x21a   : > { %v3050_v55 = vadd.f32 %v3697_v6, %v2954_v50 }
 0x21b   : > { %v3048_v49 = vadd.f32 %v3693_v3, %v2952_v60 }
 0x21c   : > { %v3776_v54 = vpack.c.bf16 %v3050_v55, %v3049_v5 }
 0x21d   : > { %v3771_v21 = vpack.c.bf16 %v3048_v49, %v3047_v44 }
 0x21e   : > { %3807 = vst [vmem:[%s5731_s12 + $0x78] sm:$0xff] %v3776_v54  }
 0x21f   : > { %3806 = vst [vmem:[%s5731_s12 + $0x70] sm:$0xff] %v3771_v21  }
 0x220 PF: > { %s14_s17 = sadd.s32 1, %s4855_s17   ;;  %s5825_s15 = smov %s4851_s16 }
 0x221   : > { %p11_p5 = scmp.ge.s32.totalorder %s14_s17, 4   ;;  %s5826_s16 = smov %s5828_s18 }
 0x223   :  { %13 = sbr.rel (!%p11_p5) target bundleno = 2 (0x2), region = 83 }

</bundles_post_ra>
